<compile_context>
chip_gen: v7x
topology: tpu7x:2x2x1
jax: 0.10.0
libtpu: 0.0.40
codegen_flags: <defaults>
</compile_context>

<pallas_src>
import functools

import jax
import jax.numpy as jnp
from jax.experimental import pallas as pl
from jax.experimental.pallas import tpu as pltpu

N_C2 = 32        # conv2 output channels
N_SP2 = 81       # conv2 spatial positions (9 * 9)
N_SP2_PAD = 128  # conv2 spatial padded to one full lane tile
N_H = 256        # linear1 width
N_PAD = 128      # padded linear2 output width (lane-dense store)


# ---------------------------------------------------------------------------
# Kernel 1: conv1 as a (16, 256) @ (256, 441) matmul per image, + bias + ReLU.
# ---------------------------------------------------------------------------
def _conv1_kernel(p_ref, w_ref, b_ref, o_ref):
    # p_ref: (1, 256, 441) bf16  im2col patches of one image (K order: C, kh, kw)
    # w_ref: (16, 256)     bf16  conv1 weight reshaped
    # b_ref: (16, 1)       f32
    # o_ref: (1, 16, 441)  bf16  NCHW conv1 output (channels x spatial)
    z = jnp.dot(w_ref[...], p_ref[0], preferred_element_type=jnp.float32)
    o_ref[0] = jnp.maximum(z + b_ref[...], 0.0).astype(o_ref.dtype)


def conv1_pallas(patches, w, b):
    B, K, S = patches.shape                    # (B, 256, 441)
    C = w.shape[0]                             # 16
    return pl.pallas_call(
        _conv1_kernel,
        out_shape=jax.ShapeDtypeStruct((B, C, S), jnp.bfloat16),
        grid=(B,),
        in_specs=[
            pl.BlockSpec((1, K, S), lambda i: (i, 0, 0)),
            pl.BlockSpec((C, K), lambda i: (0, 0)),
            pl.BlockSpec((C, 1), lambda i: (0, 0)),
        ],
        out_specs=pl.BlockSpec((1, C, S), lambda i: (i, 0, 0)),
        compiler_params=pltpu.CompilerParams(
            dimension_semantics=("parallel",)),   # v7x: batch across both TCs
    )(patches, w, b)


# ---------------------------------------------------------------------------
# Kernel 2: fused conv2 + flatten + linear1 (+ReLU) + linear2.
# ---------------------------------------------------------------------------
def _head_kernel(p_ref, w2_ref, b2_ref, w3_ref, b3_ref, w4_ref, b4_ref,
                 o_ref, h2_s):
    # p_ref : (B, 256, 128)  bf16  conv2 patches, spatial zero-padded 81 -> 128
    # w2_ref: (32, 256)      bf16  conv2 weight
    # b2_ref: (32, 1)        f32
    # w3_ref: (32, 128, 256) bf16  linear1 weight in NCHW-flatten blocks,
    #                              rows >= 81 are zero (so padded conv2
    #                              columns contribute nothing)
    # b3_ref: (1, 256)       f32
    # w4_ref: (256, 128)     bf16  linear2 weight, zero-padded to 128 columns
    # b4_ref: (1, 128)       f32
    # o_ref : (B, 128)       f32   lane-dense output
    # h2_s  : (B, 32, 128)   bf16  VMEM scratch: conv2 activations (no HBM trip)
    B = o_ref.shape[0]
    w2 = w2_ref[...]
    b2 = b2_ref[...]
    # conv2 + ReLU: one plain 2-D (32,256)@(256,128) matmul per image.
    for i in range(B):
        z = jnp.dot(w2, p_ref[i], preferred_element_type=jnp.float32)
        h2_s[i] = jnp.maximum(z + b2, 0.0).astype(jnp.bfloat16)
    # linear1 on the NCHW flatten:
    #   flat @ W1 == sum_c h2[:, c, :] @ W1[c*81:(c+1)*81]  (padded cols hit
    #   zero rows of w3, so they are harmless).
    acc = jnp.zeros((B, N_H), jnp.float32)
    for c in range(N_C2):
        acc = acc + jnp.dot(h2_s[:, c, :], w3_ref[c],
                            preferred_element_type=jnp.float32)
    h3 = jnp.maximum(acc + b3_ref[...], 0.0).astype(jnp.bfloat16)   # (B, 256)
    # linear2, padded to 128 lanes -> unmasked vector stores.
    out = jnp.dot(h3, w4_ref[...], preferred_element_type=jnp.float32)
    o_ref[...] = out + b4_ref[...]


def head_pallas(patches2, w2, b2, w3, b3, w4, b4):
    B = patches2.shape[0]
    return pl.pallas_call(
        _head_kernel,
        out_shape=jax.ShapeDtypeStruct((B, N_PAD), jnp.float32),
        in_specs=[pl.BlockSpec(memory_space=pltpu.MemorySpace.VMEM)] * 7,
        out_specs=pl.BlockSpec(memory_space=pltpu.MemorySpace.VMEM),
        scratch_shapes=[pltpu.VMEM((B, N_C2, N_SP2_PAD), jnp.bfloat16)],
    )(patches2, w2, b2, w3, b3, w4, b4)


# ---------------------------------------------------------------------------
# Parameters: synthetic init + offline (out-of-jit) weight preprocessing.
# ---------------------------------------------------------------------------
def init_qnet_params(key, n_outputs):
    ks = jax.random.split(key, 8)
    s = 0.05
    u = lambda k, shape: jax.random.uniform(k, shape, jnp.float32, -s, s)
    return {
        "conv1_w": u(ks[0], (16, 4, 8, 8)),
        "conv1_b": u(ks[1], (16,)),
        "conv2_w": u(ks[2], (32, 16, 4, 4)),
        "conv2_b": u(ks[3], (32,)),
        # stored (in, out) so forward is x @ W; rows follow the NCHW flatten.
        "lin1_w": u(ks[4], (2592, 256)),
        "lin1_b": u(ks[5], (256,)),
        "lin2_w": u(ks[6], (256, n_outputs)),
        "lin2_b": u(ks[7], (n_outputs,)),
    }


def prepare_params(params, n_outputs):
    """Offline reshape / pad / cast of the weights (free at inference time)."""
    w3 = params["lin1_w"].reshape(N_C2, N_SP2, N_H)
    w3 = jnp.pad(w3, ((0, 0), (0, N_SP2_PAD - N_SP2), (0, 0)))     # zero rows
    w4 = jnp.zeros((256, N_PAD), jnp.float32).at[:, :n_outputs].set(params["lin2_w"])
    b4 = jnp.zeros((1, N_PAD), jnp.float32).at[0, :n_outputs].set(params["lin2_b"])
    return {
        "w1": params["conv1_w"].reshape(16, 4 * 8 * 8).astype(jnp.bfloat16),
        "b1": params["conv1_b"].reshape(16, 1).astype(jnp.float32),
        "w2": params["conv2_w"].reshape(32, 16 * 4 * 4).astype(jnp.bfloat16),
        "b2": params["conv2_b"].reshape(32, 1).astype(jnp.float32),
        "w3": w3.astype(jnp.bfloat16),
        "b3": params["lin1_b"].reshape(1, N_H).astype(jnp.float32),
        "w4": w4.astype(jnp.bfloat16),
        "b4": b4,
    }


# ---------------------------------------------------------------------------
# Forward pass.
# ---------------------------------------------------------------------------
def qnet_forward(prep, x, *, n_outputs):
    """x: (B, 4, 84, 84) float32 -> (B, n_outputs) float32."""
    B = x.shape[0]
    xb = x.astype(jnp.bfloat16)
    # conv1 patches: (B, 4*8*8, 21, 21) with K ordered (C_in, kh, kw) --
    # structured extraction (no XLA gather).
    p1 = jax.lax.conv_general_dilated_patches(
        xb, filter_shape=(8, 8), window_strides=(4, 4),
        padding=((2, 2), (2, 2)))
    p1 = p1.reshape(B, 256, 21 * 21)                       # free metadata reshape
    h1 = conv1_pallas(p1, prep["w1"], prep["b1"])          # (B, 16, 441) bf16, NCHW
    # conv2 patches from the NCHW conv1 output: (B, 16*4*4, 9, 9).
    p2 = jax.lax.conv_general_dilated_patches(
        h1.reshape(B, 16, 21, 21), filter_shape=(4, 4), window_strides=(2, 2),
        padding="VALID")
    p2 = p2.reshape(B, 256, N_SP2)                         # free metadata reshape
    p2 = jnp.pad(p2, ((0, 0), (0, 0), (0, N_SP2_PAD - N_SP2)))   # lane-dense 128
    out = head_pallas(p2, prep["w2"], prep["b2"], prep["w3"], prep["b3"],
                      prep["w4"], prep["b4"])              # (B, 128) f32
    return out[:, :n_outputs]


def qnet_reference(params, x):
    """Pure-JAX f32 reference (same semantics as the PyTorch module)."""
    hp = jax.lax.Precision.HIGHEST
    h = jax.lax.conv_general_dilated(
        x, params["conv1_w"], (4, 4), ((2, 2), (2, 2)),
        dimension_numbers=("NCHW", "OIHW", "NCHW"), precision=hp)
    h = jnp.maximum(h + params["conv1_b"][None, :, None, None], 0.0)
    h = jax.lax.conv_general_dilated(
        h, params["conv2_w"], (2, 2), ((0, 0), (0, 0)),
        dimension_numbers=("NCHW", "OIHW", "NCHW"), precision=hp)
    h = jnp.maximum(h + params["conv2_b"][None, :, None, None], 0.0)
    flat = h.reshape(h.shape[0], -1)
    h = jnp.maximum(jnp.dot(flat, params["lin1_w"], precision=hp)
                    + params["lin1_b"], 0.0)
    return jnp.dot(h, params["lin2_w"], precision=hp) + params["lin2_b"]


if __name__ == "__main__":
    n_outputs = 6                       # Pong action space
    batch = 2
    key = jax.random.PRNGKey(0)
    k_params, k_x = jax.random.split(key)

    params = init_qnet_params(k_params, n_outputs)
    prep = prepare_params(params, n_outputs)    # offline weight preprocessing
    # Input must be (B, 4, 84, 84) so the conv stack flattens to 2592.
    x = jax.random.normal(k_x, (batch, 4, 84, 84), dtype=jnp.float32)

    fwd = jax.jit(functools.partial(qnet_forward, n_outputs=n_outputs))
    out = fwd(prep, x)
    jax.block_until_ready(out)

    assert out.shape == (batch, n_outputs), out.shape
    assert bool(jnp.all(jnp.isfinite(out)))

    # bf16 MXU operands with f32 accumulation -> small deviation from fp32 ref.
    ref = jax.jit(qnet_reference)(params, x)
    err = float(jnp.max(jnp.abs(out.astype(jnp.float32) - ref)))
    assert err < 2e-2, f"max |pallas - reference| = {err}"

    print("KERNEL_OK")
</pallas_src>

<mosaic_0001>
module attributes {stable_mosaic.version = 11 : i64} {
  func.func @_conv1_kernel(%arg0: i32, %arg1: memref<1x256x441xbf16, #tpu.memory_space<vmem>>, %arg2: memref<16x256xbf16, #tpu.memory_space<vmem>>, %arg3: memref<16x1xf32, #tpu.memory_space<vmem>>, %arg4: memref<1x16x441xbf16, #tpu.memory_space<vmem>>) attributes {dimension_semantics = [#tpu.dimension_semantics<parallel>], iteration_bounds = array<i64: 2>, scalar_prefetch = 0 : i64, scratch_operands = 0 : i64, tpu.core_type = #tpu.core_type<tc>, window_params = [{transform_indices = @transform_0, window_bounds = array<i64: 1, 256, 441>}, {pipeline_mode = #tpu.pipeline_mode<synchronous>, transform_indices = @transform_1, window_bounds = array<i64: 16, 256>}, {pipeline_mode = #tpu.pipeline_mode<synchronous>, transform_indices = @transform_2, window_bounds = array<i64: 16, 1>}, {transform_indices = @transform_3, window_bounds = array<i64: 1, 16, 441>}]} {
    %c0 = arith.constant 0 : index
    %c0_0 = arith.constant 0 : index
    %0 = vector.load %arg2[%c0, %c0_0] : memref<16x256xbf16, #tpu.memory_space<vmem>>, vector<16x256xbf16>
    %c0_1 = arith.constant 0 : index
    %c0_2 = arith.constant 0 : index
    %c0_3 = arith.constant 0 : index
    %1 = vector.load %arg1[%c0_1, %c0_2, %c0_3] : memref<1x256x441xbf16, #tpu.memory_space<vmem>>, vector<1x256x441xbf16>
    %2 = vector.shape_cast %1 : vector<1x256x441xbf16> to vector<256x441xbf16>
    %cst = arith.constant dense<0.000000e+00> : vector<16x441xf32>
    %3 = tpu.matmul %0, %2, %cst {dimension_numbers = #tpu.dot_dimension_numbers<[1], [0], [0], [1], [0, 0, 1, 1], [], []>} : vector<16x256xbf16>, vector<256x441xbf16>, vector<16x441xf32> -> vector<16x441xf32>
    %c0_4 = arith.constant 0 : index
    %c0_5 = arith.constant 0 : index
    %4 = vector.load %arg3[%c0_4, %c0_5] : memref<16x1xf32, #tpu.memory_space<vmem>>, vector<16x1xf32>
    %5 = vector.broadcast %4 : vector<16x1xf32> to vector<16x441xf32>
    %6 = arith.addf %3, %5 : vector<16x441xf32>
    %cst_6 = arith.constant 0.000000e+00 : f32
    %7 = vector.broadcast %cst_6 : f32 to vector<16x441xf32>
    %8 = arith.maximumf %6, %7 : vector<16x441xf32>
    %9 = arith.truncf %8 : vector<16x441xf32> to vector<16x441xbf16>
    %c0_7 = arith.constant 0 : index
    %c0_8 = arith.constant 0 : index
    %c0_9 = arith.constant 0 : index
    %10 = vector.load %arg4[%c0_7, %c0_8, %c0_9] : memref<1x16x441xbf16, #tpu.memory_space<vmem>>, vector<1x16x441xbf16>
    %11 = vector.shape_cast %10 : vector<1x16x441xbf16> to vector<16x441xbf16>
    %12 = vector.shape_cast %9 : vector<16x441xbf16> to vector<1x16x441xbf16>
    tpu.vector_store %arg4[%c0_7, %c0_8, %c0_9], %12 {strides = array<i32>} : memref<1x16x441xbf16, #tpu.memory_space<vmem>>, vector<1x16x441xbf16>,
    return
  }
  func.func @transform_0(%arg0: i32) -> (i32, i32, i32) {
    %c0_i32 = arith.constant 0 : i32
    %c0_i32_0 = arith.constant 0 : i32
    %c0_i32_1 = arith.constant 0 : i32
    return %arg0, %c0_i32, %c0_i32_0 : i32, i32, i32
  }
  func.func @transform_1(%arg0: i32) -> (i32, i32) {
    %c0_i32 = arith.constant 0 : i32
    %c0_i32_0 = arith.constant 0 : i32
    %c0_i32_1 = arith.constant 0 : i32
    return %c0_i32, %c0_i32_0 : i32, i32
  }
  func.func @transform_2(%arg0: i32) -> (i32, i32) {
    %c0_i32 = arith.constant 0 : i32
    %c0_i32_0 = arith.constant 0 : i32
    %c0_i32_1 = arith.constant 0 : i32
    return %c0_i32, %c0_i32_0 : i32, i32
  }
  func.func @transform_3(%arg0: i32) -> (i32, i32, i32) {
    %c0_i32 = arith.constant 0 : i32
    %c0_i32_0 = arith.constant 0 : i32
    %c0_i32_1 = arith.constant 0 : i32
    return %arg0, %c0_i32, %c0_i32_0 : i32, i32, i32
  }
}

module attributes {stable_mosaic.version = 11 : i64} {
  func.func @_head_kernel(%arg0: memref<2x256x128xbf16, #tpu.memory_space<vmem>>, %arg1: memref<32x256xbf16, #tpu.memory_space<vmem>>, %arg2: memref<32x1xf32, #tpu.memory_space<vmem>>, %arg3: memref<32x128x256xbf16, #tpu.memory_space<vmem>>, %arg4: memref<1x256xf32, #tpu.memory_space<vmem>>, %arg5: memref<256x128xbf16, #tpu.memory_space<vmem>>, %arg6: memref<1x128xf32, #tpu.memory_space<vmem>>, %arg7: memref<2x128xf32, #tpu.memory_space<vmem>>, %arg8: memref<2x32x128xbf16, #tpu.memory_space<vmem>>) attributes {dimension_semantics = [], scalar_prefetch = 0 : i64, scratch_operands = 1 : i64, tpu.core_type = #tpu.core_type<tc>} {
    %c0 = arith.constant 0 : index
    %c0_0 = arith.constant 0 : index
    %0 = vector.load %arg1[%c0, %c0_0] : memref<32x256xbf16, #tpu.memory_space<vmem>>, vector<32x256xbf16>
    %c0_1 = arith.constant 0 : index
    %c0_2 = arith.constant 0 : index
    %1 = vector.load %arg2[%c0_1, %c0_2] : memref<32x1xf32, #tpu.memory_space<vmem>>, vector<32x1xf32>
    %c0_3 = arith.constant 0 : index
    %c0_4 = arith.constant 0 : index
    %c0_5 = arith.constant 0 : index
    %2 = vector.load %arg0[%c0_3, %c0_4, %c0_5] : memref<2x256x128xbf16, #tpu.memory_space<vmem>>, vector<1x256x128xbf16>
    %3 = vector.shape_cast %2 : vector<1x256x128xbf16> to vector<256x128xbf16>
    %cst = arith.constant dense<0.000000e+00> : vector<32x128xf32>
    %4 = tpu.matmul %0, %3, %cst {dimension_numbers = #tpu.dot_dimension_numbers<[1], [0], [0], [1], [0, 0, 1, 1], [], []>} : vector<32x256xbf16>, vector<256x128xbf16>, vector<32x128xf32> -> vector<32x128xf32>
    %5 = vector.broadcast %1 : vector<32x1xf32> to vector<32x128xf32>
    %6 = arith.addf %4, %5 : vector<32x128xf32>
    %cst_6 = arith.constant 0.000000e+00 : f32
    %7 = vector.broadcast %cst_6 : f32 to vector<32x128xf32>
    %8 = arith.maximumf %6, %7 : vector<32x128xf32>
    %9 = arith.truncf %8 : vector<32x128xf32> to vector<32x128xbf16>
    %c0_7 = arith.constant 0 : index
    %c0_8 = arith.constant 0 : index
    %c0_9 = arith.constant 0 : index
    %10 = vector.load %arg8[%c0_7, %c0_8, %c0_9] : memref<2x32x128xbf16, #tpu.memory_space<vmem>>, vector<1x32x128xbf16>
    %11 = vector.shape_cast %10 : vector<1x32x128xbf16> to vector<32x128xbf16>
    %12 = vector.shape_cast %9 : vector<32x128xbf16> to vector<1x32x128xbf16>
    tpu.vector_store %arg8[%c0_7, %c0_8, %c0_9], %12 {strides = array<i32>} : memref<2x32x128xbf16, #tpu.memory_space<vmem>>, vector<1x32x128xbf16>,
    %c1 = arith.constant 1 : index
    %c0_10 = arith.constant 0 : index
    %c0_11 = arith.constant 0 : index
    %13 = vector.load %arg0[%c1, %c0_10, %c0_11] : memref<2x256x128xbf16, #tpu.memory_space<vmem>>, vector<1x256x128xbf16>
    %14 = vector.shape_cast %13 : vector<1x256x128xbf16> to vector<256x128xbf16>
    %cst_12 = arith.constant dense<0.000000e+00> : vector<32x128xf32>
    %15 = tpu.matmul %0, %14, %cst_12 {dimension_numbers = #tpu.dot_dimension_numbers<[1], [0], [0], [1], [0, 0, 1, 1], [], []>} : vector<32x256xbf16>, vector<256x128xbf16>, vector<32x128xf32> -> vector<32x128xf32>
    %16 = vector.broadcast %1 : vector<32x1xf32> to vector<32x128xf32>
    %17 = arith.addf %15, %16 : vector<32x128xf32>
    %cst_13 = arith.constant 0.000000e+00 : f32
    %18 = vector.broadcast %cst_13 : f32 to vector<32x128xf32>
    %19 = arith.maximumf %17, %18 : vector<32x128xf32>
    %20 = arith.truncf %19 : vector<32x128xf32> to vector<32x128xbf16>
    %c1_14 = arith.constant 1 : index
    %c0_15 = arith.constant 0 : index
    %c0_16 = arith.constant 0 : index
    %21 = vector.load %arg8[%c1_14, %c0_15, %c0_16] : memref<2x32x128xbf16, #tpu.memory_space<vmem>>, vector<1x32x128xbf16>
    %22 = vector.shape_cast %21 : vector<1x32x128xbf16> to vector<32x128xbf16>
    %23 = vector.shape_cast %20 : vector<32x128xbf16> to vector<1x32x128xbf16>
    tpu.vector_store %arg8[%c1_14, %c0_15, %c0_16], %23 {strides = array<i32>} : memref<2x32x128xbf16, #tpu.memory_space<vmem>>, vector<1x32x128xbf16>,
    %cst_17 = arith.constant 0.000000e+00 : f32
    %24 = vector.broadcast %cst_17 : f32 to vector<2x256xf32>
    %c0_18 = arith.constant 0 : index
    %c0_19 = arith.constant 0 : index
    %c0_20 = arith.constant 0 : index
    %25 = vector.load %arg8[%c0_18, %c0_19, %c0_20] : memref<2x32x128xbf16, #tpu.memory_space<vmem>>, vector<2x1x128xbf16>
    %26 = vector.shape_cast %25 : vector<2x1x128xbf16> to vector<2x128xbf16>
    %c0_21 = arith.constant 0 : index
    %c0_22 = arith.constant 0 : index
    %c0_23 = arith.constant 0 : index
    %27 = vector.load %arg3[%c0_21, %c0_22, %c0_23] : memref<32x128x256xbf16, #tpu.memory_space<vmem>>, vector<1x128x256xbf16>
    %28 = vector.shape_cast %27 : vector<1x128x256xbf16> to vector<128x256xbf16>
    %cst_24 = arith.constant dense<0.000000e+00> : vector<2x256xf32>
    %29 = tpu.matmul %26, %28, %cst_24 {dimension_numbers = #tpu.dot_dimension_numbers<[1], [0], [0], [1], [0, 0, 1, 1], [], []>} : vector<2x128xbf16>, vector<128x256xbf16>, vector<2x256xf32> -> vector<2x256xf32>
    %30 = arith.addf %24, %29 : vector<2x256xf32>
    %c0_25 = arith.constant 0 : index
    %c1_26 = arith.constant 1 : index
    %c0_27 = arith.constant 0 : index
    %31 = vector.load %arg8[%c0_25, %c1_26, %c0_27] : memref<2x32x128xbf16, #tpu.memory_space<vmem>>, vector<2x1x128xbf16>
    %32 = vector.shape_cast %31 : vector<2x1x128xbf16> to vector<2x128xbf16>
    %c1_28 = arith.constant 1 : index
    %c0_29 = arith.constant 0 : index
    %c0_30 = arith.constant 0 : index
    %33 = vector.load %arg3[%c1_28, %c0_29, %c0_30] : memref<32x128x256xbf16, #tpu.memory_space<vmem>>, vector<1x128x256xbf16>
    %34 = vector.shape_cast %33 : vector<1x128x256xbf16> to vector<128x256xbf16>
    %cst_31 = arith.constant dense<0.000000e+00> : vector<2x256xf32>
    %35 = tpu.matmul %32, %34, %cst_31 {dimension_numbers = #tpu.dot_dimension_numbers<[1], [0], [0], [1], [0, 0, 1, 1], [], []>} : vector<2x128xbf16>, vector<128x256xbf16>, vector<2x256xf32> -> vector<2x256xf32>
    %36 = arith.addf %30, %35 : vector<2x256xf32>
    %c0_32 = arith.constant 0 : index
    %c2 = arith.constant 2 : index
    %c0_33 = arith.constant 0 : index
    %37 = vector.load %arg8[%c0_32, %c2, %c0_33] : memref<2x32x128xbf16, #tpu.memory_space<vmem>>, vector<2x1x128xbf16>
    %38 = vector.shape_cast %37 : vector<2x1x128xbf16> to vector<2x128xbf16>
    %c2_34 = arith.constant 2 : index
    %c0_35 = arith.constant 0 : index
    %c0_36 = arith.constant 0 : index
    %39 = vector.load %arg3[%c2_34, %c0_35, %c0_36] : memref<32x128x256xbf16, #tpu.memory_space<vmem>>, vector<1x128x256xbf16>
    %40 = vector.shape_cast %39 : vector<1x128x256xbf16> to vector<128x256xbf16>
    %cst_37 = arith.constant dense<0.000000e+00> : vector<2x256xf32>
    %41 = tpu.matmul %38, %40, %cst_37 {dimension_numbers = #tpu.dot_dimension_numbers<[1], [0], [0], [1], [0, 0, 1, 1], [], []>} : vector<2x128xbf16>, vector<128x256xbf16>, vector<2x256xf32> -> vector<2x256xf32>
    %42 = arith.addf %36, %41 : vector<2x256xf32>
    %c0_38 = arith.constant 0 : index
    %c3 = arith.constant 3 : index
    %c0_39 = arith.constant 0 : index
    %43 = vector.load %arg8[%c0_38, %c3, %c0_39] : memref<2x32x128xbf16, #tpu.memory_space<vmem>>, vector<2x1x128xbf16>
    %44 = vector.shape_cast %43 : vector<2x1x128xbf16> to vector<2x128xbf16>
    %c3_40 = arith.constant 3 : index
    %c0_41 = arith.constant 0 : index
    %c0_42 = arith.constant 0 : index
    %45 = vector.load %arg3[%c3_40, %c0_41, %c0_42] : memref<32x128x256xbf16, #tpu.memory_space<vmem>>, vector<1x128x256xbf16>
    %46 = vector.shape_cast %45 : vector<1x128x256xbf16> to vector<128x256xbf16>
    %cst_43 = arith.constant dense<0.000000e+00> : vector<2x256xf32>
    %47 = tpu.matmul %44, %46, %cst_43 {dimension_numbers = #tpu.dot_dimension_numbers<[1], [0], [0], [1], [0, 0, 1, 1], [], []>} : vector<2x128xbf16>, vector<128x256xbf16>, vector<2x256xf32> -> vector<2x256xf32>
    %48 = arith.addf %42, %47 : vector<2x256xf32>
    %c0_44 = arith.constant 0 : index
    %c4 = arith.constant 4 : index
    %c0_45 = arith.constant 0 : index
    %49 = vector.load %arg8[%c0_44, %c4, %c0_45] : memref<2x32x128xbf16, #tpu.memory_space<vmem>>, vector<2x1x128xbf16>
    %50 = vector.shape_cast %49 : vector<2x1x128xbf16> to vector<2x128xbf16>
    %c4_46 = arith.constant 4 : index
    %c0_47 = arith.constant 0 : index
    %c0_48 = arith.constant 0 : index
    %51 = vector.load %arg3[%c4_46, %c0_47, %c0_48] : memref<32x128x256xbf16, #tpu.memory_space<vmem>>, vector<1x128x256xbf16>
    %52 = vector.shape_cast %51 : vector<1x128x256xbf16> to vector<128x256xbf16>
    %cst_49 = arith.constant dense<0.000000e+00> : vector<2x256xf32>
    %53 = tpu.matmul %50, %52, %cst_49 {dimension_numbers = #tpu.dot_dimension_numbers<[1], [0], [0], [1], [0, 0, 1, 1], [], []>} : vector<2x128xbf16>, vector<128x256xbf16>, vector<2x256xf32> -> vector<2x256xf32>
    %54 = arith.addf %48, %53 : vector<2x256xf32>
    %c0_50 = arith.constant 0 : index
    %c5 = arith.constant 5 : index
    %c0_51 = arith.constant 0 : index
    %55 = vector.load %arg8[%c0_50, %c5, %c0_51] : memref<2x32x128xbf16, #tpu.memory_space<vmem>>, vector<2x1x128xbf16>
    %56 = vector.shape_cast %55 : vector<2x1x128xbf16> to vector<2x128xbf16>
    %c5_52 = arith.constant 5 : index
    %c0_53 = arith.constant 0 : index
    %c0_54 = arith.constant 0 : index
    %57 = vector.load %arg3[%c5_52, %c0_53, %c0_54] : memref<32x128x256xbf16, #tpu.memory_space<vmem>>, vector<1x128x256xbf16>
    %58 = vector.shape_cast %57 : vector<1x128x256xbf16> to vector<128x256xbf16>
    %cst_55 = arith.constant dense<0.000000e+00> : vector<2x256xf32>
    %59 = tpu.matmul %56, %58, %cst_55 {dimension_numbers = #tpu.dot_dimension_numbers<[1], [0], [0], [1], [0, 0, 1, 1], [], []>} : vector<2x128xbf16>, vector<128x256xbf16>, vector<2x256xf32> -> vector<2x256xf32>
    %60 = arith.addf %54, %59 : vector<2x256xf32>
    %c0_56 = arith.constant 0 : index
    %c6 = arith.constant 6 : index
    %c0_57 = arith.constant 0 : index
    %61 = vector.load %arg8[%c0_56, %c6, %c0_57] : memref<2x32x128xbf16, #tpu.memory_space<vmem>>, vector<2x1x128xbf16>
    %62 = vector.shape_cast %61 : vector<2x1x128xbf16> to vector<2x128xbf16>
    %c6_58 = arith.constant 6 : index
    %c0_59 = arith.constant 0 : index
    %c0_60 = arith.constant 0 : index
    %63 = vector.load %arg3[%c6_58, %c0_59, %c0_60] : memref<32x128x256xbf16, #tpu.memory_space<vmem>>, vector<1x128x256xbf16>
    %64 = vector.shape_cast %63 : vector<1x128x256xbf16> to vector<128x256xbf16>
    %cst_61 = arith.constant dense<0.000000e+00> : vector<2x256xf32>
    %65 = tpu.matmul %62, %64, %cst_61 {dimension_numbers = #tpu.dot_dimension_numbers<[1], [0], [0], [1], [0, 0, 1, 1], [], []>} : vector<2x128xbf16>, vector<128x256xbf16>, vector<2x256xf32> -> vector<2x256xf32>
    %66 = arith.addf %60, %65 : vector<2x256xf32>
    %c0_62 = arith.constant 0 : index
    %c7 = arith.constant 7 : index
    %c0_63 = arith.constant 0 : index
    %67 = vector.load %arg8[%c0_62, %c7, %c0_63] : memref<2x32x128xbf16, #tpu.memory_space<vmem>>, vector<2x1x128xbf16>
    %68 = vector.shape_cast %67 : vector<2x1x128xbf16> to vector<2x128xbf16>
    %c7_64 = arith.constant 7 : index
    %c0_65 = arith.constant 0 : index
    %c0_66 = arith.constant 0 : index
    %69 = vector.load %arg3[%c7_64, %c0_65, %c0_66] : memref<32x128x256xbf16, #tpu.memory_space<vmem>>, vector<1x128x256xbf16>
    %70 = vector.shape_cast %69 : vector<1x128x256xbf16> to vector<128x256xbf16>
    %cst_67 = arith.constant dense<0.000000e+00> : vector<2x256xf32>
    %71 = tpu.matmul %68, %70, %cst_67 {dimension_numbers = #tpu.dot_dimension_numbers<[1], [0], [0], [1], [0, 0, 1, 1], [], []>} : vector<2x128xbf16>, vector<128x256xbf16>, vector<2x256xf32> -> vector<2x256xf32>
    %72 = arith.addf %66, %71 : vector<2x256xf32>
    %c0_68 = arith.constant 0 : index
    %c8 = arith.constant 8 : index
    %c0_69 = arith.constant 0 : index
    %73 = vector.load %arg8[%c0_68, %c8, %c0_69] : memref<2x32x128xbf16, #tpu.memory_space<vmem>>, vector<2x1x128xbf16>
    %74 = vector.shape_cast %73 : vector<2x1x128xbf16> to vector<2x128xbf16>
    %c8_70 = arith.constant 8 : index
    %c0_71 = arith.constant 0 : index
    %c0_72 = arith.constant 0 : index
    %75 = vector.load %arg3[%c8_70, %c0_71, %c0_72] : memref<32x128x256xbf16, #tpu.memory_space<vmem>>, vector<1x128x256xbf16>
    %76 = vector.shape_cast %75 : vector<1x128x256xbf16> to vector<128x256xbf16>
    %cst_73 = arith.constant dense<0.000000e+00> : vector<2x256xf32>
    %77 = tpu.matmul %74, %76, %cst_73 {dimension_numbers = #tpu.dot_dimension_numbers<[1], [0], [0], [1], [0, 0, 1, 1], [], []>} : vector<2x128xbf16>, vector<128x256xbf16>, vector<2x256xf32> -> vector<2x256xf32>
    %78 = arith.addf %72, %77 : vector<2x256xf32>
    %c0_74 = arith.constant 0 : index
    %c9 = arith.constant 9 : index
    %c0_75 = arith.constant 0 : index
    %79 = vector.load %arg8[%c0_74, %c9, %c0_75] : memref<2x32x128xbf16, #tpu.memory_space<vmem>>, vector<2x1x128xbf16>
    %80 = vector.shape_cast %79 : vector<2x1x128xbf16> to vector<2x128xbf16>
    %c9_76 = arith.constant 9 : index
    %c0_77 = arith.constant 0 : index
    %c0_78 = arith.constant 0 : index
    %81 = vector.load %arg3[%c9_76, %c0_77, %c0_78] : memref<32x128x256xbf16, #tpu.memory_space<vmem>>, vector<1x128x256xbf16>
    %82 = vector.shape_cast %81 : vector<1x128x256xbf16> to vector<128x256xbf16>
    %cst_79 = arith.constant dense<0.000000e+00> : vector<2x256xf32>
    %83 = tpu.matmul %80, %82, %cst_79 {dimension_numbers = #tpu.dot_dimension_numbers<[1], [0], [0], [1], [0, 0, 1, 1], [], []>} : vector<2x128xbf16>, vector<128x256xbf16>, vector<2x256xf32> -> vector<2x256xf32>
    %84 = arith.addf %78, %83 : vector<2x256xf32>
    %c0_80 = arith.constant 0 : index
    %c10 = arith.constant 10 : index
    %c0_81 = arith.constant 0 : index
    %85 = vector.load %arg8[%c0_80, %c10, %c0_81] : memref<2x32x128xbf16, #tpu.memory_space<vmem>>, vector<2x1x128xbf16>
    %86 = vector.shape_cast %85 : vector<2x1x128xbf16> to vector<2x128xbf16>
    %c10_82 = arith.constant 10 : index
    %c0_83 = arith.constant 0 : index
    %c0_84 = arith.constant 0 : index
    %87 = vector.load %arg3[%c10_82, %c0_83, %c0_84] : memref<32x128x256xbf16, #tpu.memory_space<vmem>>, vector<1x128x256xbf16>
    %88 = vector.shape_cast %87 : vector<1x128x256xbf16> to vector<128x256xbf16>
    %cst_85 = arith.constant dense<0.000000e+00> : vector<2x256xf32>
    %89 = tpu.matmul %86, %88, %cst_85 {dimension_numbers = #tpu.dot_dimension_numbers<[1], [0], [0], [1], [0, 0, 1, 1], [], []>} : vector<2x128xbf16>, vector<128x256xbf16>, vector<2x256xf32> -> vector<2x256xf32>
    %90 = arith.addf %84, %89 : vector<2x256xf32>
    %c0_86 = arith.constant 0 : index
    %c11 = arith.constant 11 : index
    %c0_87 = arith.constant 0 : index
    %91 = vector.load %arg8[%c0_86, %c11, %c0_87] : memref<2x32x128xbf16, #tpu.memory_space<vmem>>, vector<2x1x128xbf16>
    %92 = vector.shape_cast %91 : vector<2x1x128xbf16> to vector<2x128xbf16>
    %c11_88 = arith.constant 11 : index
    %c0_89 = arith.constant 0 : index
    %c0_90 = arith.constant 0 : index
    %93 = vector.load %arg3[%c11_88, %c0_89, %c0_90] : memref<32x128x256xbf16, #tpu.memory_space<vmem>>, vector<1x128x256xbf16>
    %94 = vector.shape_cast %93 : vector<1x128x256xbf16> to vector<128x256xbf16>
    %cst_91 = arith.constant dense<0.000000e+00> : vector<2x256xf32>
    %95 = tpu.matmul %92, %94, %cst_91 {dimension_numbers = #tpu.dot_dimension_numbers<[1], [0], [0], [1], [0, 0, 1, 1], [], []>} : vector<2x128xbf16>, vector<128x256xbf16>, vector<2x256xf32> -> vector<2x256xf32>
    %96 = arith.addf %90, %95 : vector<2x256xf32>
    %c0_92 = arith.constant 0 : index
    %c12 = arith.constant 12 : index
    %c0_93 = arith.constant 0 : index
    %97 = vector.load %arg8[%c0_92, %c12, %c0_93] : memref<2x32x128xbf16, #tpu.memory_space<vmem>>, vector<2x1x128xbf16>
    %98 = vector.shape_cast %97 : vector<2x1x128xbf16> to vector<2x128xbf16>
    %c12_94 = arith.constant 12 : index
    %c0_95 = arith.constant 0 : index
    %c0_96 = arith.constant 0 : index
    %99 = vector.load %arg3[%c12_94, %c0_95, %c0_96] : memref<32x128x256xbf16, #tpu.memory_space<vmem>>, vector<1x128x256xbf16>
    %100 = vector.shape_cast %99 : vector<1x128x256xbf16> to vector<128x256xbf16>
    %cst_97 = arith.constant dense<0.000000e+00> : vector<2x256xf32>
    %101 = tpu.matmul %98, %100, %cst_97 {dimension_numbers = #tpu.dot_dimension_numbers<[1], [0], [0], [1], [0, 0, 1, 1], [], []>} : vector<2x128xbf16>, vector<128x256xbf16>, vector<2x256xf32> -> vector<2x256xf32>
    %102 = arith.addf %96, %101 : vector<2x256xf32>
    %c0_98 = arith.constant 0 : index
    %c13 = arith.constant 13 : index
    %c0_99 = arith.constant 0 : index
    %103 = vector.load %arg8[%c0_98, %c13, %c0_99] : memref<2x32x128xbf16, #tpu.memory_space<vmem>>, vector<2x1x128xbf16>
    %104 = vector.shape_cast %103 : vector<2x1x128xbf16> to vector<2x128xbf16>
    %c13_100 = arith.constant 13 : index
    %c0_101 = arith.constant 0 : index
    %c0_102 = arith.constant 0 : index
    %105 = vector.load %arg3[%c13_100, %c0_101, %c0_102] : memref<32x128x256xbf16, #tpu.memory_space<vmem>>, vector<1x128x256xbf16>
    %106 = vector.shape_cast %105 : vector<1x128x256xbf16> to vector<128x256xbf16>
    %cst_103 = arith.constant dense<0.000000e+00> : vector<2x256xf32>
    %107 = tpu.matmul %104, %106, %cst_103 {dimension_numbers = #tpu.dot_dimension_numbers<[1], [0], [0], [1], [0, 0, 1, 1], [], []>} : vector<2x128xbf16>, vector<128x256xbf16>, vector<2x256xf32> -> vector<2x256xf32>
    %108 = arith.addf %102, %107 : vector<2x256xf32>
    %c0_104 = arith.constant 0 : index
    %c14 = arith.constant 14 : index
    %c0_105 = arith.constant 0 : index
    %109 = vector.load %arg8[%c0_104, %c14, %c0_105] : memref<2x32x128xbf16, #tpu.memory_space<vmem>>, vector<2x1x128xbf16>
    %110 = vector.shape_cast %109 : vector<2x1x128xbf16> to vector<2x128xbf16>
    %c14_106 = arith.constant 14 : index
    %c0_107 = arith.constant 0 : index
    %c0_108 = arith.constant 0 : index
    %111 = vector.load %arg3[%c14_106, %c0_107, %c0_108] : memref<32x128x256xbf16, #tpu.memory_space<vmem>>, vector<1x128x256xbf16>
    %112 = vector.shape_cast %111 : vector<1x128x256xbf16> to vector<128x256xbf16>
    %cst_109 = arith.constant dense<0.000000e+00> : vector<2x256xf32>
    %113 = tpu.matmul %110, %112, %cst_109 {dimension_numbers = #tpu.dot_dimension_numbers<[1], [0], [0], [1], [0, 0, 1, 1], [], []>} : vector<2x128xbf16>, vector<128x256xbf16>, vector<2x256xf32> -> vector<2x256xf32>
    %114 = arith.addf %108, %113 : vector<2x256xf32>
    %c0_110 = arith.constant 0 : index
    %c15 = arith.constant 15 : index
    %c0_111 = arith.constant 0 : index
    %115 = vector.load %arg8[%c0_110, %c15, %c0_111] : memref<2x32x128xbf16, #tpu.memory_space<vmem>>, vector<2x1x128xbf16>
    %116 = vector.shape_cast %115 : vector<2x1x128xbf16> to vector<2x128xbf16>
    %c15_112 = arith.constant 15 : index
    %c0_113 = arith.constant 0 : index
    %c0_114 = arith.constant 0 : index
    %117 = vector.load %arg3[%c15_112, %c0_113, %c0_114] : memref<32x128x256xbf16, #tpu.memory_space<vmem>>, vector<1x128x256xbf16>
    %118 = vector.shape_cast %117 : vector<1x128x256xbf16> to vector<128x256xbf16>
    %cst_115 = arith.constant dense<0.000000e+00> : vector<2x256xf32>
    %119 = tpu.matmul %116, %118, %cst_115 {dimension_numbers = #tpu.dot_dimension_numbers<[1], [0], [0], [1], [0, 0, 1, 1], [], []>} : vector<2x128xbf16>, vector<128x256xbf16>, vector<2x256xf32> -> vector<2x256xf32>
    %120 = arith.addf %114, %119 : vector<2x256xf32>
    %c0_116 = arith.constant 0 : index
    %c16 = arith.constant 16 : index
    %c0_117 = arith.constant 0 : index
    %121 = vector.load %arg8[%c0_116, %c16, %c0_117] : memref<2x32x128xbf16, #tpu.memory_space<vmem>>, vector<2x1x128xbf16>
    %122 = vector.shape_cast %121 : vector<2x1x128xbf16> to vector<2x128xbf16>
    %c16_118 = arith.constant 16 : index
    %c0_119 = arith.constant 0 : index
    %c0_120 = arith.constant 0 : index
    %123 = vector.load %arg3[%c16_118, %c0_119, %c0_120] : memref<32x128x256xbf16, #tpu.memory_space<vmem>>, vector<1x128x256xbf16>
    %124 = vector.shape_cast %123 : vector<1x128x256xbf16> to vector<128x256xbf16>
    %cst_121 = arith.constant dense<0.000000e+00> : vector<2x256xf32>
    %125 = tpu.matmul %122, %124, %cst_121 {dimension_numbers = #tpu.dot_dimension_numbers<[1], [0], [0], [1], [0, 0, 1, 1], [], []>} : vector<2x128xbf16>, vector<128x256xbf16>, vector<2x256xf32> -> vector<2x256xf32>
    %126 = arith.addf %120, %125 : vector<2x256xf32>
    %c0_122 = arith.constant 0 : index
    %c17 = arith.constant 17 : index
    %c0_123 = arith.constant 0 : index
    %127 = vector.load %arg8[%c0_122, %c17, %c0_123] : memref<2x32x128xbf16, #tpu.memory_space<vmem>>, vector<2x1x128xbf16>
    %128 = vector.shape_cast %127 : vector<2x1x128xbf16> to vector<2x128xbf16>
    %c17_124 = arith.constant 17 : index
    %c0_125 = arith.constant 0 : index
    %c0_126 = arith.constant 0 : index
    %129 = vector.load %arg3[%c17_124, %c0_125, %c0_126] : memref<32x128x256xbf16, #tpu.memory_space<vmem>>, vector<1x128x256xbf16>
    %130 = vector.shape_cast %129 : vector<1x128x256xbf16> to vector<128x256xbf16>
    %cst_127 = arith.constant dense<0.000000e+00> : vector<2x256xf32>
    %131 = tpu.matmul %128, %130, %cst_127 {dimension_numbers = #tpu.dot_dimension_numbers<[1], [0], [0], [1], [0, 0, 1, 1], [], []>} : vector<2x128xbf16>, vector<128x256xbf16>, vector<2x256xf32> -> vector<2x256xf32>
    %132 = arith.addf %126, %131 : vector<2x256xf32>
    %c0_128 = arith.constant 0 : index
    %c18 = arith.constant 18 : index
    %c0_129 = arith.constant 0 : index
    %133 = vector.load %arg8[%c0_128, %c18, %c0_129] : memref<2x32x128xbf16, #tpu.memory_space<vmem>>, vector<2x1x128xbf16>
    %134 = vector.shape_cast %133 : vector<2x1x128xbf16> to vector<2x128xbf16>
    %c18_130 = arith.constant 18 : index
    %c0_131 = arith.constant 0 : index
    %c0_132 = arith.constant 0 : index
    %135 = vector.load %arg3[%c18_130, %c0_131, %c0_132] : memref<32x128x256xbf16, #tpu.memory_space<vmem>>, vector<1x128x256xbf16>
    %136 = vector.shape_cast %135 : vector<1x128x256xbf16> to vector<128x256xbf16>
    %cst_133 = arith.constant dense<0.000000e+00> : vector<2x256xf32>
    %137 = tpu.matmul %134, %136, %cst_133 {dimension_numbers = #tpu.dot_dimension_numbers<[1], [0], [0], [1], [0, 0, 1, 1], [], []>} : vector<2x128xbf16>, vector<128x256xbf16>, vector<2x256xf32> -> vector<2x256xf32>
    %138 = arith.addf %132, %137 : vector<2x256xf32>
    %c0_134 = arith.constant 0 : index
    %c19 = arith.constant 19 : index
    %c0_135 = arith.constant 0 : index
    %139 = vector.load %arg8[%c0_134, %c19, %c0_135] : memref<2x32x128xbf16, #tpu.memory_space<vmem>>, vector<2x1x128xbf16>
    %140 = vector.shape_cast %139 : vector<2x1x128xbf16> to vector<2x128xbf16>
    %c19_136 = arith.constant 19 : index
    %c0_137 = arith.constant 0 : index
    %c0_138 = arith.constant 0 : index
    %141 = vector.load %arg3[%c19_136, %c0_137, %c0_138] : memref<32x128x256xbf16, #tpu.memory_space<vmem>>, vector<1x128x256xbf16>
    %142 = vector.shape_cast %141 : vector<1x128x256xbf16> to vector<128x256xbf16>
    %cst_139 = arith.constant dense<0.000000e+00> : vector<2x256xf32>
    %143 = tpu.matmul %140, %142, %cst_139 {dimension_numbers = #tpu.dot_dimension_numbers<[1], [0], [0], [1], [0, 0, 1, 1], [], []>} : vector<2x128xbf16>, vector<128x256xbf16>, vector<2x256xf32> -> vector<2x256xf32>
    %144 = arith.addf %138, %143 : vector<2x256xf32>
    %c0_140 = arith.constant 0 : index
    %c20 = arith.constant 20 : index
    %c0_141 = arith.constant 0 : index
    %145 = vector.load %arg8[%c0_140, %c20, %c0_141] : memref<2x32x128xbf16, #tpu.memory_space<vmem>>, vector<2x1x128xbf16>
    %146 = vector.shape_cast %145 : vector<2x1x128xbf16> to vector<2x128xbf16>
    %c20_142 = arith.constant 20 : index
    %c0_143 = arith.constant 0 : index
    %c0_144 = arith.constant 0 : index
    %147 = vector.load %arg3[%c20_142, %c0_143, %c0_144] : memref<32x128x256xbf16, #tpu.memory_space<vmem>>, vector<1x128x256xbf16>
    %148 = vector.shape_cast %147 : vector<1x128x256xbf16> to vector<128x256xbf16>
    %cst_145 = arith.constant dense<0.000000e+00> : vector<2x256xf32>
    %149 = tpu.matmul %146, %148, %cst_145 {dimension_numbers = #tpu.dot_dimension_numbers<[1], [0], [0], [1], [0, 0, 1, 1], [], []>} : vector<2x128xbf16>, vector<128x256xbf16>, vector<2x256xf32> -> vector<2x256xf32>
    %150 = arith.addf %144, %149 : vector<2x256xf32>
    %c0_146 = arith.constant 0 : index
    %c21 = arith.constant 21 : index
    %c0_147 = arith.constant 0 : index
    %151 = vector.load %arg8[%c0_146, %c21, %c0_147] : memref<2x32x128xbf16, #tpu.memory_space<vmem>>, vector<2x1x128xbf16>
    %152 = vector.shape_cast %151 : vector<2x1x128xbf16> to vector<2x128xbf16>
    %c21_148 = arith.constant 21 : index
    %c0_149 = arith.constant 0 : index
    %c0_150 = arith.constant 0 : index
    %153 = vector.load %arg3[%c21_148, %c0_149, %c0_150] : memref<32x128x256xbf16, #tpu.memory_space<vmem>>, vector<1x128x256xbf16>
    %154 = vector.shape_cast %153 : vector<1x128x256xbf16> to vector<128x256xbf16>
    %cst_151 = arith.constant dense<0.000000e+00> : vector<2x256xf32>
    %155 = tpu.matmul %152, %154, %cst_151 {dimension_numbers = #tpu.dot_dimension_numbers<[1], [0], [0], [1], [0, 0, 1, 1], [], []>} : vector<2x128xbf16>, vector<128x256xbf16>, vector<2x256xf32> -> vector<2x256xf32>
    %156 = arith.addf %150, %155 : vector<2x256xf32>
    %c0_152 = arith.constant 0 : index
    %c22 = arith.constant 22 : index
    %c0_153 = arith.constant 0 : index
    %157 = vector.load %arg8[%c0_152, %c22, %c0_153] : memref<2x32x128xbf16, #tpu.memory_space<vmem>>, vector<2x1x128xbf16>
    %158 = vector.shape_cast %157 : vector<2x1x128xbf16> to vector<2x128xbf16>
    %c22_154 = arith.constant 22 : index
    %c0_155 = arith.constant 0 : index
    %c0_156 = arith.constant 0 : index
    %159 = vector.load %arg3[%c22_154, %c0_155, %c0_156] : memref<32x128x256xbf16, #tpu.memory_space<vmem>>, vector<1x128x256xbf16>
    %160 = vector.shape_cast %159 : vector<1x128x256xbf16> to vector<128x256xbf16>
    %cst_157 = arith.constant dense<0.000000e+00> : vector<2x256xf32>
    %161 = tpu.matmul %158, %160, %cst_157 {dimension_numbers = #tpu.dot_dimension_numbers<[1], [0], [0], [1], [0, 0, 1, 1], [], []>} : vector<2x128xbf16>, vector<128x256xbf16>, vector<2x256xf32> -> vector<2x256xf32>
    %162 = arith.addf %156, %161 : vector<2x256xf32>
    %c0_158 = arith.constant 0 : index
    %c23 = arith.constant 23 : index
    %c0_159 = arith.constant 0 : index
    %163 = vector.load %arg8[%c0_158, %c23, %c0_159] : memref<2x32x128xbf16, #tpu.memory_space<vmem>>, vector<2x1x128xbf16>
    %164 = vector.shape_cast %163 : vector<2x1x128xbf16> to vector<2x128xbf16>
    %c23_160 = arith.constant 23 : index
    %c0_161 = arith.constant 0 : index
    %c0_162 = arith.constant 0 : index
    %165 = vector.load %arg3[%c23_160, %c0_161, %c0_162] : memref<32x128x256xbf16, #tpu.memory_space<vmem>>, vector<1x128x256xbf16>
    %166 = vector.shape_cast %165 : vector<1x128x256xbf16> to vector<128x256xbf16>
    %cst_163 = arith.constant dense<0.000000e+00> : vector<2x256xf32>
    %167 = tpu.matmul %164, %166, %cst_163 {dimension_numbers = #tpu.dot_dimension_numbers<[1], [0], [0], [1], [0, 0, 1, 1], [], []>} : vector<2x128xbf16>, vector<128x256xbf16>, vector<2x256xf32> -> vector<2x256xf32>
    %168 = arith.addf %162, %167 : vector<2x256xf32>
    %c0_164 = arith.constant 0 : index
    %c24 = arith.constant 24 : index
    %c0_165 = arith.constant 0 : index
    %169 = vector.load %arg8[%c0_164, %c24, %c0_165] : memref<2x32x128xbf16, #tpu.memory_space<vmem>>, vector<2x1x128xbf16>
    %170 = vector.shape_cast %169 : vector<2x1x128xbf16> to vector<2x128xbf16>
    %c24_166 = arith.constant 24 : index
    %c0_167 = arith.constant 0 : index
    %c0_168 = arith.constant 0 : index
    %171 = vector.load %arg3[%c24_166, %c0_167, %c0_168] : memref<32x128x256xbf16, #tpu.memory_space<vmem>>, vector<1x128x256xbf16>
    %172 = vector.shape_cast %171 : vector<1x128x256xbf16> to vector<128x256xbf16>
    %cst_169 = arith.constant dense<0.000000e+00> : vector<2x256xf32>
    %173 = tpu.matmul %170, %172, %cst_169 {dimension_numbers = #tpu.dot_dimension_numbers<[1], [0], [0], [1], [0, 0, 1, 1], [], []>} : vector<2x128xbf16>, vector<128x256xbf16>, vector<2x256xf32> -> vector<2x256xf32>
    %174 = arith.addf %168, %173 : vector<2x256xf32>
    %c0_170 = arith.constant 0 : index
    %c25 = arith.constant 25 : index
    %c0_171 = arith.constant 0 : index
    %175 = vector.load %arg8[%c0_170, %c25, %c0_171] : memref<2x32x128xbf16, #tpu.memory_space<vmem>>, vector<2x1x128xbf16>
    %176 = vector.shape_cast %175 : vector<2x1x128xbf16> to vector<2x128xbf16>
    %c25_172 = arith.constant 25 : index
    %c0_173 = arith.constant 0 : index
    %c0_174 = arith.constant 0 : index
    %177 = vector.load %arg3[%c25_172, %c0_173, %c0_174] : memref<32x128x256xbf16, #tpu.memory_space<vmem>>, vector<1x128x256xbf16>
    %178 = vector.shape_cast %177 : vector<1x128x256xbf16> to vector<128x256xbf16>
    %cst_175 = arith.constant dense<0.000000e+00> : vector<2x256xf32>
    %179 = tpu.matmul %176, %178, %cst_175 {dimension_numbers = #tpu.dot_dimension_numbers<[1], [0], [0], [1], [0, 0, 1, 1], [], []>} : vector<2x128xbf16>, vector<128x256xbf16>, vector<2x256xf32> -> vector<2x256xf32>
    %180 = arith.addf %174, %179 : vector<2x256xf32>
    %c0_176 = arith.constant 0 : index
    %c26 = arith.constant 26 : index
    %c0_177 = arith.constant 0 : index
    %181 = vector.load %arg8[%c0_176, %c26, %c0_177] : memref<2x32x128xbf16, #tpu.memory_space<vmem>>, vector<2x1x128xbf16>
    %182 = vector.shape_cast %181 : vector<2x1x128xbf16> to vector<2x128xbf16>
    %c26_178 = arith.constant 26 : index
    %c0_179 = arith.constant 0 : index
    %c0_180 = arith.constant 0 : index
    %183 = vector.load %arg3[%c26_178, %c0_179, %c0_180] : memref<32x128x256xbf16, #tpu.memory_space<vmem>>, vector<1x128x256xbf16>
    %184 = vector.shape_cast %183 : vector<1x128x256xbf16> to vector<128x256xbf16>
    %cst_181 = arith.constant dense<0.000000e+00> : vector<2x256xf32>
    %185 = tpu.matmul %182, %184, %cst_181 {dimension_numbers = #tpu.dot_dimension_numbers<[1], [0], [0], [1], [0, 0, 1, 1], [], []>} : vector<2x128xbf16>, vector<128x256xbf16>, vector<2x256xf32> -> vector<2x256xf32>
    %186 = arith.addf %180, %185 : vector<2x256xf32>
    %c0_182 = arith.constant 0 : index
    %c27 = arith.constant 27 : index
    %c0_183 = arith.constant 0 : index
    %187 = vector.load %arg8[%c0_182, %c27, %c0_183] : memref<2x32x128xbf16, #tpu.memory_space<vmem>>, vector<2x1x128xbf16>
    %188 = vector.shape_cast %187 : vector<2x1x128xbf16> to vector<2x128xbf16>
    %c27_184 = arith.constant 27 : index
    %c0_185 = arith.constant 0 : index
    %c0_186 = arith.constant 0 : index
    %189 = vector.load %arg3[%c27_184, %c0_185, %c0_186] : memref<32x128x256xbf16, #tpu.memory_space<vmem>>, vector<1x128x256xbf16>
    %190 = vector.shape_cast %189 : vector<1x128x256xbf16> to vector<128x256xbf16>
    %cst_187 = arith.constant dense<0.000000e+00> : vector<2x256xf32>
    %191 = tpu.matmul %188, %190, %cst_187 {dimension_numbers = #tpu.dot_dimension_numbers<[1], [0], [0], [1], [0, 0, 1, 1], [], []>} : vector<2x128xbf16>, vector<128x256xbf16>, vector<2x256xf32> -> vector<2x256xf32>
    %192 = arith.addf %186, %191 : vector<2x256xf32>
    %c0_188 = arith.constant 0 : index
    %c28 = arith.constant 28 : index
    %c0_189 = arith.constant 0 : index
    %193 = vector.load %arg8[%c0_188, %c28, %c0_189] : memref<2x32x128xbf16, #tpu.memory_space<vmem>>, vector<2x1x128xbf16>
    %194 = vector.shape_cast %193 : vector<2x1x128xbf16> to vector<2x128xbf16>
    %c28_190 = arith.constant 28 : index
    %c0_191 = arith.constant 0 : index
    %c0_192 = arith.constant 0 : index
    %195 = vector.load %arg3[%c28_190, %c0_191, %c0_192] : memref<32x128x256xbf16, #tpu.memory_space<vmem>>, vector<1x128x256xbf16>
    %196 = vector.shape_cast %195 : vector<1x128x256xbf16> to vector<128x256xbf16>
    %cst_193 = arith.constant dense<0.000000e+00> : vector<2x256xf32>
    %197 = tpu.matmul %194, %196, %cst_193 {dimension_numbers = #tpu.dot_dimension_numbers<[1], [0], [0], [1], [0, 0, 1, 1], [], []>} : vector<2x128xbf16>, vector<128x256xbf16>, vector<2x256xf32> -> vector<2x256xf32>
    %198 = arith.addf %192, %197 : vector<2x256xf32>
    %c0_194 = arith.constant 0 : index
    %c29 = arith.constant 29 : index
    %c0_195 = arith.constant 0 : index
    %199 = vector.load %arg8[%c0_194, %c29, %c0_195] : memref<2x32x128xbf16, #tpu.memory_space<vmem>>, vector<2x1x128xbf16>
    %200 = vector.shape_cast %199 : vector<2x1x128xbf16> to vector<2x128xbf16>
    %c29_196 = arith.constant 29 : index
    %c0_197 = arith.constant 0 : index
    %c0_198 = arith.constant 0 : index
    %201 = vector.load %arg3[%c29_196, %c0_197, %c0_198] : memref<32x128x256xbf16, #tpu.memory_space<vmem>>, vector<1x128x256xbf16>
    %202 = vector.shape_cast %201 : vector<1x128x256xbf16> to vector<128x256xbf16>
    %cst_199 = arith.constant dense<0.000000e+00> : vector<2x256xf32>
    %203 = tpu.matmul %200, %202, %cst_199 {dimension_numbers = #tpu.dot_dimension_numbers<[1], [0], [0], [1], [0, 0, 1, 1], [], []>} : vector<2x128xbf16>, vector<128x256xbf16>, vector<2x256xf32> -> vector<2x256xf32>
    %204 = arith.addf %198, %203 : vector<2x256xf32>
    %c0_200 = arith.constant 0 : index
    %c30 = arith.constant 30 : index
    %c0_201 = arith.constant 0 : index
    %205 = vector.load %arg8[%c0_200, %c30, %c0_201] : memref<2x32x128xbf16, #tpu.memory_space<vmem>>, vector<2x1x128xbf16>
    %206 = vector.shape_cast %205 : vector<2x1x128xbf16> to vector<2x128xbf16>
    %c30_202 = arith.constant 30 : index
    %c0_203 = arith.constant 0 : index
    %c0_204 = arith.constant 0 : index
    %207 = vector.load %arg3[%c30_202, %c0_203, %c0_204] : memref<32x128x256xbf16, #tpu.memory_space<vmem>>, vector<1x128x256xbf16>
    %208 = vector.shape_cast %207 : vector<1x128x256xbf16> to vector<128x256xbf16>
    %cst_205 = arith.constant dense<0.000000e+00> : vector<2x256xf32>
    %209 = tpu.matmul %206, %208, %cst_205 {dimension_numbers = #tpu.dot_dimension_numbers<[1], [0], [0], [1], [0, 0, 1, 1], [], []>} : vector<2x128xbf16>, vector<128x256xbf16>, vector<2x256xf32> -> vector<2x256xf32>
    %210 = arith.addf %204, %209 : vector<2x256xf32>
    %c0_206 = arith.constant 0 : index
    %c31 = arith.constant 31 : index
    %c0_207 = arith.constant 0 : index
    %211 = vector.load %arg8[%c0_206, %c31, %c0_207] : memref<2x32x128xbf16, #tpu.memory_space<vmem>>, vector<2x1x128xbf16>
    %212 = vector.shape_cast %211 : vector<2x1x128xbf16> to vector<2x128xbf16>
    %c31_208 = arith.constant 31 : index
    %c0_209 = arith.constant 0 : index
    %c0_210 = arith.constant 0 : index
    %213 = vector.load %arg3[%c31_208, %c0_209, %c0_210] : memref<32x128x256xbf16, #tpu.memory_space<vmem>>, vector<1x128x256xbf16>
    %214 = vector.shape_cast %213 : vector<1x128x256xbf16> to vector<128x256xbf16>
    %cst_211 = arith.constant dense<0.000000e+00> : vector<2x256xf32>
    %215 = tpu.matmul %212, %214, %cst_211 {dimension_numbers = #tpu.dot_dimension_numbers<[1], [0], [0], [1], [0, 0, 1, 1], [], []>} : vector<2x128xbf16>, vector<128x256xbf16>, vector<2x256xf32> -> vector<2x256xf32>
    %216 = arith.addf %210, %215 : vector<2x256xf32>
    %c0_212 = arith.constant 0 : index
    %c0_213 = arith.constant 0 : index
    %217 = vector.load %arg4[%c0_212, %c0_213] : memref<1x256xf32, #tpu.memory_space<vmem>>, vector<1x256xf32>
    %218 = vector.broadcast %217 : vector<1x256xf32> to vector<2x256xf32>
    %219 = arith.addf %216, %218 : vector<2x256xf32>
    %cst_214 = arith.constant 0.000000e+00 : f32
    %220 = vector.broadcast %cst_214 : f32 to vector<2x256xf32>
    %221 = arith.maximumf %219, %220 : vector<2x256xf32>
    %222 = arith.truncf %221 : vector<2x256xf32> to vector<2x256xbf16>
    %c0_215 = arith.constant 0 : index
    %c0_216 = arith.constant 0 : index
    %223 = vector.load %arg5[%c0_215, %c0_216] : memref<256x128xbf16, #tpu.memory_space<vmem>>, vector<256x128xbf16>
    %cst_217 = arith.constant dense<0.000000e+00> : vector<2x128xf32>
    %224 = tpu.matmul %222, %223, %cst_217 {dimension_numbers = #tpu.dot_dimension_numbers<[1], [0], [0], [1], [0, 0, 1, 1], [], []>} : vector<2x256xbf16>, vector<256x128xbf16>, vector<2x128xf32> -> vector<2x128xf32>
    %c0_218 = arith.constant 0 : index
    %c0_219 = arith.constant 0 : index
    %225 = vector.load %arg6[%c0_218, %c0_219] : memref<1x128xf32, #tpu.memory_space<vmem>>, vector<1x128xf32>
    %226 = vector.broadcast %225 : vector<1x128xf32> to vector<2x128xf32>
    %227 = arith.addf %224, %226 : vector<2x128xf32>
    %c0_220 = arith.constant 0 : index
    %c0_221 = arith.constant 0 : index
    %228 = vector.load %arg7[%c0_220, %c0_221] : memref<2x128xf32, #tpu.memory_space<vmem>>, vector<2x128xf32>
    tpu.vector_store %arg7[%c0_220, %c0_221], %227 {strides = array<i32>} : memref<2x128xf32, #tpu.memory_space<vmem>>, vector<2x128xf32>,
    return
  }
}

</mosaic_0001>

<bundles_post_ra>
// kernel: qnet_forward.2
= control target key start
LH: loop header
LB: loop body
LE: loop exit
PB: predicated region body
PF: predicated region fallthrough
CT: control target
= control target key end

     0   :  { %s984_s12 = smov 0   ;;  %s1084_s0 = inlined_call_operand.vmem [shape: bf16[2,256,441], index: 0, kind: input, shape index: {}]   ;;  %s1085_s1 = inlined_call_operand.vmem [shape: bf16[16,256], index: 1, kind: input, shape index: {}]   ;;  %s1086_s2 = inlined_call_operand.vmem [shape: f32[16,1], index: 2, kind: input, shape index: {}]   ;;  %s1087_s3 = inlined_call_operand.vmem [shape: bf16[2,16,441], index: 3, kind: output, shape index: {}]  }
   0x1 LB: > { %s759_s13 = sadd.s32 4294967295, %s961_s12   ;;  %p763_p0 = scmp.ge.s32.totalorder %s961_s12, 1  ;;  %s961_s12 = sphi %s984_s12, %s13_s12  }
   0x2   : > { %p137_p1 = scmp.lt.s32.totalorder %s961_s12, 3 }
   0x4   : > { %p138_p2 = pnand %p763_p0, %p137_p1 }
   0x5   : > { %p161_p3 = scmp.lt.s32.totalorder (!%p138_p2), %s759_s13, 1  ;;  %v954_v0 = vld [vmem:[%s1085_s1 + $0x4] ss:$8 sps:$4 sm:$0xff] (!%p138_p2)   ;;  %v963_v1 = vmov (!%p138_p2), 0   ;;  %vm698_vm0 = vcmask (!%p138_p2), 1043456   ;;  %vm699_vm1 = vcmask (!%p138_p2), 465924  }
   0x6   : > { %141 = sbr.rel (%p138_p2) target bundleno = 303 (0x12f), region = 32  ;;  %855 = vset.pattern.permute.xlu0 (!%p138_p2), %v963_v1  ;;  %v237_v2 = vld [vmem:[%s1086_s2] sm:$0xff] (!%p138_p2)  ;;  %611 = vmatprep.mubr.bf16.mxu0 (!%p138_p2), %v954_v0  ;;  %v238_v3 = vld [vmem:[%s1086_s2 + $0x8] sm:$0xff] (!%p138_p2)  ;;  %vm700_vm2 = vmor (!%p138_p2), %vm699_vm1, %vm698_vm0 }
   0x7   : > { %241 = vperm.xlu0 (!%p138_p2), %855, %v237_v2   ;;  %654 = vmatprep.mubr.bf16.mxu1 (!%p138_p2), %v954_v0 }
   0xb   : > { %246 = vperm.xlu0 (!%p138_p2), %855, %v238_v3  }
   0xd   : > { %s1089_s13 = smov (!%p161_p3, %s759_s13), 1 }
   0xe   : > { %s840_s20 = sshll.u32 %s1089_s13, 9  ;;  %s841_s26 = sshll.u32 %s1089_s13, 5 }
   0xf   : > { %s1007_s23 = scalar_lea.vmem %s1084_s0, %s840_s20  ;;  %s170_s29 = scalar_lea.vmem %s1087_s3, %s841_s26 }
  0x10   : > { %v856_v4 = vld [vmem:[%s1007_s23 + $0x4] ss:$16 sps:$4 sm:$0xff]   ;;  %v858_v5 = vld [vmem:[%s1007_s23 + $0xc] ss:$16 sps:$4 sm:$0xff]   ;;  %v860_v6 = vld [vmem:[%s1007_s23] ss:$16 sps:$4 sm:$0xff]  }
  0x11   : > { %579 = vmatprep.subr.bf16.mxu0 %v856_v4  ;;  %v861_v7 = vld [vmem:[%s1007_s23 + $0x8] ss:$16 sps:$4 sm:$0xff]   ;;  %622 = vmatprep.subr.bf16.mxu1 %v858_v5  ;;  %v862_v8 = vld [vmem:[%s1007_s23 + $0x24] ss:$16 sps:$4 sm:$0xff]   ;;  %v864_v9 = vld [vmem:[%s1007_s23 + $0x2c] ss:$16 sps:$4 sm:$0xff]  }
  0x12   : > { %580 = vmatpush1.bf16.msra.mxu0 %v860_v6  ;;  %623 = vmatpush1.bf16.msra.mxu1 %v861_v7  ;;  %v866_v10 = vld [vmem:[%s1007_s23 + $0x20] ss:$16 sps:$4 sm:$0xff]   ;;  %v867_v11 = vld [vmem:[%s1007_s23 + $0x28] ss:$16 sps:$4 sm:$0xff]   ;;  %v868_v12 = vld [vmem:[%s1007_s23 + $0x44] ss:$16 sps:$4 sm:$0xff]  }
  0x13   : > { %581 = vmatprep.subr.bf16.mxu0 %v862_v8  ;;  %624 = vmatprep.subr.bf16.mxu1 %v864_v9  ;;  %v870_v13 = vld [vmem:[%s1007_s23 + $0x4c] ss:$16 sps:$4 sm:$0xff]   ;;  %v872_v14 = vld [vmem:[%s1007_s23 + $0x40] ss:$16 sps:$4 sm:$0xff]   ;;  %v873_v15 = vld [vmem:[%s1007_s23 + $0x48] ss:$16 sps:$4 sm:$0xff]  }
  0x14   : > { %v874_v16 = vld [vmem:[%s1007_s23 + $0x64] ss:$16 sps:$4 sm:$0xff]   ;;  %v876_v17 = vld [vmem:[%s1007_s23 + $0x6c] ss:$16 sps:$4 sm:$0xff]   ;;  %v878_v18 = vld [vmem:[%s1007_s23 + $0x60] ss:$16 sps:$4 sm:$0xff]  }
  0x15   : > { %v879_v19 = vld [vmem:[%s1007_s23 + $0x68] ss:$16 sps:$4 sm:$0xff]   ;;  %v880_v20 = vld [vmem:[%s1007_s23 + $0x84] ss:$16 sps:$4 sm:$0xff]   ;;  %v882_v21 = vld [vmem:[%s1007_s23 + $0x8c] ss:$16 sps:$4 sm:$0xff]  }
  0x16   : > { %582 = vmatpush1.bf16.msra.mxu0 %v866_v10  ;;  %625 = vmatpush1.bf16.msra.mxu1 %v867_v11  ;;  %v884_v22 = vld [vmem:[%s1007_s23 + $0x80] ss:$16 sps:$4 sm:$0xff]   ;;  %v885_v23 = vld [vmem:[%s1007_s23 + $0x88] ss:$16 sps:$4 sm:$0xff]   ;;  %v886_v24 = vld [vmem:[%s1007_s23 + $0xa4] ss:$16 sps:$4 sm:$0xff]  }
  0x17   : > { %583 = vmatprep.subr.bf16.mxu0 %v868_v12  ;;  %626 = vmatprep.subr.bf16.mxu1 %v870_v13  ;;  %v888_v25 = vld [vmem:[%s1007_s23 + $0xac] ss:$16 sps:$4 sm:$0xff]   ;;  %v890_v26 = vld [vmem:[%s1007_s23 + $0xa0] ss:$16 sps:$4 sm:$0xff]   ;;  %v891_v27 = vld [vmem:[%s1007_s23 + $0xa8] ss:$16 sps:$4 sm:$0xff]  }
  0x18   : > { %v892_v28 = vld [vmem:[%s1007_s23 + $0xc4] ss:$16 sps:$4 sm:$0xff]   ;;  %v894_v29 = vld [vmem:[%s1007_s23 + $0xcc] ss:$16 sps:$4 sm:$0xff]   ;;  %v896_v30 = vld [vmem:[%s1007_s23 + $0xc0] ss:$16 sps:$4 sm:$0xff]  }
  0x19   : > { %v897_v31 = vld [vmem:[%s1007_s23 + $0xc8] ss:$16 sps:$4 sm:$0xff]   ;;  %v898_v32 = vld [vmem:[%s1007_s23 + $0xe4] ss:$16 sps:$4 sm:$0xff]   ;;  %v900_v33 = vld [vmem:[%s1007_s23 + $0xec] ss:$16 sps:$4 sm:$0xff]  }
  0x1a   : > { %584 = vmatpush1.bf16.msra.mxu0 %v872_v14  ;;  %627 = vmatpush1.bf16.msra.mxu1 %v873_v15  ;;  %v902_v34 = vld [vmem:[%s1007_s23 + $0xe0] ss:$16 sps:$4 sm:$0xff]   ;;  %v903_v35 = vld [vmem:[%s1007_s23 + $0xe8] ss:$16 sps:$4 sm:$0xff]   ;;  %v904_v36 = vld [vmem:[%s1007_s23 + $0x104] ss:$16 sps:$4 sm:$0xff]  }
  0x1b   : > { %585 = vmatprep.subr.bf16.mxu0 %v874_v16  ;;  %628 = vmatprep.subr.bf16.mxu1 %v876_v17  ;;  %v906_v37 = vld [vmem:[%s1007_s23 + $0x10c] ss:$16 sps:$4 sm:$0xff]   ;;  %v908_v38 = vld [vmem:[%s1007_s23 + $0x100] ss:$16 sps:$4 sm:$0xff]   ;;  %v909_v39 = vld [vmem:[%s1007_s23 + $0x108] ss:$16 sps:$4 sm:$0xff]  }
  0x1c   : > { %v910_v40 = vld [vmem:[%s1007_s23 + $0x124] ss:$16 sps:$4 sm:$0xff]   ;;  %v912_v41 = vld [vmem:[%s1007_s23 + $0x12c] ss:$16 sps:$4 sm:$0xff]   ;;  %v914_v42 = vld [vmem:[%s1007_s23 + $0x120] ss:$16 sps:$4 sm:$0xff]  }
  0x1d   : > { %v915_v43 = vld [vmem:[%s1007_s23 + $0x128] ss:$16 sps:$4 sm:$0xff]   ;;  %v916_v44 = vld [vmem:[%s1007_s23 + $0x144] ss:$16 sps:$4 sm:$0xff]   ;;  %v918_v45 = vld [vmem:[%s1007_s23 + $0x14c] ss:$16 sps:$4 sm:$0xff]  }
  0x1e   : > { %586 = vmatpush1.bf16.msra.mxu0 %v878_v18  ;;  %629 = vmatpush1.bf16.msra.mxu1 %v879_v19  ;;  %v920_v46 = vld [vmem:[%s1007_s23 + $0x140] ss:$16 sps:$4 sm:$0xff]   ;;  %v921_v47 = vld [vmem:[%s1007_s23 + $0x148] ss:$16 sps:$4 sm:$0xff]   ;;  %v922_v48 = vld [vmem:[%s1007_s23 + $0x164] ss:$16 sps:$4 sm:$0xff]  }
  0x1f   : > { %587 = vmatprep.subr.bf16.mxu0 %v880_v20  ;;  %630 = vmatprep.subr.bf16.mxu1 %v882_v21  ;;  %v924_v49 = vld [vmem:[%s1007_s23 + $0x16c] ss:$16 sps:$4 sm:$0xff]   ;;  %v926_v50 = vld [vmem:[%s1007_s23 + $0x160] ss:$16 sps:$4 sm:$0xff]   ;;  %v927_v51 = vld [vmem:[%s1007_s23 + $0x168] ss:$16 sps:$4 sm:$0xff]  }
  0x20   : > { %v928_v52 = vld [vmem:[%s1007_s23 + $0x184] ss:$16 sps:$4 sm:$0xff]   ;;  %v930_v53 = vld [vmem:[%s1007_s23 + $0x18c] ss:$16 sps:$4 sm:$0xff]   ;;  %v932_v54 = vld [vmem:[%s1007_s23 + $0x180] ss:$16 sps:$4 sm:$0xff]  }
  0x21   : > { %v933_v55 = vld [vmem:[%s1007_s23 + $0x188] ss:$16 sps:$4 sm:$0xff]   ;;  %v934_v56 = vld [vmem:[%s1007_s23 + $0x1a4] ss:$16 sps:$4 sm:$0xff]   ;;  %v936_v57 = vld [vmem:[%s1007_s23 + $0x1ac] ss:$16 sps:$4 sm:$0xff]  }
  0x22   : > { %588 = vmatpush1.bf16.msra.mxu0 %v884_v22  ;;  %631 = vmatpush1.bf16.msra.mxu1 %v885_v23  ;;  %v938_v58 = vld [vmem:[%s1007_s23 + $0x1a0] ss:$16 sps:$4 sm:$0xff]   ;;  %v939_v59 = vld [vmem:[%s1007_s23 + $0x1a8] ss:$16 sps:$4 sm:$0xff]   ;;  %v940_v60 = vld [vmem:[%s1007_s23 + $0x1c4] ss:$16 sps:$4 sm:$0xff]  }
  0x23   : > { %589 = vmatprep.subr.bf16.mxu0 %v886_v24  ;;  %632 = vmatprep.subr.bf16.mxu1 %v888_v25  ;;  %v942_v61 = vld [vmem:[%s1007_s23 + $0x1cc] ss:$16 sps:$4 sm:$0xff]   ;;  %v944_v62 = vld [vmem:[%s1007_s23 + $0x1c0] ss:$16 sps:$4 sm:$0xff]   ;;  %v945_v63 = vld [vmem:[%s1007_s23 + $0x1c8] ss:$16 sps:$4 sm:$0xff]  }
  0x24   : > { %v946_v0 = vld [vmem:[%s1007_s23 + $0x1e4] ss:$16 sps:$4 sm:$0xff]   ;;  %v948_v1 = vld [vmem:[%s1007_s23 + $0x1ec] ss:$16 sps:$4 sm:$0xff]   ;;  %v950_v2 = vld [vmem:[%s1007_s23 + $0x1e0] ss:$16 sps:$4 sm:$0xff]  }
  0x25   : > { %v951_v3 = vld [vmem:[%s1007_s23 + $0x1e8] ss:$16 sps:$4 sm:$0xff]  }
  0x26   : > { %590 = vmatpush1.bf16.msra.mxu0 %v890_v26  ;;  %633 = vmatpush1.bf16.msra.mxu1 %v891_v27  ;;  %v952_v4 = vld [vmem:[%s1085_s1] ss:$8 sps:$4 sm:$0xff]  }
  0x27   : > { %591 = vmatprep.subr.bf16.mxu0 %v892_v28  ;;  %634 = vmatprep.subr.bf16.mxu1 %v894_v29 }
  0x2a   : > { %592 = vmatpush1.bf16.msra.mxu0 %v896_v30  ;;  %635 = vmatpush1.bf16.msra.mxu1 %v897_v31 }
  0x2b   : > { %593 = vmatprep.subr.bf16.mxu0 %v898_v32  ;;  %636 = vmatprep.subr.bf16.mxu1 %v900_v33 }
  0x2e   : > { %594 = vmatpush1.bf16.msra.mxu0 %v902_v34  ;;  %637 = vmatpush1.bf16.msra.mxu1 %v903_v35 }
  0x2f   : > { %595 = vmatprep.subr.bf16.mxu0 %v904_v36  ;;  %638 = vmatprep.subr.bf16.mxu1 %v906_v37 }
  0x32   : > { %596 = vmatpush1.bf16.msra.mxu0 %v908_v38  ;;  %639 = vmatpush1.bf16.msra.mxu1 %v909_v39 }
  0x33   : > { %597 = vmatprep.subr.bf16.mxu0 %v910_v40  ;;  %640 = vmatprep.subr.bf16.mxu1 %v912_v41 }
  0x36   : > { %598 = vmatpush1.bf16.msra.mxu0 %v914_v42  ;;  %641 = vmatpush1.bf16.msra.mxu1 %v915_v43 }
  0x37   : > { %599 = vmatprep.subr.bf16.mxu0 %v916_v44  ;;  %642 = vmatprep.subr.bf16.mxu1 %v918_v45 }
  0x3a   : > { %600 = vmatpush1.bf16.msra.mxu0 %v920_v46  ;;  %643 = vmatpush1.bf16.msra.mxu1 %v921_v47 }
  0x3b   : > { %601 = vmatprep.subr.bf16.mxu0 %v922_v48  ;;  %644 = vmatprep.subr.bf16.mxu1 %v924_v49 }
  0x3e   : > { %602 = vmatpush1.bf16.msra.mxu0 %v926_v50  ;;  %645 = vmatpush1.bf16.msra.mxu1 %v927_v51 }
  0x3f   : > { %603 = vmatprep.subr.bf16.mxu0 %v928_v52  ;;  %646 = vmatprep.subr.bf16.mxu1 %v930_v53 }
  0x42   : > { %604 = vmatpush1.bf16.msra.mxu0 %v932_v54  ;;  %647 = vmatpush1.bf16.msra.mxu1 %v933_v55 }
  0x43   : > { %605 = vmatprep.subr.bf16.mxu0 %v934_v56  ;;  %648 = vmatprep.subr.bf16.mxu1 %v936_v57 }
  0x46   : > { %606 = vmatpush1.bf16.msra.mxu0 %v938_v58  ;;  %649 = vmatpush1.bf16.msra.mxu1 %v939_v59 }
  0x47   : > { %607 = vmatprep.subr.bf16.mxu0 %v940_v60  ;;  %650 = vmatprep.subr.bf16.mxu1 %v942_v61 }
  0x4a   : > { %608 = vmatpush1.bf16.msra.mxu0 %v944_v62  ;;  %651 = vmatpush1.bf16.msra.mxu1 %v945_v63 }
  0x4b   : > { %609 = vmatprep.subr.bf16.mxu0 %v946_v0  ;;  %652 = vmatprep.subr.bf16.mxu1 %v948_v1 }
  0x4e   : > { %610 = vmatpush1.bf16.msra.mxu0 %v950_v2  ;;  %653 = vmatpush1.bf16.msra.mxu1 %v951_v3 }
  0x51   : > { %612 = vmatmul.mubr.bf16.vlgmr.msra.gmra.mrb[0].mxu0 %v952_v4  ;;  %655 = vmatmul.mubr.bf16.vlgmr.msra.gmra.mrb[0].mxu1 %v952_v4 }
  0x86   : > { %v242_v5 = vpop.permute.xlu0 %241 }
  0x8a   : > { %v247_v6 = vpop.permute.xlu0 %246 }
 0x124   : > { %v613_v7 = vpop.f32.mrb[0].mxu0  ;;  %v656_v8 = vpop.f32.mrb[0].mxu1 }
 0x125   : > { %v614_v9 = vadd.f32 %v613_v7, %v242_v5  ;;  %v657_v10 = vadd.f32 %v656_v8, %v242_v5  ;;  %v615_v11 = vpop.f32.mrb[1].mxu0  ;;  %v658_v12 = vpop.f32.mrb[1].mxu1 }
 0x126   : > { %v616_v13 = vadd.f32 %v615_v11, %v242_v5  ;;  %v659_v14 = vadd.f32 %v658_v12, %v242_v5  ;;  %v617_v15 = vpop.f32.mrb[2].mxu0  ;;  %v660_v16 = vpop.f32.mrb[2].mxu1 }
 0x127   : > { %v665_v17 = vmax.f32 %v614_v9, 0.0  ;;  %v667_v18 = vmax.f32 %v657_v10, 0.0  ;;  %v618_v19 = vadd.f32 %v617_v15, %v247_v6  ;;  %v661_v20 = vadd.f32 %v660_v16, %v247_v6  ;;  %v619_v21 = vpop.f32.mrb[3].mxu0  ;;  %v662_v22 = vpop.f32.mrb[3].mxu1 }
 0x128   : > { %v666_v23 = vmax.f32 %v616_v13, 0.0  ;;  %v668_v24 = vmax.f32 %v659_v14, 0.0  ;;  %v620_v25 = vadd.f32 %v619_v21, %v247_v6  ;;  %v663_v26 = vadd.f32 %v662_v22, %v247_v6 }
 0x129   : > { %v669_v27 = vmax.f32 %v618_v19, 0.0  ;;  %v671_v28 = vmax.f32 %v661_v20, 0.0 }
 0x12a   : > { %v842_v29 = vpack.c.bf16 %v666_v23, %v665_v17  ;;  %v843_v30 = vpack.c.bf16 %v668_v24, %v667_v18  ;;  %v670_v31 = vmax.f32 %v620_v25, 0.0  ;;  %v672_v32 = vmax.f32 %v663_v26, 0.0 }
 0x12c   : > { %697 = vst [vmem:[%s170_s29] sm:$0xff] %v842_v29  ;;  %701 = vst.msk [vmem:[%s170_s29 + $0x8] sm:$0xff] %vm700_vm2, %v843_v30  ;;  %v844_v33 = vpack.c.bf16 %v670_v31, %v669_v27  ;;  %v845_v34 = vpack.c.bf16 %v672_v32, %v671_v28 }
 0x12e   : > { %702 = vst [vmem:[%s170_s29 + $0x10] sm:$0xff] %v844_v33  ;;  %703 = vst.msk [vmem:[%s170_s29 + $0x18] sm:$0xff] %vm700_vm2, %v845_v34 }
 0x12f PF: > { %s13_s12 = sadd.s32 1, %s961_s12  }
 0x130   : > { %p10_p4 = scmp.ge.s32.totalorder %s13_s12, 4  }
 0x132   :  { %12 = sbr.rel (!%p10_p4) target bundleno = 1 (0x1), region = 62 }

// kernel: qnet_forward.3
= control target key start
LH: loop header
LB: loop body
LE: loop exit
PB: predicated region body
PF: predicated region fallthrough
CT: control target
= control target key end

     0   :  { %v7401_v2 = vmov 0   ;;  %vm488_vm0 = vcmask 1041409   ;;  %s9279_s0 = inlined_call_operand.vmem [shape: bf16[2,256,128], index: 0, kind: input, shape index: {}]   ;;  %s9280_s1 = inlined_call_operand.vmem [shape: bf16[32,256], index: 1, kind: input, shape index: {}]   ;;  %s9281_s2 = inlined_call_operand.vmem [shape: f32[32,1], index: 2, kind: input, shape index: {}]   ;;  %s9282_s3 = inlined_call_operand.vmem [shape: bf16[32,128,256], index: 3, kind: input, shape index: {}]   ;;  %s9283_s4 = inlined_call_operand.vmem [shape: f32[1,256], index: 4, kind: input, shape index: {}]   ;;  %s9284_s5 = inlined_call_operand.vmem [shape: bf16[256,128], index: 5, kind: input, shape index: {}]   ;;  %s9285_s6 = inlined_call_operand.vmem [shape: f32[1,128], index: 6, kind: input, shape index: {}]   ;;  %s9286_s7 = inlined_call_operand.hbm [shape: f32[2,128], index: 7, kind: output, shape index: {}]  }
   0x1   :  { %v6555_v0 = vld [vmem:[%s9279_s0 + $0x40] sm:$0xff]   ;;  %6553 = vset.pattern.permute.xlu0 %v7401_v2  ;;  %6554 = vset.pattern.permute.xlu1 %v7401_v2  ;;  %v6559_v5 = vld [vmem:[%s9279_s0 + $0x48] sm:$0xff]   ;;  %v6563_v9 = vld [vmem:[%s9279_s0 + $0x50] sm:$0xff]  }
   0x2   :  { %v6556_v1 = vld [vmem:[%s9279_s0 + $0xc0] sm:$0xff]   ;;  %6473 = vmatprep.subr.bf16.mxu0 %v6555_v0  ;;  %v6560_v6 = vld [vmem:[%s9279_s0 + $0xc8] sm:$0xff]   ;;  %v6564_v10 = vld [vmem:[%s9279_s0 + $0xd0] sm:$0xff]  }
   0x3   :  { %v6557_v3 = vld [vmem:[%s9279_s0] sm:$0xff]   ;;  %6501 = vmatprep.subr.bf16.mxu1 %v6556_v1  ;;  %v6561_v7 = vld [vmem:[%s9279_s0 + $0x8] sm:$0xff]   ;;  %v6565_v11 = vld [vmem:[%s9279_s0 + $0x10] sm:$0xff]  }
   0x4   :  { %v6558_v4 = vld [vmem:[%s9279_s0 + $0x80] sm:$0xff]   ;;  %6474 = vmatpush3.bf16.msra.mxu0 %v6557_v3  ;;  %v6562_v8 = vld [vmem:[%s9279_s0 + $0x88] sm:$0xff]   ;;  %v6566_v12 = vld [vmem:[%s9279_s0 + $0x90] sm:$0xff]  }
   0x5   :  { %6502 = vmatpush3.bf16.msra.mxu1 %v6558_v4  ;;  %6475 = vmatprep.subr.bf16.mxu0 %v6559_v5  ;;  %v6567_v13 = vld [vmem:[%s9279_s0 + $0x58] sm:$0xff]   ;;  %v6571_v17 = vld [vmem:[%s9279_s0 + $0x60] sm:$0xff]   ;;  %v6575_v21 = vld [vmem:[%s9279_s0 + $0x68] sm:$0xff]  }
   0x6   :  { %6503 = vmatprep.subr.bf16.mxu1 %v6560_v6  ;;  %v6568_v14 = vld [vmem:[%s9279_s0 + $0xd8] sm:$0xff]   ;;  %v6572_v18 = vld [vmem:[%s9279_s0 + $0xe0] sm:$0xff]   ;;  %v6576_v22 = vld [vmem:[%s9279_s0 + $0xe8] sm:$0xff]  }
   0x7   :  { %v6569_v15 = vld [vmem:[%s9279_s0 + $0x18] sm:$0xff]   ;;  %v6573_v19 = vld [vmem:[%s9279_s0 + $0x20] sm:$0xff]   ;;  %v6577_v23 = vld [vmem:[%s9279_s0 + $0x28] sm:$0xff]  }
   0x8   :  { %6476 = vmatpush3.bf16.msra.mxu0 %v6561_v7  ;;  %v6570_v16 = vld [vmem:[%s9279_s0 + $0x98] sm:$0xff]   ;;  %v6574_v20 = vld [vmem:[%s9279_s0 + $0xa0] sm:$0xff]   ;;  %v6578_v24 = vld [vmem:[%s9279_s0 + $0xa8] sm:$0xff]  }
   0x9   :  { %6504 = vmatpush3.bf16.msra.mxu1 %v6562_v8  ;;  %6477 = vmatprep.subr.bf16.mxu0 %v6563_v9  ;;  %v6579_v25 = vld [vmem:[%s9279_s0 + $0x70] sm:$0xff]   ;;  %v6583_v29 = vld [vmem:[%s9279_s0 + $0x78] sm:$0xff]   ;;  %v6587_v33 = vld [vmem:[%s9280_s1] ss:$8 sps:$4 sm:$0xff]  }
   0xa   :  { %6505 = vmatprep.subr.bf16.mxu1 %v6564_v10  ;;  %v6580_v26 = vld [vmem:[%s9279_s0 + $0xf0] sm:$0xff]   ;;  %v6584_v30 = vld [vmem:[%s9279_s0 + $0xf8] sm:$0xff]   ;;  %v6589_v34 = vld [vmem:[%s9280_s1 + $0x4] ss:$8 sps:$4 sm:$0xff]  }
   0xb   :  { %v6581_v27 = vld [vmem:[%s9279_s0 + $0x30] sm:$0xff]   ;;  %v6585_v31 = vld [vmem:[%s9279_s0 + $0x38] sm:$0xff]   ;;  %v32_v35 = vld [vmem:[%s9281_s2] sm:$0xff]  ;;  %236 = vmatprep.mubr.bf16.mxu0 %v6589_v34  ;;  %422 = vmatprep.mubr.bf16.mxu1 %v6589_v34 }
   0xc   :  { %6478 = vmatpush3.bf16.msra.mxu0 %v6565_v11  ;;  %v6582_v28 = vld [vmem:[%s9279_s0 + $0xb0] sm:$0xff]   ;;  %v6586_v32 = vld [vmem:[%s9279_s0 + $0xb8] sm:$0xff]   ;;  %v33_v36 = vld [vmem:[%s9281_s2 + $0x8] sm:$0xff]  ;;  %70 = vperm.xlu0 %6553, %v32_v35  }
   0xd   :  { %6506 = vmatpush3.bf16.msra.mxu1 %v6566_v12  ;;  %6479 = vmatprep.subr.bf16.mxu0 %v6567_v13  ;;  %v6590_v37 = vld [vmem:[%s9282_s3 + $0x80] ss:$8 sps:$4 sm:$0xff]   ;;  %v6592_v38 = vld [vmem:[%s9282_s3 + $0x84] ss:$8 sps:$4 sm:$0xff]   ;;  %v6596_v41 = vld [vmem:[%s9282_s3 + $0x90] ss:$8 sps:$4 sm:$0xff]  }
   0xe   :  { %6507 = vmatprep.subr.bf16.mxu1 %v6568_v14  ;;  %v6593_v39 = vld [vmem:[%s9282_s3] ss:$8 sps:$4 sm:$0xff]   ;;  %v6595_v40 = vld [vmem:[%s9282_s3 + $0x4] ss:$8 sps:$4 sm:$0xff]   ;;  %v6598_v42 = vld [vmem:[%s9282_s3 + $0x94] ss:$8 sps:$4 sm:$0xff]  }
   0xf   :  { %v6599_v43 = vld [vmem:[%s9282_s3 + $0x10] ss:$8 sps:$4 sm:$0xff]   ;;  %v6601_v44 = vld [vmem:[%s9282_s3 + $0x14] ss:$8 sps:$4 sm:$0xff]   ;;  %v6604_v45 = vld [vmem:[%s9282_s3 + $0xa4] ss:$8 sps:$4 sm:$0xff]  }
  0x10   :  { %6480 = vmatpush3.bf16.msra.mxu0 %v6569_v15  ;;  %75 = vperm.xlu0 %6553, %v33_v36   ;;  %v6607_v46 = vld [vmem:[%s9282_s3 + $0x24] ss:$8 sps:$4 sm:$0xff]   ;;  %v6602_v47 = vld [vmem:[%s9282_s3 + $0xa0] ss:$8 sps:$4 sm:$0xff]   ;;  %v6610_v49 = vld [vmem:[%s9282_s3 + $0xb4] ss:$8 sps:$4 sm:$0xff]  }
  0x11   :  { %6508 = vmatpush3.bf16.msra.mxu1 %v6570_v16  ;;  %6481 = vmatprep.subr.bf16.mxu0 %v6571_v17  ;;  %v6605_v48 = vld [vmem:[%s9282_s3 + $0x20] ss:$8 sps:$4 sm:$0xff]   ;;  %v6613_v50 = vld [vmem:[%s9282_s3 + $0x34] ss:$8 sps:$4 sm:$0xff]   ;;  %v6608_v51 = vld [vmem:[%s9282_s3 + $0xb0] ss:$8 sps:$4 sm:$0xff]  }
  0x12   :  { %6509 = vmatprep.subr.bf16.mxu1 %v6572_v18  ;;  %v6611_v52 = vld [vmem:[%s9282_s3 + $0x30] ss:$8 sps:$4 sm:$0xff]   ;;  %v6616_v53 = vld [vmem:[%s9282_s3 + $0xc4] ss:$8 sps:$4 sm:$0xff]   ;;  %v6614_v55 = vld [vmem:[%s9282_s3 + $0xc0] ss:$8 sps:$4 sm:$0xff]  }
  0x13   :  { %v6619_v54 = vld [vmem:[%s9282_s3 + $0x44] ss:$8 sps:$4 sm:$0xff]   ;;  %v6617_v56 = vld [vmem:[%s9282_s3 + $0x40] ss:$8 sps:$4 sm:$0xff]   ;;  %v6620_v57 = vld [vmem:[%s9280_s1 + $0x14] ss:$8 sps:$4 sm:$0xff]  }
  0x14   :  { %6482 = vmatpush3.bf16.msra.mxu0 %v6573_v19  ;;  %v6622_v58 = vld [vmem:[%s9280_s1 + $0x10] ss:$8 sps:$4 sm:$0xff]   ;;  %v6625_v60 = vld [vmem:[%s9282_s3 + $0xd4] ss:$8 sps:$4 sm:$0xff]   ;;  %v6631_v63 = vld [vmem:[%s9282_s3 + $0xe4] ss:$8 sps:$4 sm:$0xff]  }
  0x15   :  { %6510 = vmatpush3.bf16.msra.mxu1 %v6574_v20  ;;  %6483 = vmatprep.subr.bf16.mxu0 %v6575_v21  ;;  %v6623_v59 = vld [vmem:[%s9282_s3 + $0xd0] ss:$8 sps:$4 sm:$0xff]   ;;  %v6628_v62 = vld [vmem:[%s9282_s3 + $0x54] ss:$8 sps:$4 sm:$0xff]   ;;  %v6634_v0 = vld [vmem:[%s9282_s3 + $0x64] ss:$8 sps:$4 sm:$0xff]  }
  0x16   :  { %6511 = vmatprep.subr.bf16.mxu1 %v6576_v22  ;;  %v6626_v61 = vld [vmem:[%s9282_s3 + $0x50] ss:$8 sps:$4 sm:$0xff]   ;;  %v6629_v1 = vld [vmem:[%s9282_s3 + $0xe0] ss:$8 sps:$4 sm:$0xff]   ;;  %v6637_v4 = vld [vmem:[%s9282_s3 + $0xf4] ss:$8 sps:$4 sm:$0xff]  }
  0x17   :  { %v6632_v3 = vld [vmem:[%s9282_s3 + $0x60] ss:$8 sps:$4 sm:$0xff]   ;;  %v6635_v5 = vld [vmem:[%s9282_s3 + $0xf0] ss:$8 sps:$4 sm:$0xff]   ;;  %v6640_v6 = vld [vmem:[%s9282_s3 + $0x74] ss:$8 sps:$4 sm:$0xff]  }
  0x18   :  { %6484 = vmatpush3.bf16.msra.mxu0 %v6577_v23  ;;  %v6638_v7 = vld [vmem:[%s9282_s3 + $0x70] ss:$8 sps:$4 sm:$0xff]   ;;  %v6643_v8 = vld [vmem:[%s9282_s3 + $0x104] ss:$8 sps:$4 sm:$0xff]  }
  0x19   :  { %6512 = vmatpush3.bf16.msra.mxu1 %v6578_v24  ;;  %6485 = vmatprep.subr.bf16.mxu0 %v6579_v25  ;;  %v6646_v9 = vld [vmem:[%s9282_s3 + $0x184] ss:$8 sps:$4 sm:$0xff]   ;;  %v34_v10 = vld [vmem:[%s9281_s2 + $0x10] sm:$0xff]  ;;  %v35_v11 = vld [vmem:[%s9281_s2 + $0x18] sm:$0xff] }
  0x1a   :  { %6513 = vmatprep.subr.bf16.mxu1 %v6580_v26  ;;  %80 = vperm.xlu1 %6554, %v34_v10  }
  0x1c   :  { %6486 = vmatpush3.bf16.msra.mxu0 %v6581_v27 }
  0x1d   :  { %6514 = vmatpush3.bf16.msra.mxu1 %v6582_v28  ;;  %6487 = vmatprep.subr.bf16.mxu0 %v6583_v29 }
  0x1e   :  { %6515 = vmatprep.subr.bf16.mxu1 %v6584_v30  ;;  %85 = vperm.xlu1 %6554, %v35_v11  }
  0x20   :  { %6488 = vmatpush3.bf16.msra.mxu0 %v6585_v31 }
  0x21   :  { %6516 = vmatpush3.bf16.msra.mxu1 %v6586_v32  ;;  %572 = vmatprep.subr.bf16.mxu0 %v6592_v38 }
  0x22   :  { %697 = vmatprep.subr.bf16.mxu1 %v6595_v40 }
  0x23   :  { %237 = vmatmul.mubr.bf16.vlgmr.msra.gmra.mrb[0].mxu0 %v6587_v33 }
  0x24   :  { %423 = vmatmul.mubr.bf16.vlgmr.msra.gmra.mrb[0].mxu1 %v6587_v33  ;;  %573 = vmatpush1.bf16.msra.mxu0 %v6590_v37 }
  0x25   :  { %698 = vmatpush1.bf16.msra.mxu1 %v6593_v39  ;;  %574 = vmatprep.subr.bf16.mxu0 %v6598_v42  ;;  %v6641_v42 = vld [vmem:[%s9282_s3 + $0x100] ss:$8 sps:$4 sm:$0xff]  }
  0x26   :  { %699 = vmatprep.subr.bf16.mxu1 %v6601_v44  ;;  %430 = vmatprep.mubr.bf16.mxu1 %v6620_v57 }
  0x27   :  { %244 = vmatprep.mubr.bf16.mxu0 %v6620_v57  ;;  %v6664_v57 = vld [vmem:[%s9282_s3 + $0x1b4] ss:$8 sps:$4 sm:$0xff]  }
  0x28   :  { %575 = vmatpush1.bf16.msra.mxu0 %v6596_v41 }
  0x29   :  { %700 = vmatpush1.bf16.msra.mxu1 %v6599_v43  ;;  %576 = vmatprep.subr.bf16.mxu0 %v6604_v45  ;;  %v6644_v43 = vld [vmem:[%s9282_s3 + $0x180] ss:$8 sps:$4 sm:$0xff]  }
  0x2a   :  { %701 = vmatprep.subr.bf16.mxu1 %v6607_v46 }
  0x2b   :  { %245 = vmatmul.mubr.bf16.gmra.mrb[4].mxu0 %v6622_v58 }
  0x2c   :  { %577 = vmatpush1.bf16.msra.mxu0 %v6602_v47  ;;  %431 = vmatmul.mubr.bf16.gmra.mrb[4].mxu1 %v6622_v58  ;;  %v6659_v58 = vld [vmem:[%s9282_s3 + $0x130] ss:$8 sps:$4 sm:$0xff]  }
  0x2d   :  { %702 = vmatpush1.bf16.msra.mxu1 %v6605_v48  ;;  %578 = vmatprep.subr.bf16.mxu0 %v6610_v49  ;;  %v6649_v48 = vld [vmem:[%s9282_s3 + $0x114] ss:$8 sps:$4 sm:$0xff]  }
  0x2e   :  { %703 = vmatprep.subr.bf16.mxu1 %v6613_v50  ;;  %604 = vmatprep.mubr.bf16.mxu0 %v7401_v2  ;;  %v6652_v49 = vld [vmem:[%s9282_s3 + $0x194] ss:$8 sps:$4 sm:$0xff]   ;;  %v6647_v50 = vld [vmem:[%s9282_s3 + $0x110] ss:$8 sps:$4 sm:$0xff]  }
  0x2f   :  { %729 = vmatprep.mubr.bf16.mxu1 %v7401_v2 }
  0x30   :  { %579 = vmatpush1.bf16.msra.mxu0 %v6608_v51  ;;  %v6650_v51 = vld [vmem:[%s9282_s3 + $0x190] ss:$8 sps:$4 sm:$0xff]  }
  0x31   :  { %704 = vmatpush1.bf16.msra.mxu1 %v6611_v52  ;;  %580 = vmatprep.subr.bf16.mxu0 %v6616_v53  ;;  %v6655_v52 = vld [vmem:[%s9282_s3 + $0x124] ss:$8 sps:$4 sm:$0xff]  }
  0x32   :  { %705 = vmatprep.subr.bf16.mxu1 %v6619_v54  ;;  %v6658_v53 = vld [vmem:[%s9282_s3 + $0x1a4] ss:$8 sps:$4 sm:$0xff]   ;;  %v6653_v54 = vld [vmem:[%s9282_s3 + $0x120] ss:$8 sps:$4 sm:$0xff]  }
  0x34   :  { %581 = vmatpush1.bf16.msra.mxu0 %v6614_v55  ;;  %v6656_v55 = vld [vmem:[%s9282_s3 + $0x1a0] ss:$8 sps:$4 sm:$0xff]  }
  0x35   :  { %706 = vmatpush1.bf16.msra.mxu1 %v6617_v56  ;;  %582 = vmatprep.subr.bf16.mxu0 %v6625_v60  ;;  %v6661_v56 = vld [vmem:[%s9282_s3 + $0x134] ss:$8 sps:$4 sm:$0xff]   ;;  %v6667_v60 = vld [vmem:[%s9282_s3 + $0x144] ss:$8 sps:$4 sm:$0xff]  }
  0x36   :  { %707 = vmatprep.subr.bf16.mxu1 %v6628_v62  ;;  %v6665_v62 = vld [vmem:[%s9282_s3 + $0x140] ss:$8 sps:$4 sm:$0xff]  }
  0x38   :  { %583 = vmatpush1.bf16.msra.mxu0 %v6623_v59  ;;  %v6662_v59 = vld [vmem:[%s9282_s3 + $0x1b0] ss:$8 sps:$4 sm:$0xff]  }
  0x39   :  { %708 = vmatpush1.bf16.msra.mxu1 %v6626_v61  ;;  %584 = vmatprep.subr.bf16.mxu0 %v6631_v63  ;;  %v6670_v61 = vld [vmem:[%s9282_s3 + $0x1c4] ss:$8 sps:$4 sm:$0xff]   ;;  %v6668_v63 = vld [vmem:[%s9282_s3 + $0x1c0] ss:$8 sps:$4 sm:$0xff]  }
  0x3a   :  { %709 = vmatprep.subr.bf16.mxu1 %v6634_v0  ;;  %v6673_v0 = vld [vmem:[%s9282_s3 + $0x154] ss:$8 sps:$4 sm:$0xff]  }
  0x3c   :  { %585 = vmatpush1.bf16.msra.mxu0 %v6629_v1  ;;  %v6676_v1 = vld [vmem:[%s9282_s3 + $0x1d4] ss:$8 sps:$4 sm:$0xff]  }
  0x3d   :  { %710 = vmatpush1.bf16.msra.mxu1 %v6632_v3  ;;  %586 = vmatprep.subr.bf16.mxu0 %v6637_v4 }
  0x3e   :  { %711 = vmatprep.subr.bf16.mxu1 %v6640_v6 }
  0x40   :  { %587 = vmatpush1.bf16.msra.mxu0 %v6635_v5 }
  0x41   :  { %712 = vmatpush1.bf16.msra.mxu1 %v6638_v7  ;;  %846 = vmatprep.subr.bf16.mxu0 %v6643_v8 }
  0x42   :  { %991 = vmatprep.subr.bf16.mxu1 %v6646_v9 }
  0x8b   :  { %v71_v12 = vpop.permute.xlu0 %70 }
  0x8f   :  { %v76_v27 = vpop.permute.xlu0 %75 }
  0xf6   :  { %v6489_v13 = vpop.f32.mrb[0].mxu0 }
  0xf7   :  { %v6517_v14 = vpop.f32.mrb[0].mxu1  ;;  %v6490_v15 = vpop.f32.mrb[1].mxu0 }
  0xf8   :  { %v6518_v16 = vpop.f32.mrb[1].mxu1  ;;  %v6491_v17 = vadd.f32 %v6490_v15, %v6489_v13  ;;  %v6492_v19 = vpop.f32.mrb[2].mxu0 }
  0xf9   :  { %v6519_v18 = vadd.f32 %v6518_v16, %v6517_v14  ;;  %v6520_v20 = vpop.f32.mrb[2].mxu1  ;;  %v6493_v21 = vpop.f32.mrb[3].mxu0 }
  0xfa   :  { %v6521_v22 = vpop.f32.mrb[3].mxu1  ;;  %v239_v23 = vadd.f32 %v6491_v17, %v71_v12  ;;  %v6494_v25 = vadd.f32 %v6493_v21, %v6492_v19 }
  0xfb   :  { %v425_v24 = vadd.f32 %v6519_v18, %v71_v12  ;;  %v6522_v26 = vadd.f32 %v6521_v22, %v6520_v20 }
  0xfc   :  { %v242_v28 = vadd.f32 %v6494_v25, %v76_v27  ;;  %v253_v30 = vmax.f32 %v239_v23, 0.0 }
  0xfd   :  { %v428_v29 = vadd.f32 %v6522_v26, %v76_v27  ;;  %v439_v31 = vmax.f32 %v425_v24, 0.0 }
  0xfe   :  { %v254_v32 = vmax.f32 %v242_v28, 0.0 }
  0xff   :  { %v440_v33 = vmax.f32 %v428_v29, 0.0 }
 0x100   :  { %v257_v34 = vpack.c.bf16 %v254_v32, %v253_v30 }
 0x101   :  { %v443_v35 = vpack.c.bf16 %v440_v33, %v439_v31 }
 0x102   :  { %259 = vst [vmem:[#allocation2] sm:$0xff] %v257_v34 }
 0x103   :  { %446 = vst [vmem:[#allocation2 + $0x10] sm:$0xff] %v443_v35 }
 0x109   :  { %v448_v36 = vld [vmem:[#allocation2] sm:$0x1] }
 0x10a   :  { %v449_v37 = vld [vmem:[#allocation2 + $0x10] sm:$0x1]  ;;  %v485_v38 = vunpack.c.l.b16 %v448_v36 }
 0x10b   :  { %v486_v39 = vunpack.c.l.b16 %v449_v37 }
 0x10c   :  { %v487_v40 = vrot.slane %v485_v38, 1 }
 0x10d   :  { %v613_v41 = vrot.slane %v486_v39, 7 }
 0x10e   :  { %v489_v44 = vsel %vm488_vm0, %v486_v39, %v487_v40 }
 0x10f   :  { %v614_v45 = vsel %vm488_vm0, %v613_v41, %v485_v38  ;;  %v490_v46 = vpack.c.b16 %v489_v44, %v489_v44 }
 0x110   :  { %v615_v47 = vpack.c.b16 %v614_v45, %v614_v45 }
 0x111   :  { %605 = vmatmul.mubr.bf16.vlgmr.msra.gmra.mrb[8].mxu0 %v490_v46 }
 0x112   :  { %730 = vmatmul.mubr.bf16.vlgmr.msra.gmra.mrb[8].mxu1 %v615_v47  ;;  %847 = vmatpush1.bf16.msra.mxu0 %v6641_v42 }
 0x113   :  { %992 = vmatpush1.bf16.msra.mxu1 %v6644_v43  ;;  %848 = vmatprep.subr.bf16.mxu0 %v6649_v48 }
 0x114   :  { %993 = vmatprep.subr.bf16.mxu1 %v6652_v49  ;;  %878 = vmatprep.mubr.bf16.mxu0 %v7401_v2 }
 0x115   :  { %1023 = vmatprep.mubr.bf16.mxu1 %v7401_v2 }
 0x116   :  { %849 = vmatpush1.bf16.msra.mxu0 %v6647_v50 }
 0x117   :  { %994 = vmatpush1.bf16.msra.mxu1 %v6650_v51  ;;  %850 = vmatprep.subr.bf16.mxu0 %v6655_v52 }
 0x118   :  { %995 = vmatprep.subr.bf16.mxu1 %v6658_v53 }
 0x11a   :  { %851 = vmatpush1.bf16.msra.mxu0 %v6653_v54 }
 0x11b   :  { %996 = vmatpush1.bf16.msra.mxu1 %v6656_v55  ;;  %852 = vmatprep.subr.bf16.mxu0 %v6661_v56 }
 0x11c   :  { %997 = vmatprep.subr.bf16.mxu1 %v6664_v57 }
 0x11e   :  { %853 = vmatpush1.bf16.msra.mxu0 %v6659_v58 }
 0x11f   :  { %998 = vmatpush1.bf16.msra.mxu1 %v6662_v59  ;;  %854 = vmatprep.subr.bf16.mxu0 %v6667_v60 }
 0x120   :  { %999 = vmatprep.subr.bf16.mxu1 %v6670_v61 }
 0x121   :  { %12 = vsyncpa [#allocation4], 0  ;;  %v738_v3 = vld [vmem:[#allocation2] sm:$0x2]  ;;  %v739_v4 = vld [vmem:[#allocation2 + $0x10] sm:$0x2] }
 0x122   :  { %855 = vmatpush1.bf16.msra.mxu0 %v6665_v62  ;;  %v6671_v5 = vld [vmem:[%s9282_s3 + $0x150] ss:$8 sps:$4 sm:$0xff]   ;;  %v6679_v7 = vld [vmem:[%s9282_s3 + $0x164] ss:$8 sps:$4 sm:$0xff]   ;;  %v759_v9 = vunpack.c.l.b16 %v738_v3  ;;  %v760_v10 = vunpack.c.l.b16 %v739_v4  ;;  %v6677_v11 = vld [vmem:[%s9282_s3 + $0x160] ss:$8 sps:$4 sm:$0xff]  }
 0x123   :  { %1000 = vmatpush1.bf16.msra.mxu1 %v6668_v63  ;;  %v6674_v6 = vld [vmem:[%s9282_s3 + $0x1d0] ss:$8 sps:$4 sm:$0xff]   ;;  %856 = vmatprep.subr.bf16.mxu0 %v6673_v0  ;;  %v6682_v8 = vld [vmem:[%s9282_s3 + $0x1e4] ss:$8 sps:$4 sm:$0xff]   ;;  %v6680_v12 = vld [vmem:[%s9282_s3 + $0x1e0] ss:$8 sps:$4 sm:$0xff]  }
 0x124   :  { %1001 = vmatprep.subr.bf16.mxu1 %v6676_v1  ;;  %v6685_v13 = vld [vmem:[%s9282_s3 + $0x174] ss:$8 sps:$4 sm:$0xff]   ;;  %v761_v15 = vrot.slane %v759_v9, 2  ;;  %v762_v16 = vrot.slane %v760_v10, 1  ;;  %v906_v17 = vrot.slane %v759_v9, 3  ;;  %v907_v18 = vrot.slane %v760_v10, 2 }
 0x125   :  { %v6688_v14 = vld [vmem:[%s9282_s3 + $0x1f4] ss:$8 sps:$4 sm:$0xff]   ;;  %v6683_v19 = vld [vmem:[%s9282_s3 + $0x170] ss:$8 sps:$4 sm:$0xff]   ;;  %v6691_v21 = vld [vmem:[%s9282_s3 + $0x204] ss:$8 sps:$4 sm:$0xff]  }
 0x126   :  { %857 = vmatpush1.bf16.msra.mxu0 %v6671_v5  ;;  %v6686_v20 = vld [vmem:[%s9282_s3 + $0x1f0] ss:$8 sps:$4 sm:$0xff]   ;;  %v6694_v22 = vld [vmem:[%s9282_s3 + $0x284] ss:$8 sps:$4 sm:$0xff]   ;;  %v763_v23 = vsel %vm488_vm0, %v762_v16, %v761_v15  ;;  %v908_v24 = vsel %vm488_vm0, %v907_v18, %v906_v17  ;;  %v6689_v25 = vld [vmem:[%s9282_s3 + $0x200] ss:$8 sps:$4 sm:$0xff]  }
 0x127   :  { %1002 = vmatpush1.bf16.msra.mxu1 %v6674_v6  ;;  %858 = vmatprep.subr.bf16.mxu0 %v6679_v7  ;;  %v6692_v26 = vld [vmem:[%s9282_s3 + $0x280] ss:$8 sps:$4 sm:$0xff]   ;;  %v764_v27 = vpack.c.b16 %v763_v23, %v763_v23  ;;  %v909_v28 = vpack.c.b16 %v908_v24, %v908_v24  ;;  %v6697_v29 = vld [vmem:[%s9282_s3 + $0x214] ss:$8 sps:$4 sm:$0xff]   ;;  %v6695_v31 = vld [vmem:[%s9282_s3 + $0x210] ss:$8 sps:$4 sm:$0xff]  }
 0x128   :  { %1003 = vmatprep.subr.bf16.mxu1 %v6682_v8  ;;  %v6700_v30 = vld [vmem:[%s9282_s3 + $0x294] ss:$8 sps:$4 sm:$0xff]   ;;  %v6698_v32 = vld [vmem:[%s9282_s3 + $0x290] ss:$8 sps:$4 sm:$0xff]   ;;  %v6703_v33 = vld [vmem:[%s9282_s3 + $0x224] ss:$8 sps:$4 sm:$0xff]  }
 0x129   :  { %v6706_v34 = vld [vmem:[%s9282_s3 + $0x2a4] ss:$8 sps:$4 sm:$0xff]   ;;  %v6701_v35 = vld [vmem:[%s9282_s3 + $0x220] ss:$8 sps:$4 sm:$0xff]   ;;  %v6709_v37 = vld [vmem:[%s9282_s3 + $0x234] ss:$8 sps:$4 sm:$0xff]  }
 0x12a   :  { %859 = vmatpush1.bf16.msra.mxu0 %v6677_v11  ;;  %v6704_v36 = vld [vmem:[%s9282_s3 + $0x2a0] ss:$8 sps:$4 sm:$0xff]   ;;  %v6712_v38 = vld [vmem:[%s9282_s3 + $0x2b4] ss:$8 sps:$4 sm:$0xff]   ;;  %v6707_v39 = vld [vmem:[%s9282_s3 + $0x230] ss:$8 sps:$4 sm:$0xff]  }
 0x12b   :  { %1004 = vmatpush1.bf16.msra.mxu1 %v6680_v12  ;;  %860 = vmatprep.subr.bf16.mxu0 %v6685_v13  ;;  %v6710_v40 = vld [vmem:[%s9282_s3 + $0x2b0] ss:$8 sps:$4 sm:$0xff]   ;;  %v6715_v41 = vld [vmem:[%s9282_s3 + $0x244] ss:$8 sps:$4 sm:$0xff]   ;;  %v6713_v43 = vld [vmem:[%s9282_s3 + $0x240] ss:$8 sps:$4 sm:$0xff]  }
 0x12c   :  { %1005 = vmatprep.subr.bf16.mxu1 %v6688_v14  ;;  %v6718_v42 = vld [vmem:[%s9282_s3 + $0x2c4] ss:$8 sps:$4 sm:$0xff]   ;;  %v6716_v44 = vld [vmem:[%s9282_s3 + $0x2c0] ss:$8 sps:$4 sm:$0xff]   ;;  %v6721_v45 = vld [vmem:[%s9282_s3 + $0x254] ss:$8 sps:$4 sm:$0xff]  }
 0x12d   :  { %v6724_v46 = vld [vmem:[%s9282_s3 + $0x2d4] ss:$8 sps:$4 sm:$0xff]   ;;  %v1034_v47 = vld [vmem:[#allocation2] sm:$0x4]  ;;  %v1035_v48 = vld [vmem:[#allocation2 + $0x10] sm:$0x4] }
 0x12e   :  { %861 = vmatpush1.bf16.msra.mxu0 %v6683_v19  ;;  %v6719_v49 = vld [vmem:[%s9282_s3 + $0x250] ss:$8 sps:$4 sm:$0xff]   ;;  %v6727_v51 = vld [vmem:[%s9282_s3 + $0x264] ss:$8 sps:$4 sm:$0xff]   ;;  %v1055_v53 = vunpack.c.l.b16 %v1034_v47  ;;  %v1056_v54 = vunpack.c.l.b16 %v1035_v48  ;;  %v6725_v55 = vld [vmem:[%s9282_s3 + $0x260] ss:$8 sps:$4 sm:$0xff]  }
 0x12f   :  { %1006 = vmatpush1.bf16.msra.mxu1 %v6686_v20  ;;  %1142 = vmatprep.subr.bf16.mxu0 %v6691_v21  ;;  %v6722_v50 = vld [vmem:[%s9282_s3 + $0x2d0] ss:$8 sps:$4 sm:$0xff]   ;;  %v6730_v52 = vld [vmem:[%s9282_s3 + $0x2e4] ss:$8 sps:$4 sm:$0xff]   ;;  %v6728_v56 = vld [vmem:[%s9282_s3 + $0x2e0] ss:$8 sps:$4 sm:$0xff]   ;;  %v81_v21 = vpop.permute.xlu1 %80 }
 0x130   :  { %1287 = vmatprep.subr.bf16.mxu1 %v6694_v22  ;;  %v6733_v57 = vld [vmem:[%s9282_s3 + $0x274] ss:$8 sps:$4 sm:$0xff]   ;;  %v1057_v59 = vrot.slane %v1055_v53, 4  ;;  %v1058_v60 = vrot.slane %v1056_v54, 3  ;;  %v1202_v61 = vrot.slane %v1055_v53, 5  ;;  %v1203_v62 = vrot.slane %v1056_v54, 4 }
 0x131   :  { %879 = vmatmul.mubr.bf16.vlgmr.msra.gmra.mrb[12].mxu0 %v764_v27  ;;  %v6736_v58 = vld [vmem:[%s9282_s3 + $0x2f4] ss:$8 sps:$4 sm:$0xff]   ;;  %v6731_v63 = vld [vmem:[%s9282_s3 + $0x270] ss:$8 sps:$4 sm:$0xff]   ;;  %v6739_v1 = vld [vmem:[%s9282_s3 + $0x304] ss:$8 sps:$4 sm:$0xff]  }
 0x132   :  { %1024 = vmatmul.mubr.bf16.vlgmr.msra.gmra.mrb[12].mxu1 %v909_v28  ;;  %1143 = vmatpush1.bf16.msra.mxu0 %v6689_v25  ;;  %v6734_v0 = vld [vmem:[%s9282_s3 + $0x2f0] ss:$8 sps:$4 sm:$0xff]   ;;  %v6742_v3 = vld [vmem:[%s9282_s3 + $0x384] ss:$8 sps:$4 sm:$0xff]   ;;  %v1059_v4 = vsel %vm488_vm0, %v1058_v60, %v1057_v59  ;;  %v1204_v5 = vsel %vm488_vm0, %v1203_v62, %v1202_v61  ;;  %v6737_v6 = vld [vmem:[%s9282_s3 + $0x300] ss:$8 sps:$4 sm:$0xff]  }
 0x133   :  { %1288 = vmatpush1.bf16.msra.mxu1 %v6692_v26  ;;  %1144 = vmatprep.subr.bf16.mxu0 %v6697_v29  ;;  %v6740_v7 = vld [vmem:[%s9282_s3 + $0x380] ss:$8 sps:$4 sm:$0xff]   ;;  %v1060_v8 = vpack.c.b16 %v1059_v4, %v1059_v4  ;;  %v1205_v9 = vpack.c.b16 %v1204_v5, %v1204_v5  ;;  %v6745_v10 = vld [vmem:[%s9282_s3 + $0x314] ss:$8 sps:$4 sm:$0xff]   ;;  %v6743_v12 = vld [vmem:[%s9282_s3 + $0x310] ss:$8 sps:$4 sm:$0xff]  }
 0x134   :  { %1289 = vmatprep.subr.bf16.mxu1 %v6700_v30  ;;  %1174 = vmatprep.mubr.bf16.mxu0 %v7401_v2  ;;  %v6748_v11 = vld [vmem:[%s9282_s3 + $0x394] ss:$8 sps:$4 sm:$0xff]   ;;  %v6746_v13 = vld [vmem:[%s9282_s3 + $0x390] ss:$8 sps:$4 sm:$0xff]   ;;  %v6751_v14 = vld [vmem:[%s9282_s3 + $0x324] ss:$8 sps:$4 sm:$0xff]  }
 0x135   :  { %1319 = vmatprep.mubr.bf16.mxu1 %v7401_v2  ;;  %v6754_v15 = vld [vmem:[%s9282_s3 + $0x3a4] ss:$8 sps:$4 sm:$0xff]   ;;  %v6749_v16 = vld [vmem:[%s9282_s3 + $0x320] ss:$8 sps:$4 sm:$0xff]   ;;  %v6757_v18 = vld [vmem:[%s9282_s3 + $0x334] ss:$8 sps:$4 sm:$0xff]  }
 0x136   :  { %1145 = vmatpush1.bf16.msra.mxu0 %v6695_v31  ;;  %v6752_v17 = vld [vmem:[%s9282_s3 + $0x3a0] ss:$8 sps:$4 sm:$0xff]   ;;  %v6760_v19 = vld [vmem:[%s9282_s3 + $0x3b4] ss:$8 sps:$4 sm:$0xff]   ;;  %v6523_v20 = vpop.f32.mrb[4].mxu1  ;;  %v6495_v24 = vpop.f32.mrb[4].mxu0 }
 0x137   :  { %1290 = vmatpush1.bf16.msra.mxu1 %v6698_v32  ;;  %1146 = vmatprep.subr.bf16.mxu0 %v6703_v33  ;;  %v6524_v22 = vpop.f32.mrb[5].mxu1  ;;  %v6755_v26 = vld [vmem:[%s9282_s3 + $0x330] ss:$8 sps:$4 sm:$0xff]   ;;  %v6496_v28 = vpop.f32.mrb[5].mxu0  ;;  %v6763_v30 = vld [vmem:[%s9282_s3 + $0x344] ss:$8 sps:$4 sm:$0xff]  }
 0x138   :  { %1291 = vmatprep.subr.bf16.mxu1 %v6706_v34  ;;  %v6525_v23 = vadd.f32 %v6524_v22, %v6523_v20  ;;  %v6526_v25 = vpop.f32.mrb[6].mxu1  ;;  %v6758_v27 = vld [vmem:[%s9282_s3 + $0x3b0] ss:$8 sps:$4 sm:$0xff]   ;;  %v6766_v31 = vld [vmem:[%s9282_s3 + $0x3c4] ss:$8 sps:$4 sm:$0xff]   ;;  %v6497_v33 = vadd.f32 %v6496_v28, %v6495_v24  ;;  %s7402_s2 = smov [#allocation3]  }
 0x139   :  { %v6527_v29 = vpop.f32.mrb[7].mxu1  ;;  %v6767_v53 = vld [vmem:[%s9282_s3 + $0x350] ss:$8 sps:$4 sm:$0xff]   ;;  %v6773_v60 = vld [vmem:[%s9282_s3 + $0x360] ss:$8 sps:$4 sm:$0xff]   ;;  %s5372_s29 = sshll.u32 %s7402_s2, 4  ;;  %s5373_s29 = int_to_ptr.vmem [resolvable:$true] %s5372_s29 }
 0x13a   :  { %1147 = vmatpush1.bf16.msra.mxu0 %v6701_v35  ;;  %v433_v32 = vadd.f32 %v6525_v23, %v81_v21  ;;  %v6528_v34 = vadd.f32 %v6527_v29, %v6526_v25  ;;  %v6498_v35 = vpop.f32.mrb[6].mxu0  ;;  %v6770_v54 = vld [vmem:[%s9282_s3 + $0x3d0] ss:$8 sps:$4 sm:$0xff]   ;;  %v6776_v61 = vld [vmem:[%s9282_s3 + $0x3e0] ss:$8 sps:$4 sm:$0xff]   ;;  %s7377_s1 = scalar_lea.vmem %s5373_s29, 32  ;;  %p7382_p1 = scmp.lt.s32.totalorder %s5373_s29, %s5373_s29 }
 0x13b   :  { %1292 = vmatpush1.bf16.msra.mxu1 %v6704_v36  ;;  %1148 = vmatprep.subr.bf16.mxu0 %v6709_v37  ;;  %v86_v36 = vpop.permute.xlu1 %85  ;;  %v6499_v37 = vpop.f32.mrb[7].mxu0  ;;  %v6781_v62 = vld [vmem:[%s9282_s3 + $0x374] ss:$8 sps:$4 sm:$0xff]   ;;  %v6779_v5 = vld [vmem:[%s9282_s3 + $0x370] ss:$8 sps:$4 sm:$0xff]   ;;  %p7378_p0 = scmp.ne.s32.totalorder %s5373_s29, %s7377_s1  ;;  %p7383_p2 = scmp.lt.s32.totalorder %s7377_s1, %s7377_s1 }
 0x13c   :  { %1293 = vmatprep.subr.bf16.mxu1 %v6712_v38  ;;  %v441_v38 = vmax.f32 %v433_v32, 0.0  ;;  %v6802_v20 = vld [vmem:[%s9282_s3 + $0x4a4] ss:$8 sps:$4 sm:$0xff]   ;;  %v6800_v22 = vld [vmem:[%s9282_s3 + $0x4a0] ss:$8 sps:$4 sm:$0xff]  }
 0x13d   :  { %v6805_v23 = vld [vmem:[%s9282_s3 + $0x434] ss:$8 sps:$4 sm:$0xff]   ;;  %v6803_v25 = vld [vmem:[%s9282_s3 + $0x430] ss:$8 sps:$4 sm:$0xff]   ;;  %v6814_v28 = vld [vmem:[%s9282_s3 + $0x4c4] ss:$8 sps:$4 sm:$0xff]   ;;  %p7384_p3 = por %p7383_p2, %p7382_p1 }
 0x13e   :  { %1149 = vmatpush1.bf16.msra.mxu0 %v6707_v39  ;;  %v247_v39 = vadd.f32 %v6497_v33, %v81_v21  ;;  %v6797_v21 = vld [vmem:[%s9282_s3 + $0x420] ss:$8 sps:$4 sm:$0xff]   ;;  %v6808_v24 = vld [vmem:[%s9282_s3 + $0x4b4] ss:$8 sps:$4 sm:$0xff]   ;;  %v1626_v33 = vld [vmem:[#allocation2] sm:$0x10] }
 0x13f   :  { %1294 = vmatpush1.bf16.msra.mxu1 %v6710_v40  ;;  %1150 = vmatprep.subr.bf16.mxu0 %v6715_v41  ;;  %v436_v40 = vadd.f32 %v6528_v34, %v86_v36  ;;  %v6500_v41 = vadd.f32 %v6499_v37, %v6498_v35  ;;  %v6809_v29 = vld [vmem:[%s9282_s3 + $0x440] ss:$8 sps:$4 sm:$0xff]   ;;  %v6820_v32 = vld [vmem:[%s9282_s3 + $0x4d4] ss:$8 sps:$4 sm:$0xff]   ;;  %v6815_v35 = vld [vmem:[%s9282_s3 + $0x450] ss:$8 sps:$4 sm:$0xff]   ;;  %p7385_p4 = pnand %p7384_p3, %p7378_p0 }
 0x140   :  { %1295 = vmatprep.subr.bf16.mxu1 %v6718_v42  ;;  %v6761_v42 = vld [vmem:[%s9282_s3 + $0x340] ss:$8 sps:$4 sm:$0xff]   ;;  %v1627_v34 = vld [vmem:[#allocation2 + $0x10] sm:$0x10]  ;;  %v6823_v37 = vld [vmem:[%s9282_s3 + $0x464] ss:$8 sps:$4 sm:$0xff]  }
 0x141   :  { %v442_v47 = vmax.f32 %v436_v40, 0.0  ;;  %v250_v48 = vadd.f32 %v6500_v41, %v86_v36  ;;  %v6818_v36 = vld [vmem:[%s9282_s3 + $0x4d0] ss:$8 sps:$4 sm:$0xff]   ;;  %v1648_v40 = vunpack.c.h.b16 %v1627_v34  ;;  %v6821_v41 = vld [vmem:[%s9282_s3 + $0x460] ss:$8 sps:$4 sm:$0xff]  }
 0x142   :  { %1151 = vmatpush1.bf16.msra.mxu0 %v6713_v43  ;;  %v6764_v43 = vld [vmem:[%s9282_s3 + $0x3c0] ss:$8 sps:$4 sm:$0xff]  }
 0x143   :  { %1296 = vmatpush1.bf16.msra.mxu1 %v6716_v44  ;;  %1152 = vmatprep.subr.bf16.mxu0 %v6721_v45  ;;  %v6769_v44 = vld [vmem:[%s9282_s3 + $0x354] ss:$8 sps:$4 sm:$0xff]   ;;  %v6881_v34 = vld [vmem:[%s9282_s3 + $0x600] ss:$8 sps:$4 sm:$0xff]  }
 0x144   :  { %1297 = vmatprep.subr.bf16.mxu1 %v6724_v46  ;;  %v6772_v45 = vld [vmem:[%s9282_s3 + $0x3d4] ss:$8 sps:$4 sm:$0xff]   ;;  %v255_v46 = vmax.f32 %v247_v39, 0.0  ;;  %v1647_v39 = vunpack.c.h.b16 %v1626_v33 }
 0x146   :  { %1153 = vmatpush1.bf16.msra.mxu0 %v6719_v49  ;;  %v1330_v49 = vld [vmem:[#allocation2] sm:$0x8] }
 0x147   :  { %1298 = vmatpush1.bf16.msra.mxu1 %v6722_v50  ;;  %1154 = vmatprep.subr.bf16.mxu0 %v6727_v51  ;;  %v1331_v50 = vld [vmem:[#allocation2 + $0x10] sm:$0x8]  ;;  %v444_v51 = vpack.c.bf16 %v442_v47, %v441_v38  ;;  %v6826_v38 = vld [vmem:[%s9282_s3 + $0x4e4] ss:$8 sps:$4 sm:$0xff]  }
 0x148   :  { %1299 = vmatprep.subr.bf16.mxu1 %v6730_v52  ;;  %v256_v52 = vmax.f32 %v250_v48, 0.0  ;;  %v1352_v59 = vunpack.c.l.b16 %v1331_v50  ;;  %v6827_v47 = vld [vmem:[%s9282_s3 + $0x470] ss:$8 sps:$4 sm:$0xff]   ;;  %v6838_v50 = vld [vmem:[%s9282_s3 + $0x584] ss:$8 sps:$4 sm:$0xff]  }
 0x149   :  { %447 = vst [vmem:[#allocation2 + $0x18] sm:$0xff] %v444_v51  ;;  %v6830_v48 = vld [vmem:[%s9282_s3 + $0x4f0] ss:$8 sps:$4 sm:$0xff]  }
 0x14a   :  { %1155 = vmatpush1.bf16.msra.mxu0 %v6725_v55  ;;  %v6775_v55 = vld [vmem:[%s9282_s3 + $0x364] ss:$8 sps:$4 sm:$0xff]   ;;  %v1499_v4 = vrot.slane %v1352_v59, 6 }
 0x14b   :  { %1300 = vmatpush1.bf16.msra.mxu1 %v6728_v56  ;;  %1156 = vmatprep.subr.bf16.mxu0 %v6733_v57  ;;  %v6778_v56 = vld [vmem:[%s9282_s3 + $0x3e4] ss:$8 sps:$4 sm:$0xff]   ;;  %v258_v57 = vpack.c.bf16 %v256_v52, %v255_v46  ;;  %v1793_v46 = vrot.slane %v1647_v39, 1 }
 0x14c   :  { %1301 = vmatprep.subr.bf16.mxu1 %v6736_v58  ;;  %v1351_v58 = vunpack.c.l.b16 %v1330_v49  ;;  %v6835_v49 = vld [vmem:[%s9282_s3 + $0x504] ss:$8 sps:$4 sm:$0xff]  }
 0x14d   :  { %260 = vst [vmem:[#allocation2 + $0x8] sm:$0xff] %v258_v57  ;;  %v1794_v52 = vsel %vm488_vm0, %v1648_v40, %v1793_v46  ;;  %v6841_v57 = vld [vmem:[%s9282_s3 + $0x514] ss:$8 sps:$4 sm:$0xff]  }
 0x14e   :  { %1157 = vmatpush1.bf16.msra.mxu0 %v6731_v63  ;;  %v6784_v63 = vld [vmem:[%s9282_s3 + $0x3f4] ss:$8 sps:$4 sm:$0xff]  }
 0x14f   :  { %1302 = vmatpush1.bf16.msra.mxu1 %v6734_v0  ;;  %1438 = vmatprep.subr.bf16.mxu0 %v6739_v1  ;;  %v1353_v0 = vrot.slane %v1351_v58, 6  ;;  %v1354_v1 = vrot.slane %v1352_v59, 5  ;;  %v6839_v59 = vld [vmem:[%s9282_s3 + $0x510] ss:$8 sps:$4 sm:$0xff]   ;;  %v6901_v46 = vld [vmem:[%s9282_s3 + $0x634] ss:$8 sps:$4 sm:$0xff]  }
 0x150   :  { %1583 = vmatprep.subr.bf16.mxu1 %v6742_v3  ;;  %v1498_v3 = vrot.slane %v1351_v58, 7  ;;  %v6844_v58 = vld [vmem:[%s9282_s3 + $0x594] ss:$8 sps:$4 sm:$0xff]  }
 0x151   :  { %1175 = vmatmul.mubr.bf16.vlgmr.msra.gmra.mrb[16].mxu0 %v1060_v8  ;;  %v6790_v8 = vld [vmem:[%s9282_s3 + $0x484] ss:$8 sps:$4 sm:$0xff]  }
 0x152   :  { %1320 = vmatmul.mubr.bf16.vlgmr.msra.gmra.mrb[16].mxu1 %v1205_v9  ;;  %1439 = vmatpush1.bf16.msra.mxu0 %v6737_v6  ;;  %v6782_v6 = vld [vmem:[%s9282_s3 + $0x3f0] ss:$8 sps:$4 sm:$0xff]   ;;  %v1355_v9 = vsel %vm488_vm0, %v1354_v1, %v1353_v0  ;;  %v6848_v0 = vld [vmem:[%s9282_s3 + $0x5a0] ss:$8 sps:$4 sm:$0xff]   ;;  %v6853_v1 = vld [vmem:[%s9282_s3 + $0x534] ss:$8 sps:$4 sm:$0xff]  }
 0x153   :  { %1584 = vmatpush1.bf16.msra.mxu1 %v6740_v7  ;;  %1440 = vmatprep.subr.bf16.mxu0 %v6745_v10  ;;  %v6787_v7 = vld [vmem:[%s9282_s3 + $0x404] ss:$8 sps:$4 sm:$0xff]   ;;  %v1500_v10 = vsel %vm488_vm0, %v1499_v4, %v1498_v3  ;;  %v6856_v3 = vld [vmem:[%s9282_s3 + $0x5b4] ss:$8 sps:$4 sm:$0xff]   ;;  %v6851_v4 = vld [vmem:[%s9282_s3 + $0x530] ss:$8 sps:$4 sm:$0xff]  }
 0x154   :  { %1585 = vmatprep.subr.bf16.mxu1 %v6748_v11  ;;  %1470 = vmatprep.mubr.bf16.mxu0 %v7401_v2  ;;  %v6785_v11 = vld [vmem:[%s9282_s3 + $0x400] ss:$8 sps:$4 sm:$0xff]  }
 0x155   :  { %1615 = vmatprep.mubr.bf16.mxu1 %v7401_v2 }
 0x156   :  { %1441 = vmatpush1.bf16.msra.mxu0 %v6743_v12  ;;  %v6788_v12 = vld [vmem:[%s9282_s3 + $0x480] ss:$8 sps:$4 sm:$0xff]  }
 0x157   :  { %1586 = vmatpush1.bf16.msra.mxu1 %v6746_v13  ;;  %1442 = vmatprep.subr.bf16.mxu0 %v6751_v14  ;;  %v1356_v13 = vpack.c.b16 %v1355_v9, %v1355_v9  ;;  %v1501_v14 = vpack.c.b16 %v1500_v10, %v1500_v10  ;;  %v6860_v9 = vld [vmem:[%s9282_s3 + $0x5c0] ss:$8 sps:$4 sm:$0xff]   ;;  %v6865_v10 = vld [vmem:[%s9282_s3 + $0x554] ss:$8 sps:$4 sm:$0xff]  }
 0x158   :  { %1587 = vmatprep.subr.bf16.mxu1 %v6754_v15  ;;  %v6793_v15 = vld [vmem:[%s9282_s3 + $0x414] ss:$8 sps:$4 sm:$0xff]  }
 0x15a   :  { %1443 = vmatpush1.bf16.msra.mxu0 %v6749_v16  ;;  %v6796_v16 = vld [vmem:[%s9282_s3 + $0x494] ss:$8 sps:$4 sm:$0xff]  }
 0x15b   :  { %1588 = vmatpush1.bf16.msra.mxu1 %v6752_v17  ;;  %1444 = vmatprep.subr.bf16.mxu0 %v6757_v18  ;;  %v6791_v17 = vld [vmem:[%s9282_s3 + $0x410] ss:$8 sps:$4 sm:$0xff]  }
 0x15c   :  { %1589 = vmatprep.subr.bf16.mxu1 %v6760_v19  ;;  %v6794_v18 = vld [vmem:[%s9282_s3 + $0x490] ss:$8 sps:$4 sm:$0xff]   ;;  %v6799_v19 = vld [vmem:[%s9282_s3 + $0x424] ss:$8 sps:$4 sm:$0xff]  }
 0x15e   :  { %1445 = vmatpush1.bf16.msra.mxu0 %v6755_v26  ;;  %v6806_v26 = vld [vmem:[%s9282_s3 + $0x4b0] ss:$8 sps:$4 sm:$0xff]  }
 0x15f   :  { %1590 = vmatpush1.bf16.msra.mxu1 %v6758_v27  ;;  %1446 = vmatprep.subr.bf16.mxu0 %v6763_v30  ;;  %v6811_v27 = vld [vmem:[%s9282_s3 + $0x444] ss:$8 sps:$4 sm:$0xff]   ;;  %v6812_v30 = vld [vmem:[%s9282_s3 + $0x4c0] ss:$8 sps:$4 sm:$0xff]  }
 0x160   :  { %1591 = vmatprep.subr.bf16.mxu1 %v6766_v31  ;;  %v6817_v31 = vld [vmem:[%s9282_s3 + $0x454] ss:$8 sps:$4 sm:$0xff]  }
 0x162   :  { %1447 = vmatpush1.bf16.msra.mxu0 %v6761_v42  ;;  %v6824_v42 = vld [vmem:[%s9282_s3 + $0x4e0] ss:$8 sps:$4 sm:$0xff]  }
 0x163   :  { %1592 = vmatpush1.bf16.msra.mxu1 %v6764_v43  ;;  %1448 = vmatprep.subr.bf16.mxu0 %v6769_v44  ;;  %v6829_v43 = vld [vmem:[%s9282_s3 + $0x474] ss:$8 sps:$4 sm:$0xff]  }
 0x164   :  { %1593 = vmatprep.subr.bf16.mxu1 %v6772_v45  ;;  %v6832_v44 = vld [vmem:[%s9282_s3 + $0x4f4] ss:$8 sps:$4 sm:$0xff]   ;;  %v1649_v45 = vrot.slane %v1648_v40, 7  ;;  %v6887_v40 = vld [vmem:[%s9282_s3 + $0x610] ss:$8 sps:$4 sm:$0xff]  }
 0x166   :  { %1449 = vmatpush1.bf16.msra.mxu0 %v6767_v53  ;;  %v1650_v51 = vsel %vm488_vm0, %v1649_v45, %v1647_v39  ;;  %v6833_v53 = vld [vmem:[%s9282_s3 + $0x500] ss:$8 sps:$4 sm:$0xff]   ;;  %v6892_v39 = vld [vmem:[%s9282_s3 + $0x694] ss:$8 sps:$4 sm:$0xff]  }
 0x167   :  { %1594 = vmatpush1.bf16.msra.mxu1 %v6770_v54  ;;  %1450 = vmatprep.subr.bf16.mxu0 %v6775_v55  ;;  %v6836_v54 = vld [vmem:[%s9282_s3 + $0x580] ss:$8 sps:$4 sm:$0xff]   ;;  %v1651_v55 = vpack.c.b16 %v1650_v51, %v1650_v51  ;;  %v6910_v51 = vld [vmem:[%s9282_s3 + $0x6c4] ss:$8 sps:$4 sm:$0xff]  }
 0x168   :  { %1595 = vmatprep.subr.bf16.mxu1 %v6778_v56  ;;  %v1795_v56 = vpack.c.b16 %v1794_v52, %v1794_v52  ;;  %v6896_v45 = vld [vmem:[%s9282_s3 + $0x6a0] ss:$8 sps:$4 sm:$0xff]  }
 0x169   :  { %v6905_v52 = vld [vmem:[%s9282_s3 + $0x640] ss:$8 sps:$4 sm:$0xff]  }
 0x16a   :  { %1451 = vmatpush1.bf16.msra.mxu0 %v6773_v60  ;;  %v6842_v60 = vld [vmem:[%s9282_s3 + $0x590] ss:$8 sps:$4 sm:$0xff]  }
 0x16b   :  { %1596 = vmatpush1.bf16.msra.mxu1 %v6776_v61  ;;  %1452 = vmatprep.subr.bf16.mxu0 %v6781_v62  ;;  %v6847_v61 = vld [vmem:[%s9282_s3 + $0x524] ss:$8 sps:$4 sm:$0xff]  }
 0x16c   :  { %1597 = vmatprep.subr.bf16.mxu1 %v6784_v63  ;;  %v6850_v62 = vld [vmem:[%s9282_s3 + $0x5a4] ss:$8 sps:$4 sm:$0xff]   ;;  %v6845_v63 = vld [vmem:[%s9282_s3 + $0x520] ss:$8 sps:$4 sm:$0xff]  }
 0x16e   :  { %1453 = vmatpush1.bf16.msra.mxu0 %v6779_v5  ;;  %v6854_v5 = vld [vmem:[%s9282_s3 + $0x5b0] ss:$8 sps:$4 sm:$0xff]  }
 0x16f   :  { %1598 = vmatpush1.bf16.msra.mxu1 %v6782_v6  ;;  %1733 = vmatprep.subr.bf16.mxu0 %v6787_v7  ;;  %v6859_v6 = vld [vmem:[%s9282_s3 + $0x544] ss:$8 sps:$4 sm:$0xff]  }
 0x170   :  { %1877 = vmatprep.subr.bf16.mxu1 %v6790_v8  ;;  %v6862_v7 = vld [vmem:[%s9282_s3 + $0x5c4] ss:$8 sps:$4 sm:$0xff]   ;;  %v6857_v8 = vld [vmem:[%s9282_s3 + $0x540] ss:$8 sps:$4 sm:$0xff]  }
 0x171   :  { %1471 = vmatmul.mubr.bf16.vlgmr.msra.gmra.mrb[20].mxu0 %v1356_v13  ;;  %v1921_v13 = vld [vmem:[#allocation2 + $0x10] sm:$0x20] }
 0x172   :  { %1616 = vmatmul.mubr.bf16.vlgmr.msra.gmra.mrb[20].mxu1 %v1501_v14  ;;  %1734 = vmatpush1.bf16.msra.mxu0 %v6785_v11  ;;  %v6868_v11 = vld [vmem:[%s9282_s3 + $0x5d4] ss:$8 sps:$4 sm:$0xff]   ;;  %v6863_v14 = vld [vmem:[%s9282_s3 + $0x550] ss:$8 sps:$4 sm:$0xff]  }
 0x173   :  { %1878 = vmatpush1.bf16.msra.mxu1 %v6788_v12  ;;  %1735 = vmatprep.subr.bf16.mxu0 %v6793_v15  ;;  %v1920_v12 = vld [vmem:[#allocation2] sm:$0x20]  ;;  %v6866_v15 = vld [vmem:[%s9282_s3 + $0x5d0] ss:$8 sps:$4 sm:$0xff]  }
 0x174   :  { %1879 = vmatprep.subr.bf16.mxu1 %v6796_v16  ;;  %1765 = vmatprep.mubr.bf16.mxu0 %v7401_v2  ;;  %v6871_v16 = vld [vmem:[%s9282_s3 + $0x564] ss:$8 sps:$4 sm:$0xff]  }
 0x175   :  { %1909 = vmatprep.mubr.bf16.mxu1 %v7401_v2 }
 0x176   :  { %1736 = vmatpush1.bf16.msra.mxu0 %v6791_v17  ;;  %v6874_v17 = vld [vmem:[%s9282_s3 + $0x5e4] ss:$8 sps:$4 sm:$0xff]  }
 0x177   :  { %1880 = vmatpush1.bf16.msra.mxu1 %v6794_v18  ;;  %1737 = vmatprep.subr.bf16.mxu0 %v6799_v19  ;;  %v1941_v18 = vunpack.c.h.b16 %v1920_v12  ;;  %v1942_v19 = vunpack.c.h.b16 %v1921_v13  ;;  %v6934_v12 = vld [vmem:[%s9282_s3 + $0x784] ss:$8 sps:$4 sm:$0xff]  }
 0x178   :  { %1881 = vmatprep.subr.bf16.mxu1 %v6802_v20  ;;  %v6869_v20 = vld [vmem:[%s9282_s3 + $0x560] ss:$8 sps:$4 sm:$0xff]  }
 0x17a   :  { %1738 = vmatpush1.bf16.msra.mxu0 %v6797_v21  ;;  %v6872_v21 = vld [vmem:[%s9282_s3 + $0x5e0] ss:$8 sps:$4 sm:$0xff]  }
 0x17b   :  { %1882 = vmatpush1.bf16.msra.mxu1 %v6800_v22  ;;  %1739 = vmatprep.subr.bf16.mxu0 %v6805_v23  ;;  %v6877_v22 = vld [vmem:[%s9282_s3 + $0x574] ss:$8 sps:$4 sm:$0xff]  }
 0x17c   :  { %1883 = vmatprep.subr.bf16.mxu1 %v6808_v24  ;;  %v6880_v23 = vld [vmem:[%s9282_s3 + $0x5f4] ss:$8 sps:$4 sm:$0xff]   ;;  %v1943_v24 = vrot.slane %v1941_v18, 2 }
 0x17e   :  { %1740 = vmatpush1.bf16.msra.mxu0 %v6803_v25  ;;  %v1944_v25 = vrot.slane %v1942_v19, 1 }
 0x17f   :  { %1884 = vmatpush1.bf16.msra.mxu1 %v6806_v26  ;;  %1741 = vmatprep.subr.bf16.mxu0 %v6811_v27  ;;  %v2088_v26 = vrot.slane %v1941_v18, 3  ;;  %v2089_v27 = vrot.slane %v1942_v19, 2  ;;  %v6937_v19 = vld [vmem:[%s9282_s3 + $0x714] ss:$8 sps:$4 sm:$0xff]  }
 0x180   :  { %1885 = vmatprep.subr.bf16.mxu1 %v6814_v28  ;;  %v6875_v28 = vld [vmem:[%s9282_s3 + $0x570] ss:$8 sps:$4 sm:$0xff]  }
 0x181   :  { %v2090_v33 = vsel %vm488_vm0, %v2089_v27, %v2088_v26  ;;  %v6944_v26 = vld [vmem:[%s9282_s3 + $0x7a0] ss:$8 sps:$4 sm:$0xff]   ;;  %v6949_v27 = vld [vmem:[%s9282_s3 + $0x734] ss:$8 sps:$4 sm:$0xff]  }
 0x182   :  { %1742 = vmatpush1.bf16.msra.mxu0 %v6809_v29  ;;  %v6878_v29 = vld [vmem:[%s9282_s3 + $0x5f0] ss:$8 sps:$4 sm:$0xff]  }
 0x183   :  { %1886 = vmatpush1.bf16.msra.mxu1 %v6812_v30  ;;  %1743 = vmatprep.subr.bf16.mxu0 %v6817_v31  ;;  %v6883_v30 = vld [vmem:[%s9282_s3 + $0x604] ss:$8 sps:$4 sm:$0xff]  }
 0x184   :  { %1887 = vmatprep.subr.bf16.mxu1 %v6820_v32  ;;  %v6886_v31 = vld [vmem:[%s9282_s3 + $0x684] ss:$8 sps:$4 sm:$0xff]   ;;  %v1945_v32 = vsel %vm488_vm0, %v1944_v25, %v1943_v24  ;;  %v6941_v25 = vld [vmem:[%s9282_s3 + $0x720] ss:$8 sps:$4 sm:$0xff]  }
 0x185   :  { %v6946_v24 = vld [vmem:[%s9282_s3 + $0x7a4] ss:$8 sps:$4 sm:$0xff]  }
 0x186   :  { %1744 = vmatpush1.bf16.msra.mxu0 %v6815_v35  ;;  %v6884_v35 = vld [vmem:[%s9282_s3 + $0x680] ss:$8 sps:$4 sm:$0xff]  }
 0x187   :  { %1888 = vmatpush1.bf16.msra.mxu1 %v6818_v36  ;;  %1745 = vmatprep.subr.bf16.mxu0 %v6823_v37  ;;  %v1946_v36 = vpack.c.b16 %v1945_v32, %v1945_v32  ;;  %v2091_v37 = vpack.c.b16 %v2090_v33, %v2090_v33  ;;  %v6958_v32 = vld [vmem:[%s9282_s3 + $0x7c4] ss:$8 sps:$4 sm:$0xff]   ;;  %v6953_v33 = vld [vmem:[%s9282_s3 + $0x740] ss:$8 sps:$4 sm:$0xff]  }
 0x188   :  { %1889 = vmatprep.subr.bf16.mxu1 %v6826_v38  ;;  %v6889_v38 = vld [vmem:[%s9282_s3 + $0x614] ss:$8 sps:$4 sm:$0xff]  }
 0x18a   :  { %1746 = vmatpush1.bf16.msra.mxu0 %v6821_v41  ;;  %v6890_v41 = vld [vmem:[%s9282_s3 + $0x690] ss:$8 sps:$4 sm:$0xff]  }
 0x18b   :  { %1890 = vmatpush1.bf16.msra.mxu1 %v6824_v42  ;;  %1747 = vmatprep.subr.bf16.mxu0 %v6829_v43  ;;  %v6895_v42 = vld [vmem:[%s9282_s3 + $0x624] ss:$8 sps:$4 sm:$0xff]  }
 0x18c   :  { %1891 = vmatprep.subr.bf16.mxu1 %v6832_v44  ;;  %v6898_v43 = vld [vmem:[%s9282_s3 + $0x6a4] ss:$8 sps:$4 sm:$0xff]   ;;  %v6893_v44 = vld [vmem:[%s9282_s3 + $0x620] ss:$8 sps:$4 sm:$0xff]  }
 0x18e   :  { %1748 = vmatpush1.bf16.msra.mxu0 %v6827_v47  ;;  %v6904_v47 = vld [vmem:[%s9282_s3 + $0x6b4] ss:$8 sps:$4 sm:$0xff]  }
 0x18f   :  { %1892 = vmatpush1.bf16.msra.mxu1 %v6830_v48  ;;  %2028 = vmatprep.subr.bf16.mxu0 %v6835_v49  ;;  %v6899_v48 = vld [vmem:[%s9282_s3 + $0x630] ss:$8 sps:$4 sm:$0xff]  }
 0x190   :  { %2173 = vmatprep.subr.bf16.mxu1 %v6838_v50  ;;  %v6902_v49 = vld [vmem:[%s9282_s3 + $0x6b0] ss:$8 sps:$4 sm:$0xff]   ;;  %v6907_v50 = vld [vmem:[%s9282_s3 + $0x644] ss:$8 sps:$4 sm:$0xff]  }
 0x191   :  { %1766 = vmatmul.mubr.bf16.vlgmr.msra.gmra.mrb[24].mxu0 %v1651_v55  ;;  %v6916_v55 = vld [vmem:[%s9282_s3 + $0x6d4] ss:$8 sps:$4 sm:$0xff]  }
 0x192   :  { %1910 = vmatmul.mubr.bf16.vlgmr.msra.gmra.mrb[24].mxu1 %v1795_v56  ;;  %2029 = vmatpush1.bf16.msra.mxu0 %v6833_v53  ;;  %v6908_v53 = vld [vmem:[%s9282_s3 + $0x6c0] ss:$8 sps:$4 sm:$0xff]   ;;  %v2216_v56 = vld [vmem:[#allocation2] sm:$0x40] }
 0x193   :  { %2174 = vmatpush1.bf16.msra.mxu1 %v6836_v54  ;;  %2030 = vmatprep.subr.bf16.mxu0 %v6841_v57  ;;  %v6913_v54 = vld [vmem:[%s9282_s3 + $0x654] ss:$8 sps:$4 sm:$0xff]  }
 0x194   :  { %2175 = vmatprep.subr.bf16.mxu1 %v6844_v58  ;;  %2060 = vmatprep.mubr.bf16.mxu0 %v7401_v2  ;;  %v2217_v57 = vld [vmem:[#allocation2 + $0x10] sm:$0x40]  ;;  %v6911_v58 = vld [vmem:[%s9282_s3 + $0x650] ss:$8 sps:$4 sm:$0xff]  }
 0x195   :  { %2205 = vmatprep.mubr.bf16.mxu1 %v7401_v2 }
 0x196   :  { %2031 = vmatpush1.bf16.msra.mxu0 %v6839_v59  ;;  %v6914_v59 = vld [vmem:[%s9282_s3 + $0x6d0] ss:$8 sps:$4 sm:$0xff]  }
 0x197   :  { %2176 = vmatpush1.bf16.msra.mxu1 %v6842_v60  ;;  %2032 = vmatprep.subr.bf16.mxu0 %v6847_v61  ;;  %v6919_v60 = vld [vmem:[%s9282_s3 + $0x664] ss:$8 sps:$4 sm:$0xff]  }
 0x198   :  { %2177 = vmatprep.subr.bf16.mxu1 %v6850_v62  ;;  %v6922_v61 = vld [vmem:[%s9282_s3 + $0x6e4] ss:$8 sps:$4 sm:$0xff]   ;;  %v2237_v62 = vunpack.c.h.b16 %v2216_v56 }
 0x19a   :  { %2033 = vmatpush1.bf16.msra.mxu0 %v6845_v63  ;;  %v2238_v63 = vunpack.c.h.b16 %v2217_v57  ;;  %v6973_v57 = vld [vmem:[%s9282_s3 + $0x774] ss:$8 sps:$4 sm:$0xff]  }
 0x19b   :  { %2178 = vmatpush1.bf16.msra.mxu1 %v6848_v0  ;;  %2034 = vmatprep.subr.bf16.mxu0 %v6853_v1  ;;  %v6917_v0 = vld [vmem:[%s9282_s3 + $0x660] ss:$8 sps:$4 sm:$0xff]  }
 0x19c   :  { %2179 = vmatprep.subr.bf16.mxu1 %v6856_v3  ;;  %v6920_v1 = vld [vmem:[%s9282_s3 + $0x6e0] ss:$8 sps:$4 sm:$0xff]   ;;  %v6925_v3 = vld [vmem:[%s9282_s3 + $0x674] ss:$8 sps:$4 sm:$0xff]  }
 0x19e   :  { %2035 = vmatpush1.bf16.msra.mxu0 %v6851_v4  ;;  %v6928_v4 = vld [vmem:[%s9282_s3 + $0x6f4] ss:$8 sps:$4 sm:$0xff]  }
 0x19f   :  { %2180 = vmatpush1.bf16.msra.mxu1 %v6854_v5  ;;  %2036 = vmatprep.subr.bf16.mxu0 %v6859_v6  ;;  %v2239_v5 = vrot.slane %v2237_v62, 4  ;;  %v2240_v6 = vrot.slane %v2238_v63, 3 }
 0x1a0   :  { %2181 = vmatprep.subr.bf16.mxu1 %v6862_v7  ;;  %v2384_v7 = vrot.slane %v2237_v62, 5 }
 0x1a1   :  { %v2241_v13 = vsel %vm488_vm0, %v2240_v6, %v2239_v5  ;;  %v6977_v6 = vld [vmem:[%s9282_s3 + $0x800] ss:$8 sps:$4 sm:$0xff]  }
 0x1a2   :  { %2037 = vmatpush1.bf16.msra.mxu0 %v6857_v8  ;;  %v2385_v8 = vrot.slane %v2238_v63, 4  ;;  %v6971_v63 = vld [vmem:[%s9282_s3 + $0x770] ss:$8 sps:$4 sm:$0xff]  }
 0x1a3   :  { %2182 = vmatpush1.bf16.msra.mxu1 %v6860_v9  ;;  %2038 = vmatprep.subr.bf16.mxu0 %v6865_v10  ;;  %v6923_v9 = vld [vmem:[%s9282_s3 + $0x670] ss:$8 sps:$4 sm:$0xff]  }
 0x1a4   :  { %2183 = vmatprep.subr.bf16.mxu1 %v6868_v11  ;;  %v6926_v10 = vld [vmem:[%s9282_s3 + $0x6f0] ss:$8 sps:$4 sm:$0xff]   ;;  %v6931_v11 = vld [vmem:[%s9282_s3 + $0x704] ss:$8 sps:$4 sm:$0xff]  }
 0x1a6   :  { %2039 = vmatpush1.bf16.msra.mxu0 %v6863_v14  ;;  %v2386_v14 = vsel %vm488_vm0, %v2385_v8, %v2384_v7  ;;  %v6980_v7 = vld [vmem:[%s9282_s3 + $0x880] ss:$8 sps:$4 sm:$0xff]  }
 0x1a7   :  { %2184 = vmatpush1.bf16.msra.mxu1 %v6866_v15  ;;  %2040 = vmatprep.subr.bf16.mxu0 %v6871_v16  ;;  %v6929_v15 = vld [vmem:[%s9282_s3 + $0x700] ss:$8 sps:$4 sm:$0xff]   ;;  %v2387_v18 = vpack.c.b16 %v2386_v14, %v2386_v14  ;;  %v6991_v14 = vld [vmem:[%s9282_s3 + $0x824] ss:$8 sps:$4 sm:$0xff]  }
 0x1a8   :  { %2185 = vmatprep.subr.bf16.mxu1 %v6874_v17  ;;  %v6932_v16 = vld [vmem:[%s9282_s3 + $0x780] ss:$8 sps:$4 sm:$0xff]   ;;  %v2242_v17 = vpack.c.b16 %v2241_v13, %v2241_v13  ;;  %v6986_v13 = vld [vmem:[%s9282_s3 + $0x890] ss:$8 sps:$4 sm:$0xff]  }
 0x1aa   :  { %2041 = vmatpush1.bf16.msra.mxu0 %v6869_v20  ;;  %v6940_v20 = vld [vmem:[%s9282_s3 + $0x794] ss:$8 sps:$4 sm:$0xff]  }
 0x1ab   :  { %2186 = vmatpush1.bf16.msra.mxu1 %v6872_v21  ;;  %2042 = vmatprep.subr.bf16.mxu0 %v6877_v22  ;;  %v6935_v21 = vld [vmem:[%s9282_s3 + $0x710] ss:$8 sps:$4 sm:$0xff]  }
 0x1ac   :  { %2187 = vmatprep.subr.bf16.mxu1 %v6880_v23  ;;  %v6938_v22 = vld [vmem:[%s9282_s3 + $0x790] ss:$8 sps:$4 sm:$0xff]   ;;  %v6943_v23 = vld [vmem:[%s9282_s3 + $0x724] ss:$8 sps:$4 sm:$0xff]  }
 0x1ae   :  { %2043 = vmatpush1.bf16.msra.mxu0 %v6875_v28  ;;  %v6952_v28 = vld [vmem:[%s9282_s3 + $0x7b4] ss:$8 sps:$4 sm:$0xff]  }
 0x1af   :  { %2188 = vmatpush1.bf16.msra.mxu1 %v6878_v29  ;;  %2324 = vmatprep.subr.bf16.mxu0 %v6883_v30  ;;  %v6947_v29 = vld [vmem:[%s9282_s3 + $0x730] ss:$8 sps:$4 sm:$0xff]  }
 0x1b0   :  { %2469 = vmatprep.subr.bf16.mxu1 %v6886_v31  ;;  %v6950_v30 = vld [vmem:[%s9282_s3 + $0x7b0] ss:$8 sps:$4 sm:$0xff]   ;;  %v6955_v31 = vld [vmem:[%s9282_s3 + $0x744] ss:$8 sps:$4 sm:$0xff]  }
 0x1b1   :  { %2061 = vmatmul.mubr.bf16.vlgmr.msra.gmra.mrb[28].mxu0 %v1946_v36  ;;  %v6964_v36 = vld [vmem:[%s9282_s3 + $0x7d4] ss:$8 sps:$4 sm:$0xff]  }
 0x1b2   :  { %2206 = vmatmul.mubr.bf16.vlgmr.msra.gmra.mrb[28].mxu1 %v2091_v37  ;;  %2325 = vmatpush1.bf16.msra.mxu0 %v6881_v34  ;;  %v6956_v34 = vld [vmem:[%s9282_s3 + $0x7c0] ss:$8 sps:$4 sm:$0xff]   ;;  %v2512_v37 = vld [vmem:[#allocation2] sm:$0x80] }
 0x1b3   :  { %2470 = vmatpush1.bf16.msra.mxu1 %v6884_v35  ;;  %2326 = vmatprep.subr.bf16.mxu0 %v6889_v38  ;;  %v6961_v35 = vld [vmem:[%s9282_s3 + $0x754] ss:$8 sps:$4 sm:$0xff]  }
 0x1b4   :  { %2471 = vmatprep.subr.bf16.mxu1 %v6892_v39  ;;  %2356 = vmatprep.mubr.bf16.mxu0 %v7401_v2  ;;  %v2513_v38 = vld [vmem:[#allocation2 + $0x10] sm:$0x80]  ;;  %v6959_v39 = vld [vmem:[%s9282_s3 + $0x750] ss:$8 sps:$4 sm:$0xff]  }
 0x1b5   :  { %2501 = vmatprep.mubr.bf16.mxu1 %v7401_v2 }
 0x1b6   :  { %2327 = vmatpush1.bf16.msra.mxu0 %v6887_v40  ;;  %v6962_v40 = vld [vmem:[%s9282_s3 + $0x7d0] ss:$8 sps:$4 sm:$0xff]  }
 0x1b7   :  { %2472 = vmatpush1.bf16.msra.mxu1 %v6890_v41  ;;  %2328 = vmatprep.subr.bf16.mxu0 %v6895_v42  ;;  %v6967_v41 = vld [vmem:[%s9282_s3 + $0x764] ss:$8 sps:$4 sm:$0xff]  }
 0x1b8   :  { %2473 = vmatprep.subr.bf16.mxu1 %v6898_v43  ;;  %v6970_v42 = vld [vmem:[%s9282_s3 + $0x7e4] ss:$8 sps:$4 sm:$0xff]  }
 0x1ba   :  { %2329 = vmatpush1.bf16.msra.mxu0 %v6893_v44 }
 0x1bb   :  { %2474 = vmatpush1.bf16.msra.mxu1 %v6896_v45  ;;  %2330 = vmatprep.subr.bf16.mxu0 %v6901_v46  ;;  %v2533_v45 = vunpack.c.h.b16 %v2512_v37  ;;  %v2534_v46 = vunpack.c.h.b16 %v2513_v38 }
 0x1bc   :  { %2475 = vmatprep.subr.bf16.mxu1 %v6904_v47 }
 0x1bd   :  { %v2681_v62 = vrot.slane %v2534_v46, 6 }
 0x1be   :  { %2331 = vmatpush1.bf16.msra.mxu0 %v6899_v48 }
 0x1bf   :  { %2476 = vmatpush1.bf16.msra.mxu1 %v6902_v49  ;;  %2332 = vmatprep.subr.bf16.mxu0 %v6907_v50 }
 0x1c0   :  { %2477 = vmatprep.subr.bf16.mxu1 %v6910_v51 }
 0x1c2   :  { %2333 = vmatpush1.bf16.msra.mxu0 %v6905_v52 }
 0x1c3   :  { %2478 = vmatpush1.bf16.msra.mxu1 %v6908_v53  ;;  %2334 = vmatprep.subr.bf16.mxu0 %v6913_v54  ;;  %v6965_v53 = vld [vmem:[%s9282_s3 + $0x760] ss:$8 sps:$4 sm:$0xff]  }
 0x1c4   :  { %2479 = vmatprep.subr.bf16.mxu1 %v6916_v55  ;;  %v6968_v54 = vld [vmem:[%s9282_s3 + $0x7e0] ss:$8 sps:$4 sm:$0xff]  }
 0x1c6   :  { %2335 = vmatpush1.bf16.msra.mxu0 %v6911_v58  ;;  %v6976_v58 = vld [vmem:[%s9282_s3 + $0x7f4] ss:$8 sps:$4 sm:$0xff]  }
 0x1c7   :  { %2480 = vmatpush1.bf16.msra.mxu1 %v6914_v59  ;;  %2336 = vmatprep.subr.bf16.mxu0 %v6919_v60  ;;  %v2535_v59 = vrot.slane %v2533_v45, 6  ;;  %v2536_v60 = vrot.slane %v2534_v46, 5 }
 0x1c8   :  { %2481 = vmatprep.subr.bf16.mxu1 %v6922_v61  ;;  %v2680_v61 = vrot.slane %v2533_v45, 7  ;;  %v7016_v45 = vld [vmem:[%s9282_s3 + $0x8e0] ss:$8 sps:$4 sm:$0xff]  }
 0x1ca   :  { %2337 = vmatpush1.bf16.msra.mxu0 %v6917_v0  ;;  %v6974_v0 = vld [vmem:[%s9282_s3 + $0x7f0] ss:$8 sps:$4 sm:$0xff]   ;;  %v2682_v5 = vsel %vm488_vm0, %v2681_v62, %v2680_v61  ;;  %v7028_v61 = vld [vmem:[%s9282_s3 + $0x980] ss:$8 sps:$4 sm:$0xff]  }
 0x1cb   :  { %2482 = vmatpush1.bf16.msra.mxu1 %v6920_v1  ;;  %2338 = vmatprep.subr.bf16.mxu0 %v6925_v3  ;;  %v6979_v1 = vld [vmem:[%s9282_s3 + $0x804] ss:$8 sps:$4 sm:$0xff]  }
 0x1cc   :  { %2483 = vmatprep.subr.bf16.mxu1 %v6928_v4  ;;  %v6982_v3 = vld [vmem:[%s9282_s3 + $0x884] ss:$8 sps:$4 sm:$0xff]   ;;  %v2537_v4 = vsel %vm488_vm0, %v2536_v60, %v2535_v59  ;;  %v7025_v60 = vld [vmem:[%s9282_s3 + $0x900] ss:$8 sps:$4 sm:$0xff]  }
 0x1cd   :  { %v2538_v8 = vpack.c.b16 %v2537_v4, %v2537_v4  ;;  %v7034_v4 = vld [vmem:[%s9282_s3 + $0x990] ss:$8 sps:$4 sm:$0xff]  }
 0x1ce   :  { %2339 = vmatpush1.bf16.msra.mxu0 %v6923_v9  ;;  %v2683_v9 = vpack.c.b16 %v2682_v5, %v2682_v5  ;;  %v7039_v5 = vld [vmem:[%s9282_s3 + $0x924] ss:$8 sps:$4 sm:$0xff]  }
 0x1cf   :  { %2484 = vmatpush1.bf16.msra.mxu1 %v6926_v10  ;;  %2620 = vmatprep.subr.bf16.mxu0 %v6931_v11  ;;  %v6985_v10 = vld [vmem:[%s9282_s3 + $0x814] ss:$8 sps:$4 sm:$0xff]  }
 0x1d0   :  { %2765 = vmatprep.subr.bf16.mxu1 %v6934_v12  ;;  %v6988_v11 = vld [vmem:[%s9282_s3 + $0x894] ss:$8 sps:$4 sm:$0xff]   ;;  %v6983_v12 = vld [vmem:[%s9282_s3 + $0x810] ss:$8 sps:$4 sm:$0xff]  }
 0x1d1   :  { %2357 = vmatmul.mubr.bf16.vlgmr.msra.gmra.mrb[32].mxu0 %v2242_v17  ;;  %v6992_v17 = vld [vmem:[%s9282_s3 + $0x8a0] ss:$8 sps:$4 sm:$0xff]  }
 0x1d2   :  { %2502 = vmatmul.mubr.bf16.vlgmr.msra.gmra.mrb[32].mxu1 %v2387_v18  ;;  %2621 = vmatpush1.bf16.msra.mxu0 %v6929_v15  ;;  %v6994_v15 = vld [vmem:[%s9282_s3 + $0x8a4] ss:$8 sps:$4 sm:$0xff]   ;;  %v6997_v18 = vld [vmem:[%s9282_s3 + $0x834] ss:$8 sps:$4 sm:$0xff]  }
 0x1d3   :  { %2766 = vmatpush1.bf16.msra.mxu1 %v6932_v16  ;;  %2622 = vmatprep.subr.bf16.mxu0 %v6937_v19  ;;  %v6989_v16 = vld [vmem:[%s9282_s3 + $0x820] ss:$8 sps:$4 sm:$0xff]   ;;  %v7000_v19 = vld [vmem:[%s9282_s3 + $0x8b4] ss:$8 sps:$4 sm:$0xff]  }
 0x1d4   :  { %2767 = vmatprep.subr.bf16.mxu1 %v6940_v20  ;;  %2652 = vmatprep.mubr.bf16.mxu0 %v7401_v2  ;;  %v6995_v20 = vld [vmem:[%s9282_s3 + $0x830] ss:$8 sps:$4 sm:$0xff]  }
 0x1d5   :  { %2797 = vmatprep.mubr.bf16.mxu1 %v7401_v2 }
 0x1d6   :  { %2623 = vmatpush1.bf16.msra.mxu0 %v6935_v21  ;;  %v6998_v21 = vld [vmem:[%s9282_s3 + $0x8b0] ss:$8 sps:$4 sm:$0xff]  }
 0x1d7   :  { %2768 = vmatpush1.bf16.msra.mxu1 %v6938_v22  ;;  %2624 = vmatprep.subr.bf16.mxu0 %v6943_v23  ;;  %v7003_v22 = vld [vmem:[%s9282_s3 + $0x844] ss:$8 sps:$4 sm:$0xff]  }
 0x1d8   :  { %2769 = vmatprep.subr.bf16.mxu1 %v6946_v24  ;;  %v7006_v23 = vld [vmem:[%s9282_s3 + $0x8c4] ss:$8 sps:$4 sm:$0xff]   ;;  %v7001_v24 = vld [vmem:[%s9282_s3 + $0x840] ss:$8 sps:$4 sm:$0xff]  }
 0x1da   :  { %2625 = vmatpush1.bf16.msra.mxu0 %v6941_v25  ;;  %v7004_v25 = vld [vmem:[%s9282_s3 + $0x8c0] ss:$8 sps:$4 sm:$0xff]  }
 0x1db   :  { %2770 = vmatpush1.bf16.msra.mxu1 %v6944_v26  ;;  %2626 = vmatprep.subr.bf16.mxu0 %v6949_v27  ;;  %v7009_v26 = vld [vmem:[%s9282_s3 + $0x854] ss:$8 sps:$4 sm:$0xff]  }
 0x1dc   :  { %2771 = vmatprep.subr.bf16.mxu1 %v6952_v28  ;;  %v7012_v27 = vld [vmem:[%s9282_s3 + $0x8d4] ss:$8 sps:$4 sm:$0xff]   ;;  %v2808_v28 = vld [vmem:[#allocation2 + $0x8] sm:$0x1] }
 0x1de   :  { %2627 = vmatpush1.bf16.msra.mxu0 %v6947_v29  ;;  %v2809_v29 = vld [vmem:[#allocation2 + $0x18] sm:$0x1] }
 0x1df   :  { %2772 = vmatpush1.bf16.msra.mxu1 %v6950_v30  ;;  %2628 = vmatprep.subr.bf16.mxu0 %v6955_v31  ;;  %v7007_v30 = vld [vmem:[%s9282_s3 + $0x850] ss:$8 sps:$4 sm:$0xff]   ;;  %v2830_v37 = vunpack.c.l.b16 %v2809_v29 }
 0x1e0   :  { %2773 = vmatprep.subr.bf16.mxu1 %v6958_v32  ;;  %v7010_v31 = vld [vmem:[%s9282_s3 + $0x8d0] ss:$8 sps:$4 sm:$0xff]   ;;  %v7015_v32 = vld [vmem:[%s9282_s3 + $0x864] ss:$8 sps:$4 sm:$0xff]  }
 0x1e2   :  { %2629 = vmatpush1.bf16.msra.mxu0 %v6953_v33  ;;  %v7018_v33 = vld [vmem:[%s9282_s3 + $0x8e4] ss:$8 sps:$4 sm:$0xff]  }
 0x1e3   :  { %2774 = vmatpush1.bf16.msra.mxu1 %v6956_v34  ;;  %2630 = vmatprep.subr.bf16.mxu0 %v6961_v35 }
 0x1e4   :  { %2775 = vmatprep.subr.bf16.mxu1 %v6964_v36  ;;  %v606_v43 = vpop.f32.mrb[8].mxu0  ;;  %v2829_v36 = vunpack.c.l.b16 %v2808_v28 }
 0x1e5   :  { %v731_v44 = vpop.f32.mrb[8].mxu1  ;;  %v608_v48 = vpop.f32.mrb[9].mxu0 }
 0x1e6   :  { %v8345_v47 = vadd.f32 %v731_v44, %v606_v43  ;;  %v733_v49 = vpop.f32.mrb[9].mxu1  ;;  %2631 = vmatpush1.bf16.msra.mxu0 %v6959_v39  ;;  %v610_v51 = vpop.f32.mrb[10].mxu0  ;;  %v7013_v44 = vld [vmem:[%s9282_s3 + $0x860] ss:$8 sps:$4 sm:$0xff]  }
 0x1e7   :  { %v8347_v50 = vadd.f32 %v733_v49, %v608_v48  ;;  %2776 = vmatpush1.bf16.msra.mxu1 %v6962_v40  ;;  %v735_v52 = vpop.f32.mrb[10].mxu1  ;;  %v611_v55 = vpop.f32.mrb[11].mxu0  ;;  %2632 = vmatprep.subr.bf16.mxu0 %v6967_v41  ;;  %v7021_v49 = vld [vmem:[%s9282_s3 + $0x874] ss:$8 sps:$4 sm:$0xff]  }
 0x1e8   :  { %v736_v56 = vpop.f32.mrb[11].mxu1  ;;  %2777 = vmatprep.subr.bf16.mxu1 %v6970_v42  ;;  %v2831_v52 = vrot.slane %v2830_v37, 7  ;;  %v7022_v55 = vld [vmem:[%s9282_s3 + $0x8f0] ss:$8 sps:$4 sm:$0xff]  }
 0x1e9   :  { %v7027_v56 = vld [vmem:[%s9282_s3 + $0x904] ss:$8 sps:$4 sm:$0xff]  }
 0x1ea   :  { %2633 = vmatpush1.bf16.msra.mxu0 %v6965_v53  ;;  %v2975_v53 = vrot.slane %v2829_v36, 1 }
 0x1eb   :  { %2778 = vmatpush1.bf16.msra.mxu1 %v6968_v54  ;;  %2634 = vmatprep.subr.bf16.mxu0 %v6973_v57  ;;  %v7019_v54 = vld [vmem:[%s9282_s3 + $0x870] ss:$8 sps:$4 sm:$0xff]   ;;  %v7030_v57 = vld [vmem:[%s9282_s3 + $0x984] ss:$8 sps:$4 sm:$0xff]  }
 0x1ec   :  { %2779 = vmatprep.subr.bf16.mxu1 %v6976_v58  ;;  %v2832_v58 = vsel %vm488_vm0, %v2831_v52, %v2829_v36  ;;  %v2976_v59 = vsel %vm488_vm0, %v2830_v37, %v2975_v53  ;;  %v7061_v36 = vld [vmem:[%s9282_s3 + $0x960] ss:$8 sps:$4 sm:$0xff]  }
 0x1ed   :  { %v2833_v62 = vpack.c.b16 %v2832_v58, %v2832_v58  ;;  %v7064_v37 = vld [vmem:[%s9282_s3 + $0x9e0] ss:$8 sps:$4 sm:$0xff]   ;;  %v7084_v58 = vld [vmem:[%s9282_s3 + $0xa94] ss:$8 sps:$4 sm:$0xff]  }
 0x1ee   :  { %2635 = vmatpush1.bf16.msra.mxu0 %v6971_v63  ;;  %v2977_v63 = vpack.c.b16 %v2976_v59, %v2976_v59  ;;  %v7073_v53 = vld [vmem:[%s9282_s3 + $0xa00] ss:$8 sps:$4 sm:$0xff]   ;;  %v7079_v59 = vld [vmem:[%s9282_s3 + $0xa10] ss:$8 sps:$4 sm:$0xff]  }
 0x1ef   :  { %2780 = vmatpush1.bf16.msra.mxu1 %v6974_v0  ;;  %2915 = vmatprep.subr.bf16.mxu0 %v6979_v1  ;;  %v7033_v0 = vld [vmem:[%s9282_s3 + $0x914] ss:$8 sps:$4 sm:$0xff]  }
 0x1f0   :  { %3059 = vmatprep.subr.bf16.mxu1 %v6982_v3  ;;  %v7036_v1 = vld [vmem:[%s9282_s3 + $0x994] ss:$8 sps:$4 sm:$0xff]   ;;  %v7031_v3 = vld [vmem:[%s9282_s3 + $0x910] ss:$8 sps:$4 sm:$0xff]  }
 0x1f1   :  { %2653 = vmatmul.mubr.bf16.vlgmr.msra.gmra.mrb[36].mxu0 %v2538_v8  ;;  %v7040_v8 = vld [vmem:[%s9282_s3 + $0x9a0] ss:$8 sps:$4 sm:$0xff]  }
 0x1f2   :  { %2798 = vmatmul.mubr.bf16.vlgmr.msra.gmra.mrb[36].mxu1 %v2683_v9  ;;  %2916 = vmatpush1.bf16.msra.mxu0 %v6977_v6  ;;  %v7042_v6 = vld [vmem:[%s9282_s3 + $0x9a4] ss:$8 sps:$4 sm:$0xff]   ;;  %v7045_v9 = vld [vmem:[%s9282_s3 + $0x934] ss:$8 sps:$4 sm:$0xff]  }
 0x1f3   :  { %3060 = vmatpush1.bf16.msra.mxu1 %v6980_v7  ;;  %2917 = vmatprep.subr.bf16.mxu0 %v6985_v10  ;;  %v7037_v7 = vld [vmem:[%s9282_s3 + $0x920] ss:$8 sps:$4 sm:$0xff]   ;;  %v7048_v10 = vld [vmem:[%s9282_s3 + $0x9b4] ss:$8 sps:$4 sm:$0xff]  }
 0x1f4   :  { %3061 = vmatprep.subr.bf16.mxu1 %v6988_v11  ;;  %2947 = vmatprep.mubr.bf16.mxu0 %v7401_v2  ;;  %v7043_v11 = vld [vmem:[%s9282_s3 + $0x930] ss:$8 sps:$4 sm:$0xff]  }
 0x1f5   :  { %3091 = vmatprep.mubr.bf16.mxu1 %v7401_v2 }
 0x1f6   :  { %2918 = vmatpush1.bf16.msra.mxu0 %v6983_v12  ;;  %v7046_v12 = vld [vmem:[%s9282_s3 + $0x9b0] ss:$8 sps:$4 sm:$0xff]  }
 0x1f7   :  { %3062 = vmatpush1.bf16.msra.mxu1 %v6986_v13  ;;  %2919 = vmatprep.subr.bf16.mxu0 %v6991_v14  ;;  %v7051_v13 = vld [vmem:[%s9282_s3 + $0x944] ss:$8 sps:$4 sm:$0xff]  }
 0x1f8   :  { %3063 = vmatprep.subr.bf16.mxu1 %v6994_v15  ;;  %v7054_v14 = vld [vmem:[%s9282_s3 + $0x9c4] ss:$8 sps:$4 sm:$0xff]   ;;  %v7049_v15 = vld [vmem:[%s9282_s3 + $0x940] ss:$8 sps:$4 sm:$0xff]  }
 0x1fa   :  { %2920 = vmatpush1.bf16.msra.mxu0 %v6989_v16  ;;  %v7052_v16 = vld [vmem:[%s9282_s3 + $0x9c0] ss:$8 sps:$4 sm:$0xff]  }
 0x1fb   :  { %3064 = vmatpush1.bf16.msra.mxu1 %v6992_v17  ;;  %2921 = vmatprep.subr.bf16.mxu0 %v6997_v18  ;;  %v3102_v17 = vld [vmem:[#allocation2 + $0x8] sm:$0x2]  ;;  %v7057_v18 = vld [vmem:[%s9282_s3 + $0x954] ss:$8 sps:$4 sm:$0xff]  }
 0x1fc   :  { %3065 = vmatprep.subr.bf16.mxu1 %v7000_v19  ;;  %v7060_v19 = vld [vmem:[%s9282_s3 + $0x9d4] ss:$8 sps:$4 sm:$0xff]  }
 0x1fe   :  { %2922 = vmatpush1.bf16.msra.mxu0 %v6995_v20  ;;  %v3103_v20 = vld [vmem:[#allocation2 + $0x18] sm:$0x2] }
 0x1ff   :  { %3066 = vmatpush1.bf16.msra.mxu1 %v6998_v21  ;;  %2923 = vmatprep.subr.bf16.mxu0 %v7003_v22  ;;  %v3123_v21 = vunpack.c.l.b16 %v3102_v17  ;;  %v7055_v22 = vld [vmem:[%s9282_s3 + $0x950] ss:$8 sps:$4 sm:$0xff]   ;;  %v3124_v28 = vunpack.c.l.b16 %v3103_v20  ;;  %v7111_v17 = vld [vmem:[%s9282_s3 + $0xa64] ss:$8 sps:$4 sm:$0xff]  }
 0x200   :  { %3067 = vmatprep.subr.bf16.mxu1 %v7006_v23  ;;  %v7058_v23 = vld [vmem:[%s9282_s3 + $0x9d0] ss:$8 sps:$4 sm:$0xff]  }
 0x202   :  { %2924 = vmatpush1.bf16.msra.mxu0 %v7001_v24  ;;  %v7063_v24 = vld [vmem:[%s9282_s3 + $0x964] ss:$8 sps:$4 sm:$0xff]  }
 0x203   :  { %3068 = vmatpush1.bf16.msra.mxu1 %v7004_v25  ;;  %2925 = vmatprep.subr.bf16.mxu0 %v7009_v26  ;;  %v7066_v25 = vld [vmem:[%s9282_s3 + $0x9e4] ss:$8 sps:$4 sm:$0xff]  }
 0x204   :  { %3069 = vmatprep.subr.bf16.mxu1 %v7012_v27  ;;  %v880_v34 = vpop.f32.mrb[12].mxu0 }
 0x205   :  { %v1025_v35 = vpop.f32.mrb[12].mxu1  ;;  %v887_v38 = vadd.f32 %v880_v34, %v8345_v47  ;;  %v882_v39 = vpop.f32.mrb[13].mxu0 }
 0x206   :  { %v1027_v40 = vpop.f32.mrb[13].mxu1  ;;  %v888_v41 = vadd.f32 %v882_v39, %v8347_v50  ;;  %v884_v42 = vpop.f32.mrb[14].mxu0  ;;  %2926 = vmatpush1.bf16.msra.mxu0 %v7007_v30  ;;  %v7024_v50 = vld [vmem:[%s9282_s3 + $0x8f4] ss:$8 sps:$4 sm:$0xff]  }
 0x207   :  { %v1029_v43 = vpop.f32.mrb[14].mxu1  ;;  %3070 = vmatpush1.bf16.msra.mxu1 %v7010_v31  ;;  %v8457_v46 = vadd.f32 %v1025_v35, %v887_v38  ;;  %v885_v48 = vpop.f32.mrb[15].mxu0  ;;  %2927 = vmatprep.subr.bf16.mxu0 %v7015_v32  ;;  %v3125_v32 = vrot.slane %v3123_v21, 2  ;;  %v7072_v42 = vld [vmem:[%s9282_s3 + $0x9f4] ss:$8 sps:$4 sm:$0xff]  }
 0x208   :  { %v1030_v47 = vpop.f32.mrb[15].mxu1  ;;  %3071 = vmatprep.subr.bf16.mxu1 %v7018_v33  ;;  %v8465_v51 = vadd.f32 %v1027_v40, %v888_v41  ;;  %v7069_v41 = vld [vmem:[%s9282_s3 + $0x974] ss:$8 sps:$4 sm:$0xff]   ;;  %v7067_v48 = vld [vmem:[%s9282_s3 + $0x970] ss:$8 sps:$4 sm:$0xff]  }
 0x209   :  { %v7070_v47 = vld [vmem:[%s9282_s3 + $0x9f0] ss:$8 sps:$4 sm:$0xff]  }
 0x20a   :  { %2928 = vmatpush1.bf16.msra.mxu0 %v7013_v44  ;;  %v3126_v44 = vrot.slane %v3124_v28, 1 }
 0x20b   :  { %3072 = vmatpush1.bf16.msra.mxu1 %v7016_v45  ;;  %2929 = vmatprep.subr.bf16.mxu0 %v7021_v49  ;;  %v3270_v45 = vrot.slane %v3123_v21, 3  ;;  %v7075_v49 = vld [vmem:[%s9282_s3 + $0xa04] ss:$8 sps:$4 sm:$0xff]  }
 0x20c   :  { %3073 = vmatprep.subr.bf16.mxu1 %v7024_v50  ;;  %v7078_v50 = vld [vmem:[%s9282_s3 + $0xa84] ss:$8 sps:$4 sm:$0xff]  }
 0x20e   :  { %2930 = vmatpush1.bf16.msra.mxu0 %v7019_v54  ;;  %v7076_v54 = vld [vmem:[%s9282_s3 + $0xa80] ss:$8 sps:$4 sm:$0xff]  }
 0x20f   :  { %3074 = vmatpush1.bf16.msra.mxu1 %v7022_v55  ;;  %3210 = vmatprep.subr.bf16.mxu0 %v7027_v56 }
 0x210   :  { %3355 = vmatprep.subr.bf16.mxu1 %v7030_v57  ;;  %v7081_v57 = vld [vmem:[%s9282_s3 + $0xa14] ss:$8 sps:$4 sm:$0xff]  }
 0x211   :  { %2948 = vmatmul.mubr.bf16.vlgmr.msra.gmra.mrb[40].mxu0 %v2833_v62  ;;  %v7090_v62 = vld [vmem:[%s9282_s3 + $0xaa4] ss:$8 sps:$4 sm:$0xff]  }
 0x212   :  { %3092 = vmatmul.mubr.bf16.vlgmr.msra.gmra.mrb[40].mxu1 %v2977_v63  ;;  %3211 = vmatpush1.bf16.msra.mxu0 %v7025_v60  ;;  %v7082_v60 = vld [vmem:[%s9282_s3 + $0xa90] ss:$8 sps:$4 sm:$0xff]   ;;  %v7085_v63 = vld [vmem:[%s9282_s3 + $0xa20] ss:$8 sps:$4 sm:$0xff]  }
 0x213   :  { %3356 = vmatpush1.bf16.msra.mxu1 %v7028_v61  ;;  %3212 = vmatprep.subr.bf16.mxu0 %v7033_v0  ;;  %v7087_v61 = vld [vmem:[%s9282_s3 + $0xa24] ss:$8 sps:$4 sm:$0xff]   ;;  %v7088_v0 = vld [vmem:[%s9282_s3 + $0xaa0] ss:$8 sps:$4 sm:$0xff]  }
 0x214   :  { %3357 = vmatprep.subr.bf16.mxu1 %v7036_v1  ;;  %3242 = vmatprep.mubr.bf16.mxu0 %v7401_v2  ;;  %v7093_v1 = vld [vmem:[%s9282_s3 + $0xa34] ss:$8 sps:$4 sm:$0xff]  }
 0x215   :  { %3387 = vmatprep.mubr.bf16.mxu1 %v7401_v2 }
 0x216   :  { %3213 = vmatpush1.bf16.msra.mxu0 %v7031_v3  ;;  %v7096_v3 = vld [vmem:[%s9282_s3 + $0xab4] ss:$8 sps:$4 sm:$0xff]  }
 0x217   :  { %3358 = vmatpush1.bf16.msra.mxu1 %v7034_v4  ;;  %3214 = vmatprep.subr.bf16.mxu0 %v7039_v5  ;;  %v7091_v4 = vld [vmem:[%s9282_s3 + $0xa30] ss:$8 sps:$4 sm:$0xff]  }
 0x218   :  { %3359 = vmatprep.subr.bf16.mxu1 %v7042_v6  ;;  %v7094_v5 = vld [vmem:[%s9282_s3 + $0xab0] ss:$8 sps:$4 sm:$0xff]   ;;  %v7099_v6 = vld [vmem:[%s9282_s3 + $0xa44] ss:$8 sps:$4 sm:$0xff]  }
 0x21a   :  { %3215 = vmatpush1.bf16.msra.mxu0 %v7037_v7  ;;  %v7102_v7 = vld [vmem:[%s9282_s3 + $0xac4] ss:$8 sps:$4 sm:$0xff]  }
 0x21b   :  { %3360 = vmatpush1.bf16.msra.mxu1 %v7040_v8  ;;  %3216 = vmatprep.subr.bf16.mxu0 %v7045_v9  ;;  %v7097_v8 = vld [vmem:[%s9282_s3 + $0xa40] ss:$8 sps:$4 sm:$0xff]  }
 0x21c   :  { %3361 = vmatprep.subr.bf16.mxu1 %v7048_v10  ;;  %v7100_v9 = vld [vmem:[%s9282_s3 + $0xac0] ss:$8 sps:$4 sm:$0xff]  }
 0x21d   :  { %v3398_v10 = vld [vmem:[#allocation2 + $0x8] sm:$0x4] }
 0x21e   :  { %3217 = vmatpush1.bf16.msra.mxu0 %v7043_v11  ;;  %v7105_v11 = vld [vmem:[%s9282_s3 + $0xa54] ss:$8 sps:$4 sm:$0xff]  }
 0x21f   :  { %3362 = vmatpush1.bf16.msra.mxu1 %v7046_v12  ;;  %3218 = vmatprep.subr.bf16.mxu0 %v7051_v13  ;;  %v7108_v12 = vld [vmem:[%s9282_s3 + $0xad4] ss:$8 sps:$4 sm:$0xff]   ;;  %v3399_v13 = vld [vmem:[#allocation2 + $0x18] sm:$0x4] }
 0x220   :  { %3363 = vmatprep.subr.bf16.mxu1 %v7054_v14  ;;  %v3419_v14 = vunpack.c.l.b16 %v3398_v10  ;;  %v3420_v21 = vunpack.c.l.b16 %v3399_v13  ;;  %v7159_v10 = vld [vmem:[%s9282_s3 + $0xb64] ss:$8 sps:$4 sm:$0xff]  }
 0x222   :  { %3219 = vmatpush1.bf16.msra.mxu0 %v7049_v15  ;;  %v7103_v15 = vld [vmem:[%s9282_s3 + $0xa50] ss:$8 sps:$4 sm:$0xff]  }
 0x223   :  { %3364 = vmatpush1.bf16.msra.mxu1 %v7052_v16  ;;  %3220 = vmatprep.subr.bf16.mxu0 %v7057_v18  ;;  %v7106_v16 = vld [vmem:[%s9282_s3 + $0xad0] ss:$8 sps:$4 sm:$0xff]   ;;  %v7114_v18 = vld [vmem:[%s9282_s3 + $0xae4] ss:$8 sps:$4 sm:$0xff]  }
 0x224   :  { %3365 = vmatprep.subr.bf16.mxu1 %v7060_v19  ;;  %v1176_v26 = vpop.f32.mrb[16].mxu0 }
 0x225   :  { %v1321_v27 = vpop.f32.mrb[16].mxu1  ;;  %v1183_v29 = vadd.f32 %v1176_v26, %v8457_v46  ;;  %v1178_v30 = vpop.f32.mrb[17].mxu0  ;;  %v3271_v46 = vrot.slane %v3124_v28, 2 }
 0x226   :  { %v1323_v31 = vpop.f32.mrb[17].mxu1  ;;  %v1184_v33 = vadd.f32 %v1178_v30, %v8465_v51  ;;  %v1180_v34 = vpop.f32.mrb[18].mxu0  ;;  %3221 = vmatpush1.bf16.msra.mxu0 %v7055_v22  ;;  %v3127_v51 = vsel %vm488_vm0, %v3126_v44, %v3125_v32  ;;  %v7112_v30 = vld [vmem:[%s9282_s3 + $0xae0] ss:$8 sps:$4 sm:$0xff]  }
 0x227   :  { %v1325_v35 = vpop.f32.mrb[18].mxu1  ;;  %3366 = vmatpush1.bf16.msra.mxu1 %v7058_v23  ;;  %v8563_v38 = vadd.f32 %v1321_v27, %v1183_v29  ;;  %v1181_v39 = vpop.f32.mrb[19].mxu0  ;;  %3222 = vmatprep.subr.bf16.mxu0 %v7063_v24  ;;  %v3272_v52 = vsel %vm488_vm0, %v3271_v46, %v3270_v45  ;;  %v3128_v55 = vpack.c.b16 %v3127_v51, %v3127_v51  ;;  %v7109_v29 = vld [vmem:[%s9282_s3 + $0xa60] ss:$8 sps:$4 sm:$0xff]   ;;  %v7117_v34 = vld [vmem:[%s9282_s3 + $0xa74] ss:$8 sps:$4 sm:$0xff]  }
 0x228   :  { %v1326_v40 = vpop.f32.mrb[19].mxu1  ;;  %3367 = vmatprep.subr.bf16.mxu1 %v7066_v25  ;;  %v8571_v43 = vadd.f32 %v1323_v31, %v1184_v33  ;;  %v3273_v56 = vpack.c.b16 %v3272_v52, %v3272_v52  ;;  %v3421_v25 = vrot.slane %v3419_v14, 4  ;;  %v7120_v35 = vld [vmem:[%s9282_s3 + $0xaf4] ss:$8 sps:$4 sm:$0xff]   ;;  %v3567_v39 = vrot.slane %v3420_v21, 4 }
 0x229   :  { %v7115_v40 = vld [vmem:[%s9282_s3 + $0xa70] ss:$8 sps:$4 sm:$0xff]   ;;  %v7121_v46 = vld [vmem:[%s9282_s3 + $0xb00] ss:$8 sps:$4 sm:$0xff]   ;;  %v7132_v51 = vld [vmem:[%s9282_s3 + $0xb94] ss:$8 sps:$4 sm:$0xff]  }
 0x22a   :  { %3223 = vmatpush1.bf16.msra.mxu0 %v7061_v36  ;;  %v7127_v52 = vld [vmem:[%s9282_s3 + $0xb10] ss:$8 sps:$4 sm:$0xff]  }
 0x22b   :  { %3368 = vmatpush1.bf16.msra.mxu1 %v7064_v37  ;;  %3224 = vmatprep.subr.bf16.mxu0 %v7069_v41  ;;  %v3422_v37 = vrot.slane %v3420_v21, 3  ;;  %v7118_v41 = vld [vmem:[%s9282_s3 + $0xaf0] ss:$8 sps:$4 sm:$0xff]  }
 0x22c   :  { %3369 = vmatprep.subr.bf16.mxu1 %v7072_v42  ;;  %v7123_v42 = vld [vmem:[%s9282_s3 + $0xb04] ss:$8 sps:$4 sm:$0xff]  }
 0x22d   :  { %v3423_v44 = vsel %vm488_vm0, %v3422_v37, %v3421_v25 }
 0x22e   :  { %3225 = vmatpush1.bf16.msra.mxu0 %v7067_v48  ;;  %v7124_v48 = vld [vmem:[%s9282_s3 + $0xb80] ss:$8 sps:$4 sm:$0xff]  }
 0x22f   :  { %3370 = vmatpush1.bf16.msra.mxu1 %v7070_v47  ;;  %3506 = vmatprep.subr.bf16.mxu0 %v7075_v49  ;;  %v3424_v47 = vpack.c.b16 %v3423_v44, %v3423_v44  ;;  %v7180_v44 = vld [vmem:[%s9282_s3 + $0xc94] ss:$8 sps:$4 sm:$0xff]  }
 0x230   :  { %3651 = vmatprep.subr.bf16.mxu1 %v7078_v50  ;;  %v7129_v50 = vld [vmem:[%s9282_s3 + $0xb14] ss:$8 sps:$4 sm:$0xff]  }
 0x231   :  { %3243 = vmatmul.mubr.bf16.vlgmr.msra.gmra.mrb[44].mxu0 %v3128_v55  ;;  %v7138_v55 = vld [vmem:[%s9282_s3 + $0xba4] ss:$8 sps:$4 sm:$0xff]  }
 0x232   :  { %3388 = vmatmul.mubr.bf16.vlgmr.msra.gmra.mrb[44].mxu1 %v3273_v56  ;;  %3507 = vmatpush1.bf16.msra.mxu0 %v7073_v53  ;;  %v7130_v53 = vld [vmem:[%s9282_s3 + $0xb90] ss:$8 sps:$4 sm:$0xff]   ;;  %v7133_v56 = vld [vmem:[%s9282_s3 + $0xb20] ss:$8 sps:$4 sm:$0xff]  }
 0x233   :  { %3652 = vmatpush1.bf16.msra.mxu1 %v7076_v54  ;;  %3508 = vmatprep.subr.bf16.mxu0 %v7081_v57  ;;  %v7135_v54 = vld [vmem:[%s9282_s3 + $0xb24] ss:$8 sps:$4 sm:$0xff]   ;;  %v7136_v57 = vld [vmem:[%s9282_s3 + $0xba0] ss:$8 sps:$4 sm:$0xff]  }
 0x234   :  { %3653 = vmatprep.subr.bf16.mxu1 %v7084_v58  ;;  %3538 = vmatprep.mubr.bf16.mxu0 %v7401_v2  ;;  %v7141_v58 = vld [vmem:[%s9282_s3 + $0xb34] ss:$8 sps:$4 sm:$0xff]  }
 0x235   :  { %3683 = vmatprep.mubr.bf16.mxu1 %v7401_v2 }
 0x236   :  { %3509 = vmatpush1.bf16.msra.mxu0 %v7079_v59  ;;  %v7144_v59 = vld [vmem:[%s9282_s3 + $0xbb4] ss:$8 sps:$4 sm:$0xff]  }
 0x237   :  { %3654 = vmatpush1.bf16.msra.mxu1 %v7082_v60  ;;  %3510 = vmatprep.subr.bf16.mxu0 %v7087_v61  ;;  %v7139_v60 = vld [vmem:[%s9282_s3 + $0xb30] ss:$8 sps:$4 sm:$0xff]  }
 0x238   :  { %3655 = vmatprep.subr.bf16.mxu1 %v7090_v62  ;;  %v7142_v61 = vld [vmem:[%s9282_s3 + $0xbb0] ss:$8 sps:$4 sm:$0xff]   ;;  %v7147_v62 = vld [vmem:[%s9282_s3 + $0xb44] ss:$8 sps:$4 sm:$0xff]  }
 0x23a   :  { %3511 = vmatpush1.bf16.msra.mxu0 %v7085_v63  ;;  %v7150_v63 = vld [vmem:[%s9282_s3 + $0xbc4] ss:$8 sps:$4 sm:$0xff]  }
 0x23b   :  { %3656 = vmatpush1.bf16.msra.mxu1 %v7088_v0  ;;  %3512 = vmatprep.subr.bf16.mxu0 %v7093_v1  ;;  %v7145_v0 = vld [vmem:[%s9282_s3 + $0xb40] ss:$8 sps:$4 sm:$0xff]  }
 0x23c   :  { %3657 = vmatprep.subr.bf16.mxu1 %v7096_v3  ;;  %v7148_v1 = vld [vmem:[%s9282_s3 + $0xbc0] ss:$8 sps:$4 sm:$0xff]  }
 0x23d   :  { %v3694_v3 = vld [vmem:[#allocation2 + $0x8] sm:$0x8] }
 0x23e   :  { %3513 = vmatpush1.bf16.msra.mxu0 %v7091_v4  ;;  %v7153_v4 = vld [vmem:[%s9282_s3 + $0xb54] ss:$8 sps:$4 sm:$0xff]  }
 0x23f   :  { %3658 = vmatpush1.bf16.msra.mxu1 %v7094_v5  ;;  %3514 = vmatprep.subr.bf16.mxu0 %v7099_v6  ;;  %v7156_v5 = vld [vmem:[%s9282_s3 + $0xbd4] ss:$8 sps:$4 sm:$0xff]   ;;  %v3695_v6 = vld [vmem:[#allocation2 + $0x18] sm:$0x8] }
 0x240   :  { %3659 = vmatprep.subr.bf16.mxu1 %v7102_v7  ;;  %v3715_v7 = vunpack.c.l.b16 %v3694_v3  ;;  %v7210_v3 = vld [vmem:[%s9282_s3 + $0xce4] ss:$8 sps:$4 sm:$0xff]  }
 0x242   :  { %3515 = vmatpush1.bf16.msra.mxu0 %v7097_v8  ;;  %v7151_v8 = vld [vmem:[%s9282_s3 + $0xb50] ss:$8 sps:$4 sm:$0xff]  }
 0x243   :  { %3660 = vmatpush1.bf16.msra.mxu1 %v7100_v9  ;;  %3516 = vmatprep.subr.bf16.mxu0 %v7105_v11  ;;  %v7154_v9 = vld [vmem:[%s9282_s3 + $0xbd0] ss:$8 sps:$4 sm:$0xff]   ;;  %v7162_v11 = vld [vmem:[%s9282_s3 + $0xbe4] ss:$8 sps:$4 sm:$0xff]  }
 0x244   :  { %3661 = vmatprep.subr.bf16.mxu1 %v7108_v12  ;;  %v1472_v19 = vpop.f32.mrb[20].mxu0 }
 0x245   :  { %v1617_v20 = vpop.f32.mrb[20].mxu1  ;;  %v1479_v22 = vadd.f32 %v1472_v19, %v8563_v38  ;;  %v1474_v23 = vpop.f32.mrb[21].mxu0  ;;  %v3566_v38 = vrot.slane %v3419_v14, 5  ;;  %v3716_v14 = vunpack.c.l.b16 %v3695_v6 }
 0x246   :  { %v1619_v24 = vpop.f32.mrb[21].mxu1  ;;  %v1480_v26 = vadd.f32 %v1474_v23, %v8571_v43  ;;  %v1476_v27 = vpop.f32.mrb[22].mxu0  ;;  %3517 = vmatpush1.bf16.msra.mxu0 %v7103_v15  ;;  %v7126_v43 = vld [vmem:[%s9282_s3 + $0xb84] ss:$8 sps:$4 sm:$0xff]   ;;  %v7160_v23 = vld [vmem:[%s9282_s3 + $0xbe0] ss:$8 sps:$4 sm:$0xff]  }
 0x247   :  { %v1621_v28 = vpop.f32.mrb[22].mxu1  ;;  %3662 = vmatpush1.bf16.msra.mxu1 %v7106_v16  ;;  %v8669_v31 = vadd.f32 %v1617_v20, %v1479_v22  ;;  %v1477_v32 = vpop.f32.mrb[23].mxu0  ;;  %3518 = vmatprep.subr.bf16.mxu0 %v7111_v17  ;;  %v3568_v45 = vsel %vm488_vm0, %v3567_v39, %v3566_v38  ;;  %v7157_v22 = vld [vmem:[%s9282_s3 + $0xb60] ss:$8 sps:$4 sm:$0xff]   ;;  %v7165_v27 = vld [vmem:[%s9282_s3 + $0xb74] ss:$8 sps:$4 sm:$0xff]  }
 0x248   :  { %v1622_v33 = vpop.f32.mrb[23].mxu1  ;;  %3663 = vmatprep.subr.bf16.mxu1 %v7114_v18  ;;  %v8677_v36 = vadd.f32 %v1619_v24, %v1480_v26  ;;  %v3569_v49 = vpack.c.b16 %v3568_v45, %v3568_v45  ;;  %v3717_v18 = vrot.slane %v3715_v7, 6  ;;  %v7168_v28 = vld [vmem:[%s9282_s3 + $0xbf4] ss:$8 sps:$4 sm:$0xff]   ;;  %v3863_v32 = vrot.slane %v3716_v14, 6 }
 0x249   :  { %v7163_v33 = vld [vmem:[%s9282_s3 + $0xb70] ss:$8 sps:$4 sm:$0xff]   ;;  %v7169_v39 = vld [vmem:[%s9282_s3 + $0xc00] ss:$8 sps:$4 sm:$0xff]  }
 0x24a   :  { %3519 = vmatpush1.bf16.msra.mxu0 %v7109_v29  ;;  %v7175_v45 = vld [vmem:[%s9282_s3 + $0xc10] ss:$8 sps:$4 sm:$0xff]  }
 0x24b   :  { %3664 = vmatpush1.bf16.msra.mxu1 %v7112_v30  ;;  %3520 = vmatprep.subr.bf16.mxu0 %v7117_v34  ;;  %v3718_v30 = vrot.slane %v3716_v14, 5  ;;  %v7166_v34 = vld [vmem:[%s9282_s3 + $0xbf0] ss:$8 sps:$4 sm:$0xff]   ;;  %v7205_v14 = vld [vmem:[%s9282_s3 + $0xc60] ss:$8 sps:$4 sm:$0xff]  }
 0x24c   :  { %3665 = vmatprep.subr.bf16.mxu1 %v7120_v35  ;;  %v7171_v35 = vld [vmem:[%s9282_s3 + $0xc04] ss:$8 sps:$4 sm:$0xff]  }
 0x24d   :  { %v3719_v37 = vsel %vm488_vm0, %v3718_v30, %v3717_v18  ;;  %v7217_v30 = vld [vmem:[%s9282_s3 + $0xd00] ss:$8 sps:$4 sm:$0xff]  }
 0x24e   :  { %3521 = vmatpush1.bf16.msra.mxu0 %v7115_v40  ;;  %v7172_v40 = vld [vmem:[%s9282_s3 + $0xc80] ss:$8 sps:$4 sm:$0xff]  }
 0x24f   :  { %3666 = vmatpush1.bf16.msra.mxu1 %v7118_v41  ;;  %3802 = vmatprep.subr.bf16.mxu0 %v7123_v42  ;;  %v3720_v41 = vpack.c.b16 %v3719_v37, %v3719_v37  ;;  %v7226_v37 = vld [vmem:[%s9282_s3 + $0xd90] ss:$8 sps:$4 sm:$0xff]  }
 0x250   :  { %3947 = vmatprep.subr.bf16.mxu1 %v7126_v43  ;;  %v7177_v43 = vld [vmem:[%s9282_s3 + $0xc14] ss:$8 sps:$4 sm:$0xff]  }
 0x251   :  { %3539 = vmatmul.mubr.bf16.vlgmr.msra.gmra.mrb[48].mxu0 %v3424_v47  ;;  %v7186_v47 = vld [vmem:[%s9282_s3 + $0xca4] ss:$8 sps:$4 sm:$0xff]  }
 0x252   :  { %3684 = vmatmul.mubr.bf16.vlgmr.msra.gmra.mrb[48].mxu1 %v3569_v49  ;;  %3803 = vmatpush1.bf16.msra.mxu0 %v7121_v46  ;;  %v7178_v46 = vld [vmem:[%s9282_s3 + $0xc90] ss:$8 sps:$4 sm:$0xff]   ;;  %v7181_v49 = vld [vmem:[%s9282_s3 + $0xc20] ss:$8 sps:$4 sm:$0xff]  }
 0x253   :  { %3948 = vmatpush1.bf16.msra.mxu1 %v7124_v48  ;;  %3804 = vmatprep.subr.bf16.mxu0 %v7129_v50  ;;  %v7183_v48 = vld [vmem:[%s9282_s3 + $0xc24] ss:$8 sps:$4 sm:$0xff]   ;;  %v7184_v50 = vld [vmem:[%s9282_s3 + $0xca0] ss:$8 sps:$4 sm:$0xff]  }
 0x254   :  { %3949 = vmatprep.subr.bf16.mxu1 %v7132_v51  ;;  %3834 = vmatprep.mubr.bf16.mxu0 %v7401_v2  ;;  %v7189_v51 = vld [vmem:[%s9282_s3 + $0xc34] ss:$8 sps:$4 sm:$0xff]  }
 0x255   :  { %3979 = vmatprep.mubr.bf16.mxu1 %v7401_v2 }
 0x256   :  { %3805 = vmatpush1.bf16.msra.mxu0 %v7127_v52  ;;  %v7192_v52 = vld [vmem:[%s9282_s3 + $0xcb4] ss:$8 sps:$4 sm:$0xff]  }
 0x257   :  { %3950 = vmatpush1.bf16.msra.mxu1 %v7130_v53  ;;  %3806 = vmatprep.subr.bf16.mxu0 %v7135_v54  ;;  %v7187_v53 = vld [vmem:[%s9282_s3 + $0xc30] ss:$8 sps:$4 sm:$0xff]  }
 0x258   :  { %3951 = vmatprep.subr.bf16.mxu1 %v7138_v55  ;;  %v7190_v54 = vld [vmem:[%s9282_s3 + $0xcb0] ss:$8 sps:$4 sm:$0xff]   ;;  %v7195_v55 = vld [vmem:[%s9282_s3 + $0xc44] ss:$8 sps:$4 sm:$0xff]  }
 0x25a   :  { %3807 = vmatpush1.bf16.msra.mxu0 %v7133_v56  ;;  %v7198_v56 = vld [vmem:[%s9282_s3 + $0xcc4] ss:$8 sps:$4 sm:$0xff]  }
 0x25b   :  { %3952 = vmatpush1.bf16.msra.mxu1 %v7136_v57  ;;  %3808 = vmatprep.subr.bf16.mxu0 %v7141_v58  ;;  %v7193_v57 = vld [vmem:[%s9282_s3 + $0xc40] ss:$8 sps:$4 sm:$0xff]  }
 0x25c   :  { %3953 = vmatprep.subr.bf16.mxu1 %v7144_v59  ;;  %v7196_v58 = vld [vmem:[%s9282_s3 + $0xcc0] ss:$8 sps:$4 sm:$0xff]   ;;  %v7201_v59 = vld [vmem:[%s9282_s3 + $0xc54] ss:$8 sps:$4 sm:$0xff]  }
 0x25e   :  { %3809 = vmatpush1.bf16.msra.mxu0 %v7139_v60  ;;  %v7204_v60 = vld [vmem:[%s9282_s3 + $0xcd4] ss:$8 sps:$4 sm:$0xff]  }
 0x25f   :  { %3954 = vmatpush1.bf16.msra.mxu1 %v7142_v61  ;;  %3810 = vmatprep.subr.bf16.mxu0 %v7147_v62  ;;  %v3990_v61 = vld [vmem:[#allocation2 + $0x8] sm:$0x10]  ;;  %v3991_v62 = vld [vmem:[#allocation2 + $0x18] sm:$0x10] }
 0x260   :  { %3955 = vmatprep.subr.bf16.mxu1 %v7150_v63  ;;  %v7199_v63 = vld [vmem:[%s9282_s3 + $0xc50] ss:$8 sps:$4 sm:$0xff]   ;;  %v4011_v6 = vunpack.c.h.b16 %v3990_v61 }
 0x262   :  { %3811 = vmatpush1.bf16.msra.mxu0 %v7145_v0  ;;  %v7202_v0 = vld [vmem:[%s9282_s3 + $0xcd0] ss:$8 sps:$4 sm:$0xff]  }
 0x263   :  { %3956 = vmatpush1.bf16.msra.mxu1 %v7148_v1  ;;  %3812 = vmatprep.subr.bf16.mxu0 %v7153_v4  ;;  %v7207_v1 = vld [vmem:[%s9282_s3 + $0xc64] ss:$8 sps:$4 sm:$0xff]  }
 0x264   :  { %3957 = vmatprep.subr.bf16.mxu1 %v7156_v5  ;;  %v1767_v12 = vpop.f32.mrb[24].mxu0 }
 0x265   :  { %v1911_v13 = vpop.f32.mrb[24].mxu1  ;;  %v1774_v15 = vadd.f32 %v1767_v12, %v8669_v31  ;;  %v1769_v16 = vpop.f32.mrb[25].mxu0  ;;  %v3862_v31 = vrot.slane %v3715_v7, 7  ;;  %v4012_v7 = vunpack.c.h.b16 %v3991_v62 }
 0x266   :  { %v1913_v17 = vpop.f32.mrb[25].mxu1  ;;  %v1775_v19 = vadd.f32 %v1769_v16, %v8677_v36  ;;  %v1771_v20 = vpop.f32.mrb[26].mxu0  ;;  %3813 = vmatpush1.bf16.msra.mxu0 %v7151_v8  ;;  %v7174_v36 = vld [vmem:[%s9282_s3 + $0xc84] ss:$8 sps:$4 sm:$0xff]  }
 0x267   :  { %v1915_v21 = vpop.f32.mrb[26].mxu1  ;;  %3958 = vmatpush1.bf16.msra.mxu1 %v7154_v9  ;;  %v8775_v24 = vadd.f32 %v1911_v13, %v1774_v15  ;;  %v1772_v25 = vpop.f32.mrb[27].mxu0  ;;  %3814 = vmatprep.subr.bf16.mxu0 %v7159_v10  ;;  %v3864_v38 = vsel %vm488_vm0, %v3863_v32, %v3862_v31  ;;  %v7208_v15 = vld [vmem:[%s9282_s3 + $0xce0] ss:$8 sps:$4 sm:$0xff]   ;;  %v7216_v20 = vld [vmem:[%s9282_s3 + $0xcf4] ss:$8 sps:$4 sm:$0xff]  }
 0x268   :  { %v1916_v26 = vpop.f32.mrb[27].mxu1  ;;  %3959 = vmatprep.subr.bf16.mxu1 %v7162_v11  ;;  %v8783_v29 = vadd.f32 %v1913_v17, %v1775_v19  ;;  %v3865_v42 = vpack.c.b16 %v3864_v38, %v3864_v38  ;;  %v7213_v19 = vld [vmem:[%s9282_s3 + $0xc74] ss:$8 sps:$4 sm:$0xff]   ;;  %v7214_v25 = vld [vmem:[%s9282_s3 + $0xcf0] ss:$8 sps:$4 sm:$0xff]  }
 0x269   :  { %v7219_v26 = vld [vmem:[%s9282_s3 + $0xd04] ss:$8 sps:$4 sm:$0xff]   ;;  %v7220_v31 = vld [vmem:[%s9282_s3 + $0xd80] ss:$8 sps:$4 sm:$0xff]  }
 0x26a   :  { %3815 = vmatpush1.bf16.msra.mxu0 %v7157_v22  ;;  %v4013_v22 = vrot.slane %v4012_v7, 7  ;;  %v7231_v38 = vld [vmem:[%s9282_s3 + $0xd24] ss:$8 sps:$4 sm:$0xff]  }
 0x26b   :  { %3960 = vmatpush1.bf16.msra.mxu1 %v7160_v23  ;;  %3816 = vmatprep.subr.bf16.mxu0 %v7165_v27  ;;  %v4157_v23 = vrot.slane %v4011_v6, 1  ;;  %v7222_v27 = vld [vmem:[%s9282_s3 + $0xd84] ss:$8 sps:$4 sm:$0xff]  }
 0x26c   :  { %3961 = vmatprep.subr.bf16.mxu1 %v7168_v28  ;;  %v4014_v28 = vsel %vm488_vm0, %v4013_v22, %v4011_v6  ;;  %v7253_v6 = vld [vmem:[%s9282_s3 + $0xd60] ss:$8 sps:$4 sm:$0xff]  }
 0x26d   :  { %v4015_v32 = vpack.c.b16 %v4014_v28, %v4014_v28  ;;  %v7276_v28 = vld [vmem:[%s9282_s3 + $0xe94] ss:$8 sps:$4 sm:$0xff]  }
 0x26e   :  { %3817 = vmatpush1.bf16.msra.mxu0 %v7163_v33 }
 0x26f   :  { %3962 = vmatpush1.bf16.msra.mxu1 %v7166_v34  ;;  %4097 = vmatprep.subr.bf16.mxu0 %v7171_v35  ;;  %v7225_v34 = vld [vmem:[%s9282_s3 + $0xd14] ss:$8 sps:$4 sm:$0xff]  }
 0x270   :  { %4241 = vmatprep.subr.bf16.mxu1 %v7174_v36  ;;  %v7228_v35 = vld [vmem:[%s9282_s3 + $0xd94] ss:$8 sps:$4 sm:$0xff]   ;;  %v7223_v36 = vld [vmem:[%s9282_s3 + $0xd10] ss:$8 sps:$4 sm:$0xff]  }
 0x271   :  { %3835 = vmatmul.mubr.bf16.vlgmr.msra.gmra.mrb[52].mxu0 %v3720_v41  ;;  %v7232_v41 = vld [vmem:[%s9282_s3 + $0xda0] ss:$8 sps:$4 sm:$0xff]  }
 0x272   :  { %3980 = vmatmul.mubr.bf16.vlgmr.msra.gmra.mrb[52].mxu1 %v3865_v42  ;;  %4098 = vmatpush1.bf16.msra.mxu0 %v7169_v39  ;;  %v7234_v39 = vld [vmem:[%s9282_s3 + $0xda4] ss:$8 sps:$4 sm:$0xff]   ;;  %v7237_v42 = vld [vmem:[%s9282_s3 + $0xd34] ss:$8 sps:$4 sm:$0xff]  }
 0x273   :  { %4242 = vmatpush1.bf16.msra.mxu1 %v7172_v40  ;;  %4099 = vmatprep.subr.bf16.mxu0 %v7177_v43  ;;  %v7229_v40 = vld [vmem:[%s9282_s3 + $0xd20] ss:$8 sps:$4 sm:$0xff]   ;;  %v7240_v43 = vld [vmem:[%s9282_s3 + $0xdb4] ss:$8 sps:$4 sm:$0xff]  }
 0x274   :  { %4243 = vmatprep.subr.bf16.mxu1 %v7180_v44  ;;  %4129 = vmatprep.mubr.bf16.mxu0 %v7401_v2  ;;  %v7235_v44 = vld [vmem:[%s9282_s3 + $0xd30] ss:$8 sps:$4 sm:$0xff]  }
 0x275   :  { %4273 = vmatprep.mubr.bf16.mxu1 %v7401_v2 }
 0x276   :  { %4100 = vmatpush1.bf16.msra.mxu0 %v7175_v45  ;;  %v7238_v45 = vld [vmem:[%s9282_s3 + $0xdb0] ss:$8 sps:$4 sm:$0xff]  }
 0x277   :  { %4244 = vmatpush1.bf16.msra.mxu1 %v7178_v46  ;;  %4101 = vmatprep.subr.bf16.mxu0 %v7183_v48  ;;  %v7243_v46 = vld [vmem:[%s9282_s3 + $0xd44] ss:$8 sps:$4 sm:$0xff]  }
 0x278   :  { %4245 = vmatprep.subr.bf16.mxu1 %v7186_v47  ;;  %v7246_v48 = vld [vmem:[%s9282_s3 + $0xdc4] ss:$8 sps:$4 sm:$0xff]   ;;  %v7241_v47 = vld [vmem:[%s9282_s3 + $0xd40] ss:$8 sps:$4 sm:$0xff]  }
 0x27a   :  { %4102 = vmatpush1.bf16.msra.mxu0 %v7181_v49  ;;  %v7244_v49 = vld [vmem:[%s9282_s3 + $0xdc0] ss:$8 sps:$4 sm:$0xff]  }
 0x27b   :  { %4246 = vmatpush1.bf16.msra.mxu1 %v7184_v50  ;;  %4103 = vmatprep.subr.bf16.mxu0 %v7189_v51  ;;  %v4284_v50 = vld [vmem:[#allocation2 + $0x8] sm:$0x20]  ;;  %v7249_v51 = vld [vmem:[%s9282_s3 + $0xd54] ss:$8 sps:$4 sm:$0xff]  }
 0x27c   :  { %4247 = vmatprep.subr.bf16.mxu1 %v7192_v52  ;;  %v7252_v52 = vld [vmem:[%s9282_s3 + $0xdd4] ss:$8 sps:$4 sm:$0xff]  }
 0x27e   :  { %4104 = vmatpush1.bf16.msra.mxu0 %v7187_v53  ;;  %v4285_v53 = vld [vmem:[#allocation2 + $0x18] sm:$0x20] }
 0x27f   :  { %4248 = vmatpush1.bf16.msra.mxu1 %v7190_v54  ;;  %4105 = vmatprep.subr.bf16.mxu0 %v7195_v55  ;;  %v4305_v54 = vunpack.c.h.b16 %v4284_v50  ;;  %v7247_v55 = vld [vmem:[%s9282_s3 + $0xd50] ss:$8 sps:$4 sm:$0xff]   ;;  %v4306_v61 = vunpack.c.h.b16 %v4285_v53  ;;  %v7303_v50 = vld [vmem:[%s9282_s3 + $0xe64] ss:$8 sps:$4 sm:$0xff]  }
 0x280   :  { %4249 = vmatprep.subr.bf16.mxu1 %v7198_v56  ;;  %v7250_v56 = vld [vmem:[%s9282_s3 + $0xdd0] ss:$8 sps:$4 sm:$0xff]  }
 0x282   :  { %4106 = vmatpush1.bf16.msra.mxu0 %v7193_v57  ;;  %v7255_v57 = vld [vmem:[%s9282_s3 + $0xd64] ss:$8 sps:$4 sm:$0xff]  }
 0x283   :  { %4250 = vmatpush1.bf16.msra.mxu1 %v7196_v58  ;;  %4107 = vmatprep.subr.bf16.mxu0 %v7201_v59  ;;  %v7258_v58 = vld [vmem:[%s9282_s3 + $0xde4] ss:$8 sps:$4 sm:$0xff]  }
 0x284   :  { %4251 = vmatprep.subr.bf16.mxu1 %v7204_v60  ;;  %v2062_v4 = vpop.f32.mrb[28].mxu0 }
 0x285   :  { %v2207_v5 = vpop.f32.mrb[28].mxu1  ;;  %v2069_v8 = vadd.f32 %v2062_v4, %v8775_v24  ;;  %v2064_v9 = vpop.f32.mrb[29].mxu0  ;;  %v7211_v24 = vld [vmem:[%s9282_s3 + $0xc70] ss:$8 sps:$4 sm:$0xff]  }
 0x286   :  { %v2209_v10 = vpop.f32.mrb[29].mxu1  ;;  %v2070_v11 = vadd.f32 %v2064_v9, %v8783_v29  ;;  %v2066_v12 = vpop.f32.mrb[30].mxu0  ;;  %4108 = vmatpush1.bf16.msra.mxu0 %v7199_v63  ;;  %v4158_v29 = vsel %vm488_vm0, %v4012_v7, %v4157_v23  ;;  %v7256_v7 = vld [vmem:[%s9282_s3 + $0xde0] ss:$8 sps:$4 sm:$0xff]  }
 0x287   :  { %v2211_v13 = vpop.f32.mrb[30].mxu1  ;;  %4252 = vmatpush1.bf16.msra.mxu1 %v7202_v0  ;;  %v8881_v16 = vadd.f32 %v2207_v5, %v2069_v8  ;;  %v2067_v17 = vpop.f32.mrb[31].mxu0  ;;  %4109 = vmatprep.subr.bf16.mxu0 %v7207_v1  ;;  %v4159_v33 = vpack.c.b16 %v4158_v29, %v4158_v29  ;;  %v4307_v1 = vrot.slane %v4305_v54, 2  ;;  %v7264_v12 = vld [vmem:[%s9282_s3 + $0xdf4] ss:$8 sps:$4 sm:$0xff]  }
 0x288   :  { %v2212_v18 = vpop.f32.mrb[31].mxu1  ;;  %4253 = vmatprep.subr.bf16.mxu1 %v7210_v3  ;;  %v8889_v21 = vadd.f32 %v2209_v10, %v2070_v11  ;;  %v7261_v11 = vld [vmem:[%s9282_s3 + $0xd74] ss:$8 sps:$4 sm:$0xff]   ;;  %v7259_v17 = vld [vmem:[%s9282_s3 + $0xd70] ss:$8 sps:$4 sm:$0xff]  }
 0x289   :  { %v7262_v18 = vld [vmem:[%s9282_s3 + $0xdf0] ss:$8 sps:$4 sm:$0xff]   ;;  %v7265_v23 = vld [vmem:[%s9282_s3 + $0xe00] ss:$8 sps:$4 sm:$0xff]  }
 0x28a   :  { %4110 = vmatpush1.bf16.msra.mxu0 %v7205_v14  ;;  %v4308_v14 = vrot.slane %v4306_v61, 1  ;;  %v7271_v29 = vld [vmem:[%s9282_s3 + $0xe10] ss:$8 sps:$4 sm:$0xff]  }
 0x28b   :  { %4254 = vmatpush1.bf16.msra.mxu1 %v7208_v15  ;;  %4111 = vmatprep.subr.bf16.mxu0 %v7213_v19  ;;  %v4452_v15 = vrot.slane %v4305_v54, 3  ;;  %v7267_v19 = vld [vmem:[%s9282_s3 + $0xe04] ss:$8 sps:$4 sm:$0xff]  }
 0x28c   :  { %4255 = vmatprep.subr.bf16.mxu1 %v7216_v20  ;;  %v7270_v20 = vld [vmem:[%s9282_s3 + $0xe84] ss:$8 sps:$4 sm:$0xff]  }
 0x28e   :  { %4112 = vmatpush1.bf16.msra.mxu0 %v7211_v24  ;;  %v7268_v24 = vld [vmem:[%s9282_s3 + $0xe80] ss:$8 sps:$4 sm:$0xff]  }
 0x28f   :  { %4256 = vmatpush1.bf16.msra.mxu1 %v7214_v25  ;;  %4392 = vmatprep.subr.bf16.mxu0 %v7219_v26 }
 0x290   :  { %4537 = vmatprep.subr.bf16.mxu1 %v7222_v27  ;;  %v7273_v27 = vld [vmem:[%s9282_s3 + $0xe14] ss:$8 sps:$4 sm:$0xff]  }
 0x291   :  { %4130 = vmatmul.mubr.bf16.vlgmr.msra.gmra.mrb[56].mxu0 %v4015_v32  ;;  %v7282_v32 = vld [vmem:[%s9282_s3 + $0xea4] ss:$8 sps:$4 sm:$0xff]  }
 0x292   :  { %4274 = vmatmul.mubr.bf16.vlgmr.msra.gmra.mrb[56].mxu1 %v4159_v33  ;;  %4393 = vmatpush1.bf16.msra.mxu0 %v7217_v30  ;;  %v7274_v30 = vld [vmem:[%s9282_s3 + $0xe90] ss:$8 sps:$4 sm:$0xff]   ;;  %v7277_v33 = vld [vmem:[%s9282_s3 + $0xe20] ss:$8 sps:$4 sm:$0xff]  }
 0x293   :  { %4538 = vmatpush1.bf16.msra.mxu1 %v7220_v31  ;;  %4394 = vmatprep.subr.bf16.mxu0 %v7225_v34  ;;  %v7279_v31 = vld [vmem:[%s9282_s3 + $0xe24] ss:$8 sps:$4 sm:$0xff]   ;;  %v7280_v34 = vld [vmem:[%s9282_s3 + $0xea0] ss:$8 sps:$4 sm:$0xff]  }
 0x294   :  { %4539 = vmatprep.subr.bf16.mxu1 %v7228_v35  ;;  %4424 = vmatprep.mubr.bf16.mxu0 %v7401_v2  ;;  %v7285_v35 = vld [vmem:[%s9282_s3 + $0xe34] ss:$8 sps:$4 sm:$0xff]  }
 0x295   :  { %4569 = vmatprep.mubr.bf16.mxu1 %v7401_v2 }
 0x296   :  { %4395 = vmatpush1.bf16.msra.mxu0 %v7223_v36  ;;  %v7288_v36 = vld [vmem:[%s9282_s3 + $0xeb4] ss:$8 sps:$4 sm:$0xff]  }
 0x297   :  { %4540 = vmatpush1.bf16.msra.mxu1 %v7226_v37  ;;  %4396 = vmatprep.subr.bf16.mxu0 %v7231_v38  ;;  %v7283_v37 = vld [vmem:[%s9282_s3 + $0xe30] ss:$8 sps:$4 sm:$0xff]  }
 0x298   :  { %4541 = vmatprep.subr.bf16.mxu1 %v7234_v39  ;;  %v7286_v38 = vld [vmem:[%s9282_s3 + $0xeb0] ss:$8 sps:$4 sm:$0xff]   ;;  %v7291_v39 = vld [vmem:[%s9282_s3 + $0xe44] ss:$8 sps:$4 sm:$0xff]  }
 0x29a   :  { %4397 = vmatpush1.bf16.msra.mxu0 %v7229_v40  ;;  %v7294_v40 = vld [vmem:[%s9282_s3 + $0xec4] ss:$8 sps:$4 sm:$0xff]  }
 0x29b   :  { %4542 = vmatpush1.bf16.msra.mxu1 %v7232_v41  ;;  %4398 = vmatprep.subr.bf16.mxu0 %v7237_v42  ;;  %v7289_v41 = vld [vmem:[%s9282_s3 + $0xe40] ss:$8 sps:$4 sm:$0xff]  }
 0x29c   :  { %4543 = vmatprep.subr.bf16.mxu1 %v7240_v43  ;;  %v7292_v42 = vld [vmem:[%s9282_s3 + $0xec0] ss:$8 sps:$4 sm:$0xff]   ;;  %v4580_v43 = vld [vmem:[#allocation2 + $0x8] sm:$0x40] }
 0x29e   :  { %4399 = vmatpush1.bf16.msra.mxu0 %v7235_v44  ;;  %v7297_v44 = vld [vmem:[%s9282_s3 + $0xe54] ss:$8 sps:$4 sm:$0xff]  }
 0x29f   :  { %4544 = vmatpush1.bf16.msra.mxu1 %v7238_v45  ;;  %4400 = vmatprep.subr.bf16.mxu0 %v7243_v46  ;;  %v7300_v45 = vld [vmem:[%s9282_s3 + $0xed4] ss:$8 sps:$4 sm:$0xff]  }
 0x2a0   :  { %4545 = vmatprep.subr.bf16.mxu1 %v7246_v48  ;;  %v4581_v46 = vld [vmem:[#allocation2 + $0x18] sm:$0x40]  ;;  %v4601_v48 = vunpack.c.h.b16 %v4580_v43  ;;  %v7354_v43 = vld [vmem:[%s9282_s3 + $0xfe4] ss:$8 sps:$4 sm:$0xff]  }
 0x2a1   :  { %v4602_v54 = vunpack.c.h.b16 %v4581_v46 }
 0x2a2   :  { %4401 = vmatpush1.bf16.msra.mxu0 %v7241_v47  ;;  %v7295_v47 = vld [vmem:[%s9282_s3 + $0xe50] ss:$8 sps:$4 sm:$0xff]  }
 0x2a3   :  { %4546 = vmatpush1.bf16.msra.mxu1 %v7244_v49  ;;  %4402 = vmatprep.subr.bf16.mxu0 %v7249_v51  ;;  %v7298_v49 = vld [vmem:[%s9282_s3 + $0xed0] ss:$8 sps:$4 sm:$0xff]   ;;  %v7306_v51 = vld [vmem:[%s9282_s3 + $0xee4] ss:$8 sps:$4 sm:$0xff]  }
 0x2a4   :  { %4547 = vmatprep.subr.bf16.mxu1 %v7252_v52  ;;  %v2358_v59 = vpop.f32.mrb[32].mxu0 }
 0x2a5   :  { %v2503_v60 = vpop.f32.mrb[32].mxu1  ;;  %v2365_v62 = vadd.f32 %v2358_v59, %v8881_v16  ;;  %v2360_v63 = vpop.f32.mrb[33].mxu0  ;;  %v4453_v16 = vrot.slane %v4306_v61, 2 }
 0x2a6   :  { %v2505_v0 = vpop.f32.mrb[33].mxu1  ;;  %v2366_v3 = vadd.f32 %v2360_v63, %v8889_v21  ;;  %v2362_v4 = vpop.f32.mrb[34].mxu0  ;;  %4403 = vmatpush1.bf16.msra.mxu0 %v7247_v55  ;;  %v4309_v21 = vsel %vm488_vm0, %v4308_v14, %v4307_v1  ;;  %v7304_v63 = vld [vmem:[%s9282_s3 + $0xee0] ss:$8 sps:$4 sm:$0xff]  }
 0x2a7   :  { %v2507_v5 = vpop.f32.mrb[34].mxu1  ;;  %4548 = vmatpush1.bf16.msra.mxu1 %v7250_v56  ;;  %v8987_v8 = vadd.f32 %v2503_v60, %v2365_v62  ;;  %v2363_v9 = vpop.f32.mrb[35].mxu0  ;;  %4404 = vmatprep.subr.bf16.mxu0 %v7255_v57  ;;  %v4454_v22 = vsel %vm488_vm0, %v4453_v16, %v4452_v15  ;;  %v4310_v25 = vpack.c.b16 %v4309_v21, %v4309_v21  ;;  %v7301_v62 = vld [vmem:[%s9282_s3 + $0xe60] ss:$8 sps:$4 sm:$0xff]   ;;  %v7309_v4 = vld [vmem:[%s9282_s3 + $0xe74] ss:$8 sps:$4 sm:$0xff]  }
 0x2a8   :  { %v2508_v10 = vpop.f32.mrb[35].mxu1  ;;  %4549 = vmatprep.subr.bf16.mxu1 %v7258_v58  ;;  %v8995_v13 = vadd.f32 %v2505_v0, %v2366_v3  ;;  %v4455_v26 = vpack.c.b16 %v4454_v22, %v4454_v22  ;;  %v4603_v58 = vrot.slane %v4601_v48, 4  ;;  %v7312_v5 = vld [vmem:[%s9282_s3 + $0xef4] ss:$8 sps:$4 sm:$0xff]   ;;  %v4749_v9 = vrot.slane %v4602_v54, 4 }
 0x2a9   :  { %v7307_v10 = vld [vmem:[%s9282_s3 + $0xe70] ss:$8 sps:$4 sm:$0xff]   ;;  %v7313_v16 = vld [vmem:[%s9282_s3 + $0xf00] ss:$8 sps:$4 sm:$0xff]   ;;  %v7324_v21 = vld [vmem:[%s9282_s3 + $0xf94] ss:$8 sps:$4 sm:$0xff]  }
 0x2aa   :  { %4405 = vmatpush1.bf16.msra.mxu0 %v7253_v6  ;;  %v7319_v22 = vld [vmem:[%s9282_s3 + $0xf10] ss:$8 sps:$4 sm:$0xff]  }
 0x2ab   :  { %4550 = vmatpush1.bf16.msra.mxu1 %v7256_v7  ;;  %4406 = vmatprep.subr.bf16.mxu0 %v7261_v11  ;;  %v4604_v7 = vrot.slane %v4602_v54, 3  ;;  %v7310_v11 = vld [vmem:[%s9282_s3 + $0xef0] ss:$8 sps:$4 sm:$0xff]   ;;  %v7349_v54 = vld [vmem:[%s9282_s3 + $0xf60] ss:$8 sps:$4 sm:$0xff]  }
 0x2ac   :  { %4551 = vmatprep.subr.bf16.mxu1 %v7264_v12  ;;  %v7315_v12 = vld [vmem:[%s9282_s3 + $0xf04] ss:$8 sps:$4 sm:$0xff]  }
 0x2ad   :  { %v4605_v14 = vsel %vm488_vm0, %v4604_v7, %v4603_v58 }
 0x2ae   :  { %4407 = vmatpush1.bf16.msra.mxu0 %v7259_v17  ;;  %v7316_v17 = vld [vmem:[%s9282_s3 + $0xf80] ss:$8 sps:$4 sm:$0xff]  }
 0x2af   :  { %4552 = vmatpush1.bf16.msra.mxu1 %v7262_v18  ;;  %4688 = vmatprep.subr.bf16.mxu0 %v7267_v19  ;;  %v4606_v18 = vpack.c.b16 %v4605_v14, %v4605_v14 }
 0x2b0   :  { %4833 = vmatprep.subr.bf16.mxu1 %v7270_v20  ;;  %v7321_v20 = vld [vmem:[%s9282_s3 + $0xf14] ss:$8 sps:$4 sm:$0xff]  }
 0x2b1   :  { %4425 = vmatmul.mubr.bf16.vlgmr.msra.gmra.mrb[60].mxu0 %v4310_v25  ;;  %v7330_v25 = vld [vmem:[%s9282_s3 + $0xfa4] ss:$8 sps:$4 sm:$0xff]  }
 0x2b2   :  { %4570 = vmatmul.mubr.bf16.vlgmr.msra.gmra.mrb[60].mxu1 %v4455_v26  ;;  %4689 = vmatpush1.bf16.msra.mxu0 %v7265_v23  ;;  %v7322_v23 = vld [vmem:[%s9282_s3 + $0xf90] ss:$8 sps:$4 sm:$0xff]   ;;  %v7325_v26 = vld [vmem:[%s9282_s3 + $0xf20] ss:$8 sps:$4 sm:$0xff]  }
 0x2b3   :  { %4834 = vmatpush1.bf16.msra.mxu1 %v7268_v24  ;;  %4690 = vmatprep.subr.bf16.mxu0 %v7273_v27  ;;  %v7327_v24 = vld [vmem:[%s9282_s3 + $0xf24] ss:$8 sps:$4 sm:$0xff]   ;;  %v7328_v27 = vld [vmem:[%s9282_s3 + $0xfa0] ss:$8 sps:$4 sm:$0xff]  }
 0x2b4   :  { %4835 = vmatprep.subr.bf16.mxu1 %v7276_v28  ;;  %4720 = vmatprep.mubr.bf16.mxu0 %v7401_v2  ;;  %v7333_v28 = vld [vmem:[%s9282_s3 + $0xf34] ss:$8 sps:$4 sm:$0xff]  }
 0x2b5   :  { %4865 = vmatprep.mubr.bf16.mxu1 %v7401_v2 }
 0x2b6   :  { %4691 = vmatpush1.bf16.msra.mxu0 %v7271_v29  ;;  %v7331_v29 = vld [vmem:[%s9282_s3 + $0xf30] ss:$8 sps:$4 sm:$0xff]  }
 0x2b7   :  { %4836 = vmatpush1.bf16.msra.mxu1 %v7274_v30  ;;  %4692 = vmatprep.subr.bf16.mxu0 %v7279_v31  ;;  %v7334_v30 = vld [vmem:[%s9282_s3 + $0xfb0] ss:$8 sps:$4 sm:$0xff]   ;;  %v7339_v31 = vld [vmem:[%s9282_s3 + $0xf44] ss:$8 sps:$4 sm:$0xff]  }
 0x2b8   :  { %4837 = vmatprep.subr.bf16.mxu1 %v7282_v32  ;;  %v7342_v32 = vld [vmem:[%s9282_s3 + $0xfc4] ss:$8 sps:$4 sm:$0xff]  }
 0x2ba   :  { %4693 = vmatpush1.bf16.msra.mxu0 %v7277_v33  ;;  %v7337_v33 = vld [vmem:[%s9282_s3 + $0xf40] ss:$8 sps:$4 sm:$0xff]  }
 0x2bb   :  { %4838 = vmatpush1.bf16.msra.mxu1 %v7280_v34  ;;  %4694 = vmatprep.subr.bf16.mxu0 %v7285_v35  ;;  %v7340_v34 = vld [vmem:[%s9282_s3 + $0xfc0] ss:$8 sps:$4 sm:$0xff]   ;;  %v4876_v35 = vld [vmem:[#allocation2 + $0x8] sm:$0x80] }
 0x2bc   :  { %4839 = vmatprep.subr.bf16.mxu1 %v7288_v36  ;;  %v7345_v36 = vld [vmem:[%s9282_s3 + $0xf54] ss:$8 sps:$4 sm:$0xff]  }
 0x2be   :  { %4695 = vmatpush1.bf16.msra.mxu0 %v7283_v37  ;;  %v7348_v37 = vld [vmem:[%s9282_s3 + $0xfd4] ss:$8 sps:$4 sm:$0xff]  }
 0x2bf   :  { %4840 = vmatpush1.bf16.msra.mxu1 %v7286_v38  ;;  %4696 = vmatprep.subr.bf16.mxu0 %v7291_v39  ;;  %v4877_v38 = vld [vmem:[#allocation2 + $0x18] sm:$0x80]  ;;  %v4897_v39 = vunpack.c.h.b16 %v4876_v35  ;;  %v7365_v35 = vld [vmem:[%s9284_s5 + $0x50] sm:$0xff]  }
 0x2c0   :  { %4841 = vmatprep.subr.bf16.mxu1 %v7294_v40  ;;  %v7343_v40 = vld [vmem:[%s9282_s3 + $0xf50] ss:$8 sps:$4 sm:$0xff]   ;;  %v4898_v46 = vunpack.c.h.b16 %v4877_v38 }
 0x2c1   :  { %v7368_v38 = vld [vmem:[%s9284_s5 + $0x18] sm:$0xff]  }
 0x2c2   :  { %4697 = vmatpush1.bf16.msra.mxu0 %v7289_v41  ;;  %v7346_v41 = vld [vmem:[%s9282_s3 + $0xfd0] ss:$8 sps:$4 sm:$0xff]  }
 0x2c3   :  { %4842 = vmatpush1.bf16.msra.mxu1 %v7292_v42  ;;  %4698 = vmatprep.subr.bf16.mxu0 %v7297_v44  ;;  %v7351_v42 = vld [vmem:[%s9282_s3 + $0xf64] ss:$8 sps:$4 sm:$0xff]  }
 0x2c4   :  { %4843 = vmatprep.subr.bf16.mxu1 %v7300_v45  ;;  %v2654_v52 = vpop.f32.mrb[36].mxu0 }
 0x2c5   :  { %v2799_v53 = vpop.f32.mrb[36].mxu1  ;;  %v2661_v55 = vadd.f32 %v2654_v52, %v8987_v8  ;;  %v2656_v56 = vpop.f32.mrb[37].mxu0  ;;  %v4748_v8 = vrot.slane %v4601_v48, 5 }
 0x2c6   :  { %v2801_v57 = vpop.f32.mrb[37].mxu1  ;;  %v2662_v59 = vadd.f32 %v2656_v56, %v8995_v13  ;;  %v2658_v60 = vpop.f32.mrb[38].mxu0  ;;  %4699 = vmatpush1.bf16.msra.mxu0 %v7295_v47  ;;  %v7318_v13 = vld [vmem:[%s9282_s3 + $0xf84] ss:$8 sps:$4 sm:$0xff]  }
 0x2c7   :  { %v2803_v61 = vpop.f32.mrb[38].mxu1  ;;  %4844 = vmatpush1.bf16.msra.mxu1 %v7298_v49  ;;  %v9093_v0 = vadd.f32 %v2799_v53, %v2661_v55  ;;  %v2659_v1 = vpop.f32.mrb[39].mxu0  ;;  %4700 = vmatprep.subr.bf16.mxu0 %v7303_v50  ;;  %v4750_v15 = vsel %vm488_vm0, %v4749_v9, %v4748_v8  ;;  %v4899_v50 = vrot.slane %v4897_v39, 6  ;;  %v7352_v55 = vld [vmem:[%s9282_s3 + $0xfe0] ss:$8 sps:$4 sm:$0xff]  }
 0x2c8   :  { %v2804_v3 = vpop.f32.mrb[39].mxu1  ;;  %4845 = vmatprep.subr.bf16.mxu1 %v7306_v51  ;;  %v9101_v6 = vadd.f32 %v2801_v57, %v2662_v59  ;;  %v4751_v19 = vpack.c.b16 %v4750_v15, %v4750_v15  ;;  %v7357_v59 = vld [vmem:[%s9282_s3 + $0xf74] ss:$8 sps:$4 sm:$0xff]   ;;  %v7355_v1 = vld [vmem:[%s9282_s3 + $0xf70] ss:$8 sps:$4 sm:$0xff]  }
 0x2c9   :  { %v7360_v60 = vld [vmem:[%s9282_s3 + $0xff4] ss:$8 sps:$4 sm:$0xff]   ;;  %v7358_v3 = vld [vmem:[%s9282_s3 + $0xff0] ss:$8 sps:$4 sm:$0xff]  }
 0x2ca   :  { %4701 = vmatpush1.bf16.msra.mxu0 %v7301_v62  ;;  %v4900_v62 = vrot.slane %v4898_v46, 5 }
 0x2cb   :  { %4846 = vmatpush1.bf16.msra.mxu1 %v7304_v63  ;;  %4702 = vmatprep.subr.bf16.mxu0 %v7309_v4  ;;  %v5044_v63 = vrot.slane %v4897_v39, 7  ;;  %v7369_v39 = vld [vmem:[%s9284_s5 + $0x60] sm:$0xff]  }
 0x2cc   :  { %4847 = vmatprep.subr.bf16.mxu1 %v7312_v5  ;;  %v4901_v4 = vsel %vm488_vm0, %v4900_v62, %v4899_v50 }
 0x2ce   :  { %4703 = vmatpush1.bf16.msra.mxu0 %v7307_v10 }
 0x2cf   :  { %4848 = vmatpush1.bf16.msra.mxu1 %v7310_v11  ;;  %4984 = vmatprep.subr.bf16.mxu0 %v7315_v12 }
 0x2d0   :  { %5129 = vmatprep.subr.bf16.mxu1 %v7318_v13 }
 0x2d1   :  { %4721 = vmatmul.mubr.bf16.vlgmr.msra.gmra.mrb[64].mxu0 %v4606_v18 }
 0x2d2   :  { %4866 = vmatmul.mubr.bf16.vlgmr.msra.gmra.mrb[64].mxu1 %v4751_v19  ;;  %4985 = vmatpush1.bf16.msra.mxu0 %v7313_v16 }
 0x2d3   :  { %5130 = vmatpush1.bf16.msra.mxu1 %v7316_v17  ;;  %4986 = vmatprep.subr.bf16.mxu0 %v7321_v20 }
 0x2d4   :  { %5131 = vmatprep.subr.bf16.mxu1 %v7324_v21  ;;  %5016 = vmatprep.mubr.bf16.mxu0 %v7401_v2 }
 0x2d5   :  { %5161 = vmatprep.mubr.bf16.mxu1 %v7401_v2  ;;  %v7336_v2 = vld [vmem:[%s9282_s3 + $0xfb4] ss:$8 sps:$4 sm:$0xff]  }
 0x2d6   :  { %4987 = vmatpush1.bf16.msra.mxu0 %v7319_v22 }
 0x2d7   :  { %5132 = vmatpush1.bf16.msra.mxu1 %v7322_v23  ;;  %4988 = vmatprep.subr.bf16.mxu0 %v7327_v24 }
 0x2d8   :  { %5133 = vmatprep.subr.bf16.mxu1 %v7330_v25 }
 0x2da   :  { %4989 = vmatpush1.bf16.msra.mxu0 %v7325_v26 }
 0x2db   :  { %5134 = vmatpush1.bf16.msra.mxu1 %v7328_v27  ;;  %4990 = vmatprep.subr.bf16.mxu0 %v7333_v28 }
 0x2dc   :  { %5135 = vmatprep.subr.bf16.mxu1 %v7336_v2 }
 0x2de   :  { %4991 = vmatpush1.bf16.msra.mxu0 %v7331_v29 }
 0x2df   :  { %5136 = vmatpush1.bf16.msra.mxu1 %v7334_v30  ;;  %4992 = vmatprep.subr.bf16.mxu0 %v7339_v31  ;;  %v7361_v31 = vld [vmem:[%s9284_s5 + $0x40] sm:$0xff]  }
 0x2e0   :  { %5137 = vmatprep.subr.bf16.mxu1 %v7342_v32  ;;  %v7362_v32 = vld [vmem:[%s9284_s5] sm:$0xff]  }
 0x2e2   :  { %4993 = vmatpush1.bf16.msra.mxu0 %v7337_v33  ;;  %v7363_v33 = vld [vmem:[%s9284_s5 + $0x48] sm:$0xff]  }
 0x2e3   :  { %5138 = vmatpush1.bf16.msra.mxu1 %v7340_v34  ;;  %4994 = vmatprep.subr.bf16.mxu0 %v7345_v36  ;;  %v7364_v34 = vld [vmem:[%s9284_s5 + $0x8] sm:$0xff]   ;;  %v7366_v36 = vld [vmem:[%s9284_s5 + $0x10] sm:$0xff]  }
 0x2e4   :  { %5139 = vmatprep.subr.bf16.mxu1 %v7348_v37  ;;  %v2949_v44 = vpop.f32.mrb[40].mxu0  ;;  %v7367_v37 = vld [vmem:[%s9284_s5 + $0x58] sm:$0xff]  }
 0x2e5   :  { %v3093_v45 = vpop.f32.mrb[40].mxu1  ;;  %v2956_v48 = vadd.f32 %v2949_v44, %v9093_v0  ;;  %v2951_v47 = vpop.f32.mrb[41].mxu0  ;;  %v5045_v0 = vrot.slane %v4898_v46, 6 }
 0x2e6   :  { %v3095_v49 = vpop.f32.mrb[41].mxu1  ;;  %v2957_v51 = vadd.f32 %v2951_v47, %v9101_v6  ;;  %v2953_v52 = vpop.f32.mrb[42].mxu0  ;;  %4995 = vmatpush1.bf16.msra.mxu0 %v7343_v40  ;;  %v4902_v6 = vpack.c.b16 %v4901_v4, %v4901_v4  ;;  %v7370_v40 = vld [vmem:[%s9284_s5 + $0x20] sm:$0xff]  }
 0x2e7   :  { %v3097_v53 = vpop.f32.mrb[42].mxu1  ;;  %5140 = vmatpush1.bf16.msra.mxu1 %v7346_v41  ;;  %v3100_v56 = vadd.f32 %v3093_v45, %v2956_v48  ;;  %v2954_v57 = vpop.f32.mrb[43].mxu0  ;;  %4996 = vmatprep.subr.bf16.mxu0 %v7351_v42  ;;  %v5046_v5 = vsel %vm488_vm0, %v5045_v0, %v5044_v63 }
 0x2e8   :  { %v3098_v58 = vpop.f32.mrb[43].mxu1  ;;  %5141 = vmatprep.subr.bf16.mxu1 %v7354_v43  ;;  %v3101_v61 = vadd.f32 %v3095_v49, %v2957_v51  ;;  %v5047_v7 = vpack.c.b16 %v5046_v5, %v5046_v5  ;;  %v7371_v53 = vld [vmem:[%s9284_s5 + $0x68] sm:$0xff]   ;;  %v7375_v57 = vld [vmem:[%s9284_s5 + $0x78] sm:$0xff]  }
 0x2e9   :  { %v7376_v58 = vld [vmem:[%s9284_s5 + $0x38] sm:$0xff]  }
 0x2ea   :  { %4997 = vmatpush1.bf16.msra.mxu0 %v7349_v54  ;;  %v7372_v54 = vld [vmem:[%s9284_s5 + $0x28] sm:$0xff]  }
 0x2eb   :  { %5142 = vmatpush1.bf16.msra.mxu1 %v7352_v55  ;;  %4998 = vmatprep.subr.bf16.mxu0 %v7357_v59  ;;  %v7373_v55 = vld [vmem:[%s9284_s5 + $0x70] sm:$0xff]  }
 0x2ec   :  { %5143 = vmatprep.subr.bf16.mxu1 %v7360_v60 }
 0x2ee   :  { %4999 = vmatpush1.bf16.msra.mxu0 %v7355_v1 }
 0x2ef   :  { %5144 = vmatpush1.bf16.msra.mxu1 %v7358_v3  ;;  %6529 = vmatprep.subr.bf16.mxu0 %v7361_v31  ;;  %v5174_v31 = vlaneseq }
 0x2f1   :  { %5017 = vmatmul.mubr.bf16.vlgmr.msra.gmra.mrb[68].mxu0 %v4902_v6 }
 0x2f2   :  { %5162 = vmatmul.mubr.bf16.vlgmr.msra.gmra.mrb[68].mxu1 %v5047_v7  ;;  %6530 = vmatpush3.bf16.msra.mxu0 %v7362_v32  ;;  %v5175_v32 = vshrl.u32 %v5174_v31, 7 }
 0x2f3   :  { %6531 = vmatprep.subr.bf16.mxu0 %v7363_v33 }
 0x2f4   :  { %v5176_v33 = vsub.s32 0, %v5175_v32 }
 0x2f6   :  { %6532 = vmatpush3.bf16.msra.mxu0 %v7364_v34  ;;  %v5172_v34 = vld [vmem:[%s9283_s4] sm:$0x3] }
 0x2f7   :  { %6533 = vmatprep.subr.bf16.mxu0 %v7365_v35  ;;  %v5180_v35 = vsub.s32 1, %v5175_v32 }
 0x2fa   :  { %6534 = vmatpush3.bf16.msra.mxu0 %v7366_v36 }
 0x2fb   :  { %6535 = vmatprep.subr.bf16.mxu0 %v7367_v37 }
 0x2fe   :  { %6536 = vmatpush3.bf16.msra.mxu0 %v7368_v38 }
 0x2ff   :  { %6537 = vmatprep.subr.bf16.mxu0 %v7369_v39  ;;  %v5177_v39 = vrot.slane %v5172_v34, %v5176_v33 }
 0x302   :  { %6538 = vmatpush3.bf16.msra.mxu0 %v7370_v40 }
 0x303   :  { %6539 = vmatprep.subr.bf16.mxu0 %v7371_v53 }
 0x304   :  { %v3244_v8 = vpop.f32.mrb[44].mxu0 }
 0x305   :  { %v3389_v9 = vpop.f32.mrb[44].mxu1  ;;  %v3251_v10 = vadd.f32 %v3244_v8, %v3100_v56  ;;  %v3246_v11 = vpop.f32.mrb[45].mxu0  ;;  %v7374_v56 = vld [vmem:[%s9284_s5 + $0x30] sm:$0xff]  }
 0x306   :  { %v3391_v12 = vpop.f32.mrb[45].mxu1  ;;  %v3252_v13 = vadd.f32 %v3246_v11, %v3101_v61  ;;  %v3248_v14 = vpop.f32.mrb[46].mxu0  ;;  %6540 = vmatpush3.bf16.msra.mxu0 %v7372_v54 }
 0x307   :  { %v3393_v15 = vpop.f32.mrb[46].mxu1  ;;  %v3396_v16 = vadd.f32 %v3389_v9, %v3251_v10  ;;  %v3249_v17 = vpop.f32.mrb[47].mxu0  ;;  %6541 = vmatprep.subr.bf16.mxu0 %v7373_v55 }
 0x308   :  { %v3394_v18 = vpop.f32.mrb[47].mxu1  ;;  %v3397_v19 = vadd.f32 %v3391_v12, %v3252_v13 }
 0x30a   :  { %6542 = vmatpush3.bf16.msra.mxu0 %v7374_v56 }
 0x30b   :  { %6543 = vmatprep.subr.bf16.mxu0 %v7375_v57 }
 0x30e   :  { %6544 = vmatpush3.bf16.msra.mxu0 %v7376_v58  ;;  %v6456_v58 = vld [vmem:[%s9285_s6] ss:$0 sm:$0xff] }
 0x324   :  { %v3540_v20 = vpop.f32.mrb[48].mxu0 }
 0x325   :  { %v3685_v21 = vpop.f32.mrb[48].mxu1  ;;  %v3547_v22 = vadd.f32 %v3540_v20, %v3396_v16  ;;  %v3542_v23 = vpop.f32.mrb[49].mxu0 }
 0x326   :  { %v3687_v24 = vpop.f32.mrb[49].mxu1  ;;  %v3548_v25 = vadd.f32 %v3542_v23, %v3397_v19  ;;  %v3544_v26 = vpop.f32.mrb[50].mxu0 }
 0x327   :  { %v3689_v27 = vpop.f32.mrb[50].mxu1  ;;  %v3692_v28 = vadd.f32 %v3685_v21, %v3547_v22  ;;  %v3545_v2 = vpop.f32.mrb[51].mxu0 }
 0x328   :  { %v3690_v29 = vpop.f32.mrb[51].mxu1  ;;  %v3693_v30 = vadd.f32 %v3687_v24, %v3548_v25 }
 0x344   :  { %v3836_v41 = vpop.f32.mrb[52].mxu0 }
 0x345   :  { %v3981_v42 = vpop.f32.mrb[52].mxu1  ;;  %v3843_v43 = vadd.f32 %v3836_v41, %v3692_v28  ;;  %v3838_v44 = vpop.f32.mrb[53].mxu0 }
 0x346   :  { %v3983_v45 = vpop.f32.mrb[53].mxu1  ;;  %v3844_v46 = vadd.f32 %v3838_v44, %v3693_v30  ;;  %v3840_v48 = vpop.f32.mrb[54].mxu0 }
 0x347   :  { %v3985_v47 = vpop.f32.mrb[54].mxu1  ;;  %v3988_v49 = vadd.f32 %v3981_v42, %v3843_v43  ;;  %v3841_v50 = vpop.f32.mrb[55].mxu0  ;;  %v5181_v43 = vrot.slane %v5172_v34, %v5180_v35 }
 0x348   :  { %v3986_v51 = vpop.f32.mrb[55].mxu1  ;;  %v3989_v52 = vadd.f32 %v3983_v45, %v3844_v46 }
 0x364   :  { %v4131_v59 = vpop.f32.mrb[56].mxu0 }
 0x365   :  { %v4275_v60 = vpop.f32.mrb[56].mxu1  ;;  %v4138_v61 = vadd.f32 %v4131_v59, %v3988_v49  ;;  %v4133_v62 = vpop.f32.mrb[57].mxu0 }
 0x366   :  { %v4277_v63 = vpop.f32.mrb[57].mxu1  ;;  %v4139_v0 = vadd.f32 %v4133_v62, %v3989_v52  ;;  %v4135_v1 = vpop.f32.mrb[58].mxu0 }
 0x367   :  { %v4279_v3 = vpop.f32.mrb[58].mxu1  ;;  %v4282_v4 = vadd.f32 %v4275_v60, %v4138_v61  ;;  %v4136_v5 = vpop.f32.mrb[59].mxu0 }
 0x368   :  { %v4280_v6 = vpop.f32.mrb[59].mxu1  ;;  %v4283_v7 = vadd.f32 %v4277_v63, %v4139_v0 }
 0x384   :  { %v4426_v8 = vpop.f32.mrb[60].mxu0 }
 0x385   :  { %v4571_v9 = vpop.f32.mrb[60].mxu1  ;;  %v4433_v10 = vadd.f32 %v4426_v8, %v4282_v4  ;;  %v4428_v11 = vpop.f32.mrb[61].mxu0 }
 0x386   :  { %v4573_v12 = vpop.f32.mrb[61].mxu1  ;;  %v4434_v13 = vadd.f32 %v4428_v11, %v4283_v7  ;;  %v4430_v14 = vpop.f32.mrb[62].mxu0 }
 0x387   :  { %v4575_v15 = vpop.f32.mrb[62].mxu1  ;;  %v4578_v16 = vadd.f32 %v4571_v9, %v4433_v10  ;;  %v4431_v17 = vpop.f32.mrb[63].mxu0 }
 0x388   :  { %v4576_v18 = vpop.f32.mrb[63].mxu1  ;;  %v4579_v19 = vadd.f32 %v4573_v12, %v4434_v13 }
 0x3a4   :  { %v4722_v20 = vpop.f32.mrb[64].mxu0 }
 0x3a5   :  { %v4867_v21 = vpop.f32.mrb[64].mxu1  ;;  %v4729_v22 = vadd.f32 %v4722_v20, %v4578_v16  ;;  %v4724_v23 = vpop.f32.mrb[65].mxu0 }
 0x3a6   :  { %v4869_v24 = vpop.f32.mrb[65].mxu1  ;;  %v4730_v25 = vadd.f32 %v4724_v23, %v4579_v19  ;;  %v4726_v26 = vpop.f32.mrb[66].mxu0 }
 0x3a7   :  { %v4871_v27 = vpop.f32.mrb[66].mxu1  ;;  %v4874_v28 = vadd.f32 %v4867_v21, %v4729_v22  ;;  %v4727_v2 = vpop.f32.mrb[67].mxu0 }
 0x3a8   :  { %v4872_v29 = vpop.f32.mrb[67].mxu1  ;;  %v4875_v30 = vadd.f32 %v4869_v24, %v4730_v25 }
 0x3c4   :  { %v5018_v36 = vpop.f32.mrb[68].mxu0 }
 0x3c5   :  { %v5163_v37 = vpop.f32.mrb[68].mxu1  ;;  %v5025_v38 = vadd.f32 %v5018_v36, %v4874_v28  ;;  %v5020_v40 = vpop.f32.mrb[69].mxu0 }
 0x3c6   :  { %v5165_v41 = vpop.f32.mrb[69].mxu1  ;;  %v5026_v42 = vadd.f32 %v5020_v40, %v4875_v30  ;;  %v5022_v44 = vpop.f32.mrb[70].mxu0 }
 0x3c7   :  { %v5167_v45 = vpop.f32.mrb[70].mxu1  ;;  %v5170_v46 = vadd.f32 %v5163_v37, %v5025_v38  ;;  %v5023_v48 = vpop.f32.mrb[71].mxu0 }
 0x3c8   :  { %v5168_v47 = vpop.f32.mrb[71].mxu1  ;;  %v5171_v49 = vadd.f32 %v5165_v41, %v5026_v42 }
 0x3c9   :  { %v5184_v50 = vadd.f32 %v5177_v39, %v5170_v46 }
 0x3ca   :  { %v5185_v51 = vadd.f32 %v5181_v43, %v5171_v49 }
 0x3cb   :  { %v5186_v52 = vmax.f32 %v5184_v50, 0.0 }
 0x3cc   :  { %v5187_v53 = vmax.f32 %v5185_v51, 0.0 }
 0x3cd   :  { %v5188_v55 = vpack.c.bf16 %v5186_v52, %v5186_v52 }
 0x3ce   :  { %v5189_v54 = vpack.c.bf16 %v5187_v53, %v5187_v53 }
 0x3d0   :  { %5357 = vmatprep.mubr.bf16.mxu0 %v5189_v54 }
 0x3d1   :  { %5358 = vmatmul.mubr.bf16.vlgmr.msra.gmra.mrb[72].mxu0 %v5188_v55 }
 0x4a4   :  { %v6545_v56 = vpop.f32.mrb[72].mxu0 }
 0x4a5   :  { %v6546_v57 = vpop.f32.mrb[73].mxu0 }
 0x4a6   :  { %v6547_v59 = vadd.f32 %v6546_v57, %v6545_v56  ;;  %v6548_v60 = vpop.f32.mrb[74].mxu0 }
 0x4a7   :  { %v6549_v61 = vpop.f32.mrb[75].mxu0 }
 0x4a8   :  { %v5360_v62 = vadd.f32 %v6547_v59, %v6456_v58 }
 0x4aa   :  { %5365 = vst [vmem:[#allocation3] sm:$0x3] %v5360_v62 }
 0x4ab   :  { %7388 = shalt.err (!%p7385_p4)
}
 0x4ac   :  { %s7389_s9 = scalar_lea.hbm %s9286_s7, 32 }
 0x4ad   :  { %p7390_p5 = scmp.ne.s32.totalorder %s9286_s7, %s7389_s9  ;;  %p7393_p6 = scmp.lt.u32.totalorder %s7389_s9, %s9286_s7 }
 0x4af   :  { %p7395_p7 = pnand %p7393_p6, %p7390_p5 }
 0x4b1   :  { %7398 = shalt.err (!%p7395_p7)
}
 0x4b2   :  { %5375 = dma.vmem_to_hbm [thread:$0]  %s5373_s29, 32, %s9286_s7, [#allocation4]  }
 0x4b3   :  { %7399 = dma.done.wait [#allocation4], 32  }
 0x4b4   :  { %7400 = vsyncadd [#allocation4], 4294967264 }
 0x4b5   :  { %5379 = vsyncpa [#allocation4], 1 }

</bundles_post_ra>
